<compile_context>
chip_gen: v7x
topology: tpu7x:2x2x1
jax: 0.10.0
libtpu: 0.0.40
codegen_flags: <defaults>
</compile_context>

<pallas_src>
import functools

import jax
import jax.numpy as jnp
from jax import lax
from jax.experimental import pallas as pl
from jax.experimental.pallas import tpu as pltpu


def _round_up(x, m):
    return (x + m - 1) // m * m


def _cdiv(a, b):
    return -(-a // b)


def _vmem_limit_bytes():
    # v5e/v6e: 128 MiB physical VMEM, v7x: 64 MiB; leave headroom for the compiler.
    try:
        cap = getattr(pltpu.get_tpu_info(), "vmem_capacity_bytes", 64 * 1024 * 1024)
    except Exception:
        cap = 64 * 1024 * 1024
    return min(int(cap) * 3 // 4, 96 * 1024 * 1024)


def _pick_images_per_tile(n, ho, wo, hp, wp, cin_pad, cout_pad, kh, kw,
                          in_bytes, vmem_limit):
    """Images per grid step: target >=512 output rows, bounded by a rough VMEM estimate."""
    rows_per_img = ho * wo
    nb = max(1, min(n, _cdiv(512, rows_per_img)))

    def est(b):
        # Lane dim of the input block is cin_pad (< 128) -> padded to 128 lanes in VMEM.
        in_blk = b * hp * _round_up(wp, 8) * _round_up(cin_pad, 128) * in_bytes
        out_blk = b * ho * _round_up(wo, 8) * cout_pad * 4
        acc = b * rows_per_img * cout_pad * 4
        w_blk = kh * kw * _round_up(cin_pad, 8) * cout_pad * in_bytes
        return 2 * in_blk + 2 * out_blk + 2 * acc + 2 * w_blk  # double-buffered

    while nb > 1 and est(nb) > vmem_limit // 2:
        nb -= 1
    return nb


# ----------------------------- kernel bodies ---------------------------------
def _conv_accumulate(x_ref, w_ref, *, nb, ho, wo, kh, kw, stride):
    """conv(x) for one block as a sum of kh*kw shifted-window matmuls.

    x_ref: (nb, hp, wp, cin_pad)   w_ref: (kh*kw, cin_pad, cout_pad)
    returns f32 (nb*ho*wo, cout_pad)
    """
    cin_pad = x_ref.shape[-1]
    m = nb * ho * wo
    acc = None
    for ki in range(kh):
        for kj in range(kw):
            if stride == 1:
                xs = x_ref[:, ki:ki + ho, kj:kj + wo, :]
            else:
                xs = x_ref[:, pl.ds(ki, ho, stride), pl.ds(kj, wo, stride), :]
            xs = xs.reshape(m, cin_pad)
            d = jnp.dot(xs, w_ref[ki * kw + kj],
                        preferred_element_type=jnp.float32)
            acc = d if acc is None else acc + d
    return acc


def fused_conv_bn_relu_kernel(x_ref, w_ref, bias_ref, gamma_ref, beta_ref, o_ref,
                              *, nb, ho, wo, kh, kw, stride, eps):
    """Single-tile path: conv + bias + batch-stats BN + ReLU fully fused in VMEM."""
    acc = _conv_accumulate(x_ref, w_ref, nb=nb, ho=ho, wo=wo, kh=kh, kw=kw,
                           stride=stride)
    acc = acc + bias_ref[...]                                   # (m, C) + (1, C)
    m = acc.shape[0]
    inv_m = 1.0 / m
    mean = jnp.sum(acc, axis=0, keepdims=True) * inv_m
    centered = acc - mean
    var = jnp.sum(centered * centered, axis=0, keepdims=True) * inv_m
    scale = gamma_ref[...] * lax.rsqrt(var + eps)
    y = jnp.maximum(centered * scale + beta_ref[...], 0.0)
    o_ref[...] = y.reshape(nb, ho, wo, -1).astype(o_ref.dtype)


def conv_stats_kernel(x_ref, w_ref, sum_ref, sq_ref, *, nb, ho, wo, kh, kw, stride):
    acc = _conv_accumulate(x_ref, w_ref, nb=nb, ho=ho, wo=wo, kh=kh, kw=kw,
                           stride=stride)
    # Zero-padded tail images / channels contribute exactly 0 (no bias added here),
    # so no row/column masking is needed for the statistics.
    sum_ref[...] = jnp.sum(acc, axis=0, keepdims=True).reshape(1, 1, -1)
    sq_ref[...] = jnp.sum(acc * acc, axis=0, keepdims=True).reshape(1, 1, -1)


def conv_bn_relu_kernel(x_ref, w_ref, scale_ref, shift_ref, o_ref,
                        *, nb, ho, wo, kh, kw, stride):
    acc = _conv_accumulate(x_ref, w_ref, nb=nb, ho=ho, wo=wo, kh=kh, kw=kw,
                           stride=stride)
    y = jnp.maximum(acc * scale_ref[...] + shift_ref[...], 0.0)
    o_ref[...] = y.reshape(nb, ho, wo, -1).astype(o_ref.dtype)


# ----------------------------- host wrapper ----------------------------------
@functools.partial(jax.jit, static_argnames=("stride", "padding", "eps", "mxu_dtype"))
def conv_block_forward(x_nchw, w_oihw, bias, gamma, beta, *, stride, padding,
                       eps=1e-5, mxu_dtype=jnp.float32):
    n, cin, h, w = x_nchw.shape
    cout, _, kh, kw = w_oihw.shape
    ho = (h + 2 * padding - kh) // stride + 1
    wo = (w + 2 * padding - kw) // stride + 1
    hp, wp = h + 2 * padding, w + 2 * padding

    cin_pad = _round_up(cin, 8)
    cout_pad = _round_up(cout, 128)     # lane-dense outputs / unmasked stores
    in_bytes = jnp.dtype(mxu_dtype).itemsize

    vmem_limit = _vmem_limit_bytes()
    nb = _pick_images_per_tile(n, ho, wo, hp, wp, cin_pad, cout_pad, kh, kw,
                               in_bytes, vmem_limit)
    fused = (nb == n)                    # whole batch fits one grid step
    n_pad = n if fused else _round_up(n, nb)
    num_tiles = n_pad // nb
    # TODO(synk): very large feature maps would additionally need H-row tiling with
    # overlapping input windows (manual DMA); here whole images fit in VMEM.

    # NCHW -> NHWC, conv zero-padding, channel/batch zero-padding (one cheap XLA pass).
    x_nhwc = jnp.transpose(x_nchw, (0, 2, 3, 1)).astype(mxu_dtype)
    xp = jnp.pad(x_nhwc, ((0, n_pad - n), (padding, padding),
                          (padding, padding), (0, cin_pad - cin)))

    # OIHW -> (kh*kw, cin_pad, cout_pad): one (cin, cout) weight slab per tap.
    w_taps = jnp.transpose(w_oihw, (2, 3, 1, 0)).astype(mxu_dtype)
    w_taps = jnp.pad(w_taps, ((0, 0), (0, 0), (0, cin_pad - cin),
                              (0, cout_pad - cout)))
    w_taps = w_taps.reshape(kh * kw, cin_pad, cout_pad)

    gamma_p = jnp.pad(gamma.astype(jnp.float32), (0, cout_pad - cout)).reshape(1, cout_pad)
    beta_p = jnp.pad(beta.astype(jnp.float32), (0, cout_pad - cout)).reshape(1, cout_pad)
    bias_p = jnp.pad(bias.astype(jnp.float32), (0, cout_pad - cout)).reshape(1, cout_pad)

    grid = (num_tiles,)
    x_spec = pl.BlockSpec((nb, hp, wp, cin_pad), lambda i: (i, 0, 0, 0))
    w_spec = pl.BlockSpec((kh * kw, cin_pad, cout_pad), lambda i: (0, 0, 0))
    vec_spec = pl.BlockSpec((1, cout_pad), lambda i: (0, 0))
    out_spec = pl.BlockSpec((nb, ho, wo, cout_pad), lambda i: (i, 0, 0, 0))
    cparams = pltpu.CompilerParams(dimension_semantics=("parallel",),
                                   vmem_limit_bytes=vmem_limit)

    if fused:
        # ---- Single fused pass: conv + bias + BN(batch stats) + ReLU ----------
        kern = functools.partial(fused_conv_bn_relu_kernel, nb=nb, ho=ho, wo=wo,
                                 kh=kh, kw=kw, stride=stride, eps=eps)
        y = pl.pallas_call(
            kern,
            out_shape=jax.ShapeDtypeStruct((n_pad, ho, wo, cout_pad), jnp.float32),
            grid=grid,
            in_specs=[x_spec, w_spec, vec_spec, vec_spec, vec_spec],
            out_specs=out_spec,
            compiler_params=pltpu.CompilerParams(
                dimension_semantics=("arbitrary",), vmem_limit_bytes=vmem_limit),
        )(xp, w_taps, bias_p, gamma_p, beta_p)
    else:
        # ---- Pass 1: per-channel partial sum / sum-of-squares of conv(x) -------
        kern_a = functools.partial(conv_stats_kernel, nb=nb, ho=ho, wo=wo,
                                   kh=kh, kw=kw, stride=stride)
        sum_part, sq_part = pl.pallas_call(
            kern_a,
            out_shape=(jax.ShapeDtypeStruct((num_tiles, 1, cout_pad), jnp.float32),
                       jax.ShapeDtypeStruct((num_tiles, 1, cout_pad), jnp.float32)),
            grid=grid,
            in_specs=[x_spec, w_spec],
            out_specs=(pl.BlockSpec((1, 1, cout_pad), lambda i: (i, 0, 0)),
                       pl.BlockSpec((1, 1, cout_pad), lambda i: (i, 0, 0))),
            compiler_params=cparams,
        )(xp, w_taps)

        # ---- BatchNorm2d training-mode batch stats (biased variance) -----------
        # TODO(synk): running_mean/running_var buffer updates omitted (no effect on output).
        m_real = n * ho * wo
        mean_conv = jnp.sum(sum_part, axis=(0, 1)) / m_real
        # Single-pass E[x^2]-mean^2 in f32; adequate here, can lose precision for
        # huge activations.
        var = jnp.maximum(jnp.sum(sq_part, axis=(0, 1)) / m_real
                          - mean_conv * mean_conv, 0.0)

        mean_z = mean_conv + bias_p[0]            # BN sees conv(x) + conv bias
        scale = gamma_p[0] * lax.rsqrt(var + eps)  # var(conv + bias) == var(conv)
        # Pass 2 recomputes the bias-free conv:
        #   scale*(conv + bias - mean_z) + beta == scale*conv + shift
        shift = beta_p[0] + scale * (bias_p[0] - mean_z)
        scale2 = scale.reshape(1, cout_pad)
        shift2 = shift.reshape(1, cout_pad)

        # ---- Pass 2: conv recompute fused with BN + ReLU, lane-dense NHWC out ---
        kern_b = functools.partial(conv_bn_relu_kernel, nb=nb, ho=ho, wo=wo,
                                   kh=kh, kw=kw, stride=stride)
        y = pl.pallas_call(
            kern_b,
            out_shape=jax.ShapeDtypeStruct((n_pad, ho, wo, cout_pad), jnp.float32),
            grid=grid,
            in_specs=[x_spec, w_spec, vec_spec, vec_spec],
            out_specs=out_spec,
            compiler_params=cparams,
        )(xp, w_taps, scale2, shift2)

    # Back to PyTorch NCHW at the boundary (consumers that take NHWC can skip this).
    return jnp.transpose(y[:n, :, :, :cout], (0, 3, 1, 2))


# ----------------------------- pure-JAX reference -----------------------------
def reference(x_nchw, w_oihw, bias, gamma, beta, *, stride, padding, eps=1e-5):
    x = x_nchw.astype(jnp.float32)
    out = lax.conv_general_dilated(
        x, w_oihw.astype(jnp.float32),
        window_strides=(stride, stride),
        padding=[(padding, padding), (padding, padding)],
        dimension_numbers=("NCHW", "OIHW", "NCHW"))
    out = out + bias.reshape(1, -1, 1, 1)
    mean = out.mean(axis=(0, 2, 3), keepdims=True)
    var = out.var(axis=(0, 2, 3), keepdims=True)
    out = (out - mean) * lax.rsqrt(var + eps) * gamma.reshape(1, -1, 1, 1) \
        + beta.reshape(1, -1, 1, 1)
    return jnp.maximum(out, 0.0)


if __name__ == "__main__":
    # ConvBlock(in_channels=4, n_filters=8, k_size=3, stride=1, padding=1)
    N, Cin, H, W = 2, 4, 16, 16
    Cout, K, STRIDE, PAD = 8, 3, 1, 1

    key = jax.random.PRNGKey(0)
    kx, kw, kb = jax.random.split(key, 3)
    x = jax.random.normal(kx, (N, Cin, H, W), dtype=jnp.float32)
    w_oihw = 0.1 * jax.random.normal(kw, (Cout, Cin, K, K), dtype=jnp.float32)
    bias = 0.1 * jax.random.normal(kb, (Cout,), dtype=jnp.float32)
    gamma = jnp.ones((Cout,), dtype=jnp.float32)   # nn.BatchNorm2d default weight
    beta = jnp.zeros((Cout,), dtype=jnp.float32)   # nn.BatchNorm2d default bias

    out = conv_block_forward(x, w_oihw, bias, gamma, beta, stride=STRIDE, padding=PAD)
    out = jax.block_until_ready(out)

    ref = reference(x, w_oihw, bias, gamma, beta, stride=STRIDE, padding=PAD)
    assert out.shape == (N, Cout, H, W), out.shape
    assert jnp.allclose(out, ref, atol=1e-4, rtol=1e-4), float(jnp.abs(out - ref).max())
    print("KERNEL_OK")
</pallas_src>

<mosaic_0001>
module attributes {stable_mosaic.version = 11 : i64} {
  func.func @fused_conv_bn_relu_kernel(%arg0: i32, %arg1: memref<2x18x18x8xf32, #tpu.memory_space<vmem>>, %arg2: memref<9x8x128xf32, #tpu.memory_space<vmem>>, %arg3: memref<1x128xf32, #tpu.memory_space<vmem>>, %arg4: memref<1x128xf32, #tpu.memory_space<vmem>>, %arg5: memref<1x128xf32, #tpu.memory_space<vmem>>, %arg6: memref<2x16x16x128xf32, #tpu.memory_space<vmem>>) attributes {dimension_semantics = [#tpu.dimension_semantics<arbitrary>], iteration_bounds = array<i64: 1>, scalar_prefetch = 0 : i64, scratch_operands = 0 : i64, tpu.core_type = #tpu.core_type<tc>, window_params = [{transform_indices = @transform_0, window_bounds = array<i64: 2, 18, 18, 8>}, {pipeline_mode = #tpu.pipeline_mode<synchronous>, transform_indices = @transform_1, window_bounds = array<i64: 9, 8, 128>}, {pipeline_mode = #tpu.pipeline_mode<synchronous>, transform_indices = @transform_2, window_bounds = array<i64: 1, 128>}, {pipeline_mode = #tpu.pipeline_mode<synchronous>, transform_indices = @transform_3, window_bounds = array<i64: 1, 128>}, {pipeline_mode = #tpu.pipeline_mode<synchronous>, transform_indices = @transform_4, window_bounds = array<i64: 1, 128>}, {transform_indices = @transform_5, window_bounds = array<i64: 2, 16, 16, 128>}]} {
    %c0 = arith.constant 0 : index
    %c0_0 = arith.constant 0 : index
    %c0_1 = arith.constant 0 : index
    %c0_2 = arith.constant 0 : index
    %0 = vector.load %arg1[%c0, %c0_0, %c0_1, %c0_2] : memref<2x18x18x8xf32, #tpu.memory_space<vmem>>, vector<2x16x16x8xf32>
    %1 = vector.shape_cast %0 : vector<2x16x16x8xf32> to vector<512x8xf32>
    %c0_3 = arith.constant 0 : index
    %c0_4 = arith.constant 0 : index
    %c0_5 = arith.constant 0 : index
    %2 = vector.load %arg2[%c0_3, %c0_4, %c0_5] : memref<9x8x128xf32, #tpu.memory_space<vmem>>, vector<1x8x128xf32>
    %3 = vector.shape_cast %2 : vector<1x8x128xf32> to vector<8x128xf32>
    %cst = arith.constant dense<0.000000e+00> : vector<512x128xf32>
    %4 = tpu.matmul %1, %3, %cst {dimension_numbers = #tpu.dot_dimension_numbers<[1], [0], [0], [1], [0, 0, 1, 1], [], []>} : vector<512x8xf32>, vector<8x128xf32>, vector<512x128xf32> -> vector<512x128xf32>
    %c0_6 = arith.constant 0 : index
    %c0_7 = arith.constant 0 : index
    %c1 = arith.constant 1 : index
    %c0_8 = arith.constant 0 : index
    %5 = vector.load %arg1[%c0_6, %c0_7, %c1, %c0_8] : memref<2x18x18x8xf32, #tpu.memory_space<vmem>>, vector<2x16x16x8xf32>
    %6 = vector.shape_cast %5 : vector<2x16x16x8xf32> to vector<512x8xf32>
    %c1_9 = arith.constant 1 : index
    %c0_10 = arith.constant 0 : index
    %c0_11 = arith.constant 0 : index
    %7 = vector.load %arg2[%c1_9, %c0_10, %c0_11] : memref<9x8x128xf32, #tpu.memory_space<vmem>>, vector<1x8x128xf32>
    %8 = vector.shape_cast %7 : vector<1x8x128xf32> to vector<8x128xf32>
    %cst_12 = arith.constant dense<0.000000e+00> : vector<512x128xf32>
    %9 = tpu.matmul %6, %8, %cst_12 {dimension_numbers = #tpu.dot_dimension_numbers<[1], [0], [0], [1], [0, 0, 1, 1], [], []>} : vector<512x8xf32>, vector<8x128xf32>, vector<512x128xf32> -> vector<512x128xf32>
    %10 = arith.addf %4, %9 : vector<512x128xf32>
    %c0_13 = arith.constant 0 : index
    %c0_14 = arith.constant 0 : index
    %c2 = arith.constant 2 : index
    %c0_15 = arith.constant 0 : index
    %11 = vector.load %arg1[%c0_13, %c0_14, %c2, %c0_15] : memref<2x18x18x8xf32, #tpu.memory_space<vmem>>, vector<2x16x16x8xf32>
    %12 = vector.shape_cast %11 : vector<2x16x16x8xf32> to vector<512x8xf32>
    %c2_16 = arith.constant 2 : index
    %c0_17 = arith.constant 0 : index
    %c0_18 = arith.constant 0 : index
    %13 = vector.load %arg2[%c2_16, %c0_17, %c0_18] : memref<9x8x128xf32, #tpu.memory_space<vmem>>, vector<1x8x128xf32>
    %14 = vector.shape_cast %13 : vector<1x8x128xf32> to vector<8x128xf32>
    %cst_19 = arith.constant dense<0.000000e+00> : vector<512x128xf32>
    %15 = tpu.matmul %12, %14, %cst_19 {dimension_numbers = #tpu.dot_dimension_numbers<[1], [0], [0], [1], [0, 0, 1, 1], [], []>} : vector<512x8xf32>, vector<8x128xf32>, vector<512x128xf32> -> vector<512x128xf32>
    %16 = arith.addf %10, %15 : vector<512x128xf32>
    %c0_20 = arith.constant 0 : index
    %c1_21 = arith.constant 1 : index
    %c0_22 = arith.constant 0 : index
    %c0_23 = arith.constant 0 : index
    %17 = vector.load %arg1[%c0_20, %c1_21, %c0_22, %c0_23] : memref<2x18x18x8xf32, #tpu.memory_space<vmem>>, vector<2x16x16x8xf32>
    %18 = vector.shape_cast %17 : vector<2x16x16x8xf32> to vector<512x8xf32>
    %c3 = arith.constant 3 : index
    %c0_24 = arith.constant 0 : index
    %c0_25 = arith.constant 0 : index
    %19 = vector.load %arg2[%c3, %c0_24, %c0_25] : memref<9x8x128xf32, #tpu.memory_space<vmem>>, vector<1x8x128xf32>
    %20 = vector.shape_cast %19 : vector<1x8x128xf32> to vector<8x128xf32>
    %cst_26 = arith.constant dense<0.000000e+00> : vector<512x128xf32>
    %21 = tpu.matmul %18, %20, %cst_26 {dimension_numbers = #tpu.dot_dimension_numbers<[1], [0], [0], [1], [0, 0, 1, 1], [], []>} : vector<512x8xf32>, vector<8x128xf32>, vector<512x128xf32> -> vector<512x128xf32>
    %22 = arith.addf %16, %21 : vector<512x128xf32>
    %c0_27 = arith.constant 0 : index
    %c1_28 = arith.constant 1 : index
    %c1_29 = arith.constant 1 : index
    %c0_30 = arith.constant 0 : index
    %23 = vector.load %arg1[%c0_27, %c1_28, %c1_29, %c0_30] : memref<2x18x18x8xf32, #tpu.memory_space<vmem>>, vector<2x16x16x8xf32>
    %24 = vector.shape_cast %23 : vector<2x16x16x8xf32> to vector<512x8xf32>
    %c4 = arith.constant 4 : index
    %c0_31 = arith.constant 0 : index
    %c0_32 = arith.constant 0 : index
    %25 = vector.load %arg2[%c4, %c0_31, %c0_32] : memref<9x8x128xf32, #tpu.memory_space<vmem>>, vector<1x8x128xf32>
    %26 = vector.shape_cast %25 : vector<1x8x128xf32> to vector<8x128xf32>
    %cst_33 = arith.constant dense<0.000000e+00> : vector<512x128xf32>
    %27 = tpu.matmul %24, %26, %cst_33 {dimension_numbers = #tpu.dot_dimension_numbers<[1], [0], [0], [1], [0, 0, 1, 1], [], []>} : vector<512x8xf32>, vector<8x128xf32>, vector<512x128xf32> -> vector<512x128xf32>
    %28 = arith.addf %22, %27 : vector<512x128xf32>
    %c0_34 = arith.constant 0 : index
    %c1_35 = arith.constant 1 : index
    %c2_36 = arith.constant 2 : index
    %c0_37 = arith.constant 0 : index
    %29 = vector.load %arg1[%c0_34, %c1_35, %c2_36, %c0_37] : memref<2x18x18x8xf32, #tpu.memory_space<vmem>>, vector<2x16x16x8xf32>
    %30 = vector.shape_cast %29 : vector<2x16x16x8xf32> to vector<512x8xf32>
    %c5 = arith.constant 5 : index
    %c0_38 = arith.constant 0 : index
    %c0_39 = arith.constant 0 : index
    %31 = vector.load %arg2[%c5, %c0_38, %c0_39] : memref<9x8x128xf32, #tpu.memory_space<vmem>>, vector<1x8x128xf32>
    %32 = vector.shape_cast %31 : vector<1x8x128xf32> to vector<8x128xf32>
    %cst_40 = arith.constant dense<0.000000e+00> : vector<512x128xf32>
    %33 = tpu.matmul %30, %32, %cst_40 {dimension_numbers = #tpu.dot_dimension_numbers<[1], [0], [0], [1], [0, 0, 1, 1], [], []>} : vector<512x8xf32>, vector<8x128xf32>, vector<512x128xf32> -> vector<512x128xf32>
    %34 = arith.addf %28, %33 : vector<512x128xf32>
    %c0_41 = arith.constant 0 : index
    %c2_42 = arith.constant 2 : index
    %c0_43 = arith.constant 0 : index
    %c0_44 = arith.constant 0 : index
    %35 = vector.load %arg1[%c0_41, %c2_42, %c0_43, %c0_44] : memref<2x18x18x8xf32, #tpu.memory_space<vmem>>, vector<2x16x16x8xf32>
    %36 = vector.shape_cast %35 : vector<2x16x16x8xf32> to vector<512x8xf32>
    %c6 = arith.constant 6 : index
    %c0_45 = arith.constant 0 : index
    %c0_46 = arith.constant 0 : index
    %37 = vector.load %arg2[%c6, %c0_45, %c0_46] : memref<9x8x128xf32, #tpu.memory_space<vmem>>, vector<1x8x128xf32>
    %38 = vector.shape_cast %37 : vector<1x8x128xf32> to vector<8x128xf32>
    %cst_47 = arith.constant dense<0.000000e+00> : vector<512x128xf32>
    %39 = tpu.matmul %36, %38, %cst_47 {dimension_numbers = #tpu.dot_dimension_numbers<[1], [0], [0], [1], [0, 0, 1, 1], [], []>} : vector<512x8xf32>, vector<8x128xf32>, vector<512x128xf32> -> vector<512x128xf32>
    %40 = arith.addf %34, %39 : vector<512x128xf32>
    %c0_48 = arith.constant 0 : index
    %c2_49 = arith.constant 2 : index
    %c1_50 = arith.constant 1 : index
    %c0_51 = arith.constant 0 : index
    %41 = vector.load %arg1[%c0_48, %c2_49, %c1_50, %c0_51] : memref<2x18x18x8xf32, #tpu.memory_space<vmem>>, vector<2x16x16x8xf32>
    %42 = vector.shape_cast %41 : vector<2x16x16x8xf32> to vector<512x8xf32>
    %c7 = arith.constant 7 : index
    %c0_52 = arith.constant 0 : index
    %c0_53 = arith.constant 0 : index
    %43 = vector.load %arg2[%c7, %c0_52, %c0_53] : memref<9x8x128xf32, #tpu.memory_space<vmem>>, vector<1x8x128xf32>
    %44 = vector.shape_cast %43 : vector<1x8x128xf32> to vector<8x128xf32>
    %cst_54 = arith.constant dense<0.000000e+00> : vector<512x128xf32>
    %45 = tpu.matmul %42, %44, %cst_54 {dimension_numbers = #tpu.dot_dimension_numbers<[1], [0], [0], [1], [0, 0, 1, 1], [], []>} : vector<512x8xf32>, vector<8x128xf32>, vector<512x128xf32> -> vector<512x128xf32>
    %46 = arith.addf %40, %45 : vector<512x128xf32>
    %c0_55 = arith.constant 0 : index
    %c2_56 = arith.constant 2 : index
    %c2_57 = arith.constant 2 : index
    %c0_58 = arith.constant 0 : index
    %47 = vector.load %arg1[%c0_55, %c2_56, %c2_57, %c0_58] : memref<2x18x18x8xf32, #tpu.memory_space<vmem>>, vector<2x16x16x8xf32>
    %48 = vector.shape_cast %47 : vector<2x16x16x8xf32> to vector<512x8xf32>
    %c8 = arith.constant 8 : index
    %c0_59 = arith.constant 0 : index
    %c0_60 = arith.constant 0 : index
    %49 = vector.load %arg2[%c8, %c0_59, %c0_60] : memref<9x8x128xf32, #tpu.memory_space<vmem>>, vector<1x8x128xf32>
    %50 = vector.shape_cast %49 : vector<1x8x128xf32> to vector<8x128xf32>
    %cst_61 = arith.constant dense<0.000000e+00> : vector<512x128xf32>
    %51 = tpu.matmul %48, %50, %cst_61 {dimension_numbers = #tpu.dot_dimension_numbers<[1], [0], [0], [1], [0, 0, 1, 1], [], []>} : vector<512x8xf32>, vector<8x128xf32>, vector<512x128xf32> -> vector<512x128xf32>
    %52 = arith.addf %46, %51 : vector<512x128xf32>
    %c0_62 = arith.constant 0 : index
    %c0_63 = arith.constant 0 : index
    %53 = vector.load %arg3[%c0_62, %c0_63] : memref<1x128xf32, #tpu.memory_space<vmem>>, vector<1x128xf32>
    %54 = vector.broadcast %53 : vector<1x128xf32> to vector<512x128xf32>
    %55 = arith.addf %52, %54 : vector<512x128xf32>
    %cst_64 = arith.constant dense<0.000000e+00> : vector<128xf32>
    %56 = vector.multi_reduction <add>, %55, %cst_64 [0] : vector<512x128xf32> to vector<128xf32>
    %57 = vector.shape_cast %56 : vector<128xf32> to vector<1x128xf32>
    %cst_65 = arith.constant 0.001953125 : f32
    %58 = vector.broadcast %cst_65 : f32 to vector<1x128xf32>
    %59 = arith.mulf %57, %58 : vector<1x128xf32>
    %60 = vector.broadcast %59 : vector<1x128xf32> to vector<512x128xf32>
    %61 = arith.subf %55, %60 : vector<512x128xf32>
    %62 = arith.mulf %61, %61 : vector<512x128xf32>
    %cst_66 = arith.constant dense<0.000000e+00> : vector<128xf32>
    %63 = vector.multi_reduction <add>, %62, %cst_66 [0] : vector<512x128xf32> to vector<128xf32>
    %64 = vector.shape_cast %63 : vector<128xf32> to vector<1x128xf32>
    %cst_67 = arith.constant 0.001953125 : f32
    %65 = vector.broadcast %cst_67 : f32 to vector<1x128xf32>
    %66 = arith.mulf %64, %65 : vector<1x128xf32>
    %c0_68 = arith.constant 0 : index
    %c0_69 = arith.constant 0 : index
    %67 = vector.load %arg4[%c0_68, %c0_69] : memref<1x128xf32, #tpu.memory_space<vmem>>, vector<1x128xf32>
    %cst_70 = arith.constant 9.99999974E-6 : f32
    %68 = vector.broadcast %cst_70 : f32 to vector<1x128xf32>
    %69 = arith.addf %66, %68 : vector<1x128xf32>
    %70 = math.rsqrt %69 : vector<1x128xf32>
    %71 = arith.mulf %67, %70 : vector<1x128xf32>
    %72 = vector.broadcast %71 : vector<1x128xf32> to vector<512x128xf32>
    %73 = arith.mulf %61, %72 : vector<512x128xf32>
    %c0_71 = arith.constant 0 : index
    %c0_72 = arith.constant 0 : index
    %74 = vector.load %arg5[%c0_71, %c0_72] : memref<1x128xf32, #tpu.memory_space<vmem>>, vector<1x128xf32>
    %75 = vector.broadcast %74 : vector<1x128xf32> to vector<512x128xf32>
    %76 = arith.addf %73, %75 : vector<512x128xf32>
    %cst_73 = arith.constant 0.000000e+00 : f32
    %77 = vector.broadcast %cst_73 : f32 to vector<512x128xf32>
    %78 = arith.maximumf %76, %77 : vector<512x128xf32>
    %79 = vector.shape_cast %78 : vector<512x128xf32> to vector<2x16x16x128xf32>
    %c0_74 = arith.constant 0 : index
    %c0_75 = arith.constant 0 : index
    %c0_76 = arith.constant 0 : index
    %c0_77 = arith.constant 0 : index
    %80 = vector.load %arg6[%c0_74, %c0_75, %c0_76, %c0_77] : memref<2x16x16x128xf32, #tpu.memory_space<vmem>>, vector<2x16x16x128xf32>
    tpu.vector_store %arg6[%c0_74, %c0_75, %c0_76, %c0_77], %79 {strides = array<i32>} : memref<2x16x16x128xf32, #tpu.memory_space<vmem>>, vector<2x16x16x128xf32>,
    return
  }
  func.func @transform_0(%arg0: i32) -> (i32, i32, i32, i32) {
    %c0_i32 = arith.constant 0 : i32
    %c0_i32_0 = arith.constant 0 : i32
    %c0_i32_1 = arith.constant 0 : i32
    %c0_i32_2 = arith.constant 0 : i32
    return %arg0, %c0_i32, %c0_i32_0, %c0_i32_1 : i32, i32, i32, i32
  }
  func.func @transform_1(%arg0: i32) -> (i32, i32, i32) {
    %c0_i32 = arith.constant 0 : i32
    %c0_i32_0 = arith.constant 0 : i32
    %c0_i32_1 = arith.constant 0 : i32
    %c0_i32_2 = arith.constant 0 : i32
    return %c0_i32, %c0_i32_0, %c0_i32_1 : i32, i32, i32
  }
  func.func @transform_2(%arg0: i32) -> (i32, i32) {
    %c0_i32 = arith.constant 0 : i32
    %c0_i32_0 = arith.constant 0 : i32
    %c0_i32_1 = arith.constant 0 : i32
    return %c0_i32, %c0_i32_0 : i32, i32
  }
  func.func @transform_3(%arg0: i32) -> (i32, i32) {
    %c0_i32 = arith.constant 0 : i32
    %c0_i32_0 = arith.constant 0 : i32
    %c0_i32_1 = arith.constant 0 : i32
    return %c0_i32, %c0_i32_0 : i32, i32
  }
  func.func @transform_4(%arg0: i32) -> (i32, i32) {
    %c0_i32 = arith.constant 0 : i32
    %c0_i32_0 = arith.constant 0 : i32
    %c0_i32_1 = arith.constant 0 : i32
    return %c0_i32, %c0_i32_0 : i32, i32
  }
  func.func @transform_5(%arg0: i32) -> (i32, i32, i32, i32) {
    %c0_i32 = arith.constant 0 : i32
    %c0_i32_0 = arith.constant 0 : i32
    %c0_i32_1 = arith.constant 0 : i32
    %c0_i32_2 = arith.constant 0 : i32
    return %arg0, %c0_i32, %c0_i32_0, %c0_i32_1 : i32, i32, i32, i32
  }
}

</mosaic_0001>

<bundles_post_ra>
// kernel: conv_block_forward.1
= control target key start
LH: loop header
LB: loop body
LE: loop exit
PB: predicated region body
PF: predicated region fallthrough
CT: control target
= control target key end

     0   :  { %vm151_vm0 = vcmask 64512   ;;  %s13670_s1 = inlined_call_operand.vmem [shape: f32[9,8,128], index: 1, kind: input, shape index: {}]   ;;  %s13671_s0 = inlined_call_operand.vmem [shape: f32[2,18,18,8], index: 0, kind: input, shape index: {}]   ;;  %s13672_s2 = inlined_call_operand.vmem [shape: f32[1,128], index: 2, kind: input, shape index: {}]   ;;  %s13673_s3 = inlined_call_operand.vmem [shape: f32[1,128], index: 3, kind: input, shape index: {}]   ;;  %s13674_s4 = inlined_call_operand.vmem [shape: f32[1,128], index: 4, kind: input, shape index: {}]   ;;  %s13675_s5 = inlined_call_operand.vmem [shape: f32[2,16,16,128], index: 5, kind: output, shape index: {}]  }
   0x1   :  { %v6873_v0 = vld [vmem:[%s13670_s1 + $0x8] sm:$0xff]  ;;  %v9863_v1 = vld [vmem:[%s13670_s1 + $0x20] sm:$0xff]  ;;  %v7198_v8 = vld [vmem:[%s13671_s0 + $0x31] sm:$0xff] }
   0x2   :  { %v85_v2 = vld [vmem:[%s13671_s0 + $0x1] sm:$0xff]  ;;  %8428 = vmatprep.subr.mxu1 %v6873_v0  ;;  %8820 = vmatprep.subr.mxu0 %v9863_v1  ;;  %v7196_v3 = vld [vmem:[%s13671_s0 + $0x19] sm:$0xff]  ;;  %v86_v4 = vld [vmem:[%s13671_s0 + $0x9] sm:$0xff] }
   0x3   :  { %v84_v5 = vld [vmem:[%s13670_s1] sm:$0xff]  ;;  %8429 = vmatpush3.msra.mxu1 %v6873_v0  ;;  %8430 = vmatprep.mubr.msk.f32.mxu1 %vm151_vm0, %v85_v2  ;;  %v7389_v7 = vld [vmem:[%s13670_s1 + $0x28] sm:$0xff]  ;;  %v7201_v11 = vld [vmem:[%s13671_s0 + $0x51] sm:$0xff] }
   0x4   :  { %v7197_v6 = vld [vmem:[%s13671_s0 + $0x21] sm:$0xff]  ;;  %8821 = vmatpush3.msra.mxu0 %v9863_v1  ;;  %8822 = vmatprep.mubr.msk.f32.mxu0 %vm151_vm0, %v7196_v3  ;;  %v7199_v9 = vld [vmem:[%s13671_s0 + $0x39] sm:$0xff]  ;;  %v7200_v10 = vld [vmem:[%s13671_s0 + $0x49] sm:$0xff] }
   0x5   :  { %8431 = vmatmul.mubr.msk.f32.vlgmr.msra.gmra.mrb[0].mxu1 %vm151_vm0, %v86_v4  ;;  %8526 = vmatprep.subr.mxu1 %v84_v5  ;;  %v7202_v12 = vld [vmem:[%s13671_s0 + $0x61] sm:$0xff]  ;;  %v7203_v13 = vld [vmem:[%s13671_s0 + $0x69] sm:$0xff]  ;;  %v7204_v15 = vld [vmem:[%s13671_s0 + $0x79] sm:$0xff] }
   0x6   :  { %8823 = vmatmul.mubr.msk.f32.vlgmr.msra.gmra.mrb[0].mxu0 %vm151_vm0, %v7197_v6  ;;  %8918 = vmatprep.subr.mxu0 %v7389_v7  ;;  %v9920_v14 = vld [vmem:[%s13670_s1 + $0x30] sm:$0xff]  ;;  %v7205_v16 = vld [vmem:[%s13671_s0 + $0x81] sm:$0xff]  ;;  %v7207_v18 = vld [vmem:[%s13671_s0 + $0x99] sm:$0xff] }
   0x7   :  { %8527 = vmatpush3.msra.mxu1 %v84_v5  ;;  %8919 = vmatpush3.msra.mxu0 %v7389_v7  ;;  %v7206_v17 = vld [vmem:[%s13671_s0 + $0x91] sm:$0xff]  ;;  %v7208_v19 = vld [vmem:[%s13671_s0 + $0xa9] sm:$0xff]  ;;  %v7210_v21 = vld [vmem:[%s13671_s0 + $0xc1] sm:$0xff] }
   0x8   :  { %8433 = vmatprep.mubr.msk.f32.mxu1 %vm151_vm0, %v7196_v3  ;;  %8825 = vmatprep.mubr.msk.f32.mxu0 %vm151_vm0, %v7198_v8  ;;  %v7209_v20 = vld [vmem:[%s13671_s0 + $0xb1] sm:$0xff]  ;;  %v7211_v22 = vld [vmem:[%s13671_s0 + $0xc9] sm:$0xff]  ;;  %v7212_v23 = vld [vmem:[%s13671_s0 + $0xd9] sm:$0xff] }
   0x9   :  { %8434 = vmatmul.mubr.msk.f32.gmra.mrb[2].mxu1 %vm151_vm0, %v7197_v6  ;;  %9016 = vmatprep.subr.mxu0 %v9920_v14  ;;  %v7213_v24 = vld [vmem:[%s13671_s0 + $0xe1] sm:$0xff]  ;;  %v7214_v25 = vld [vmem:[%s13671_s0 + $0xf1] sm:$0xff]  ;;  %v7215_v27 = vld [vmem:[%s13671_s0 + $0xf9] sm:$0xff] }
   0xa   :  { %8826 = vmatmul.mubr.msk.f32.gmra.mrb[2].mxu0 %vm151_vm0, %v7199_v9  ;;  %8436 = vmatprep.mubr.msk.f32.mxu1 %vm151_vm0, %v7198_v8  ;;  %v9979_v26 = vld [vmem:[%s13670_s1 + $0x10] sm:$0xff]  ;;  %v7218_v30 = vld [vmem:[%s13671_s0 + $0x121] sm:$0xff]  ;;  %v7220_v32 = vld [vmem:[%s13671_s0 + $0x139] sm:$0xff] }
   0xb   :  { %8828 = vmatprep.mubr.msk.f32.mxu0 %vm151_vm0, %v7200_v10  ;;  %8624 = vmatprep.subr.mxu1 %v9979_v26  ;;  %v7216_v28 = vld [vmem:[%s13671_s0 + $0x109] sm:$0xff]  ;;  %v7217_v29 = vld [vmem:[%s13671_s0 + $0x111] sm:$0xff]  ;;  %v7221_v33 = vld [vmem:[%s13671_s0 + $0x141] sm:$0xff] }
   0xc   :  { %v7219_v31 = vld [vmem:[%s13671_s0 + $0x129] sm:$0xff]  ;;  %v7222_v34 = vld [vmem:[%s13671_s0 + $0x151] sm:$0xff]  ;;  %v7223_v35 = vld [vmem:[%s13671_s0 + $0x159] sm:$0xff] }
   0xd   :  { %8437 = vmatmul.mubr.msk.f32.gmra.mrb[4].mxu1 %vm151_vm0, %v7199_v9  ;;  %v7224_v36 = vld [vmem:[%s13671_s0 + $0x169] sm:$0xff]  ;;  %v7225_v37 = vld [vmem:[%s13671_s0 + $0x171] sm:$0xff]  ;;  %v7226_v38 = vld [vmem:[%s13671_s0 + $0x181] sm:$0xff] }
   0xe   :  { %8829 = vmatmul.mubr.msk.f32.gmra.mrb[4].mxu0 %vm151_vm0, %v7201_v11  ;;  %8439 = vmatprep.mubr.msk.f32.mxu1 %vm151_vm0, %v7200_v10  ;;  %v7227_v39 = vld [vmem:[%s13671_s0 + $0x189] sm:$0xff]  ;;  %v117_v40 = vld [vmem:[%s13671_s0 + $0x1b1] sm:$0xff]  ;;  %v10055_v41 = vld [vmem:[%s13671_s0 + $0x1a] sm:$0xff] }
   0xf   :  { %8831 = vmatprep.mubr.msk.f32.mxu0 %vm151_vm0, %v7202_v12  ;;  %v118_v42 = vld [vmem:[%s13671_s0 + $0x1b9] sm:$0xff]  ;;  %v10068_v43 = vld [vmem:[%s13671_s0 + $0x22] sm:$0xff]  ;;  %v120_v46 = vld [vmem:[%s13671_s0 + $0x1d1] sm:$0xff] }
  0x10   :  { %v119_v44 = vld [vmem:[%s13671_s0 + $0x1c9] sm:$0xff]  ;;  %v10076_v45 = vld [vmem:[%s13671_s0 + $0x32] sm:$0xff]  ;;  %v10096_v48 = vld [vmem:[%s13671_s0 + $0x3a] sm:$0xff] }
  0x11   :  { %8440 = vmatmul.mubr.msk.f32.gmra.mrb[6].mxu1 %vm151_vm0, %v7201_v11  ;;  %v10088_v47 = vld [vmem:[%s13670_s1 + $0x38] sm:$0xff]  ;;  %v121_v49 = vld [vmem:[%s13671_s0 + $0x1e1] sm:$0xff]  ;;  %v10104_v50 = vld [vmem:[%s13671_s0 + $0x4a] sm:$0xff] }
  0x12   :  { %8832 = vmatmul.mubr.msk.f32.gmra.mrb[6].mxu0 %vm151_vm0, %v7203_v13  ;;  %8442 = vmatprep.mubr.msk.f32.mxu1 %vm151_vm0, %v7202_v12  ;;  %v122_v51 = vld [vmem:[%s13671_s0 + $0x1e9] sm:$0xff]  ;;  %v10119_v52 = vld [vmem:[%s13671_s0 + $0x52] sm:$0xff]  ;;  %v124_v55 = vld [vmem:[%s13671_s0 + $0x201] sm:$0xff] }
  0x13   :  { %8834 = vmatprep.mubr.msk.f32.mxu0 %vm151_vm0, %v7204_v15  ;;  %v123_v53 = vld [vmem:[%s13671_s0 + $0x1f9] sm:$0xff]  ;;  %v10127_v54 = vld [vmem:[%s13671_s0 + $0x62] sm:$0xff]  ;;  %v10141_v56 = vld [vmem:[%s13671_s0 + $0x6a] sm:$0xff] }
  0x14   :  { %v125_v57 = vld [vmem:[%s13671_s0 + $0x211] sm:$0xff]  ;;  %v10149_v58 = vld [vmem:[%s13671_s0 + $0x7a] sm:$0xff]  ;;  %v10163_v60 = vld [vmem:[%s13671_s0 + $0x82] sm:$0xff] }
  0x15   :  { %8443 = vmatmul.mubr.msk.f32.gmra.mrb[8].mxu1 %vm151_vm0, %v7203_v13  ;;  %v126_v59 = vld [vmem:[%s13671_s0 + $0x219] sm:$0xff]  ;;  %v127_v61 = vld [vmem:[%s13671_s0 + $0x229] sm:$0xff]  ;;  %v128_v63 = vld [vmem:[%s13671_s0 + $0x231] sm:$0xff] }
  0x16   :  { %8835 = vmatmul.mubr.msk.f32.gmra.mrb[8].mxu0 %vm151_vm0, %v7205_v16  ;;  %8445 = vmatprep.mubr.msk.f32.mxu1 %vm151_vm0, %v7204_v15  ;;  %v10171_v62 = vld [vmem:[%s13671_s0 + $0x92] sm:$0xff]  ;;  %v10185_v0 = vld [vmem:[%s13671_s0 + $0x9a] sm:$0xff]  ;;  %v10193_v3 = vld [vmem:[%s13671_s0 + $0xaa] sm:$0xff] }
  0x17   :  { %8837 = vmatprep.mubr.msk.f32.mxu0 %vm151_vm0, %v7206_v17  ;;  %v129_v2 = vld [vmem:[%s13671_s0 + $0x241] sm:$0xff]  ;;  %v130_v4 = vld [vmem:[%s13671_s0 + $0x249] sm:$0xff]  ;;  %v10207_v5 = vld [vmem:[%s13671_s0 + $0xb2] sm:$0xff] }
  0x18   :  { %v131_v6 = vld [vmem:[%s13671_s0 + $0x259] sm:$0xff]  ;;  %v10215_v7 = vld [vmem:[%s13671_s0 + $0xc2] sm:$0xff]  ;;  %v10229_v9 = vld [vmem:[%s13671_s0 + $0xca] sm:$0xff] }
  0x19   :  { %8446 = vmatmul.mubr.msk.f32.gmra.mrb[10].mxu1 %vm151_vm0, %v7205_v16  ;;  %v132_v8 = vld [vmem:[%s13671_s0 + $0x261] sm:$0xff]  ;;  %v133_v10 = vld [vmem:[%s13671_s0 + $0x271] sm:$0xff]  ;;  %v134_v12 = vld [vmem:[%s13671_s0 + $0x279] sm:$0xff] }
  0x1a   :  { %8838 = vmatmul.mubr.msk.f32.gmra.mrb[10].mxu0 %vm151_vm0, %v7207_v18  ;;  %8448 = vmatprep.mubr.msk.f32.mxu1 %vm151_vm0, %v7206_v17  ;;  %v10237_v11 = vld [vmem:[%s13671_s0 + $0xda] sm:$0xff]  ;;  %v10251_v13 = vld [vmem:[%s13671_s0 + $0xe2] sm:$0xff]  ;;  %v10259_v15 = vld [vmem:[%s13671_s0 + $0xf2] sm:$0xff] }
  0x1b   :  { %8840 = vmatprep.mubr.msk.f32.mxu0 %vm151_vm0, %v7208_v19  ;;  %v136_v16 = vld [vmem:[%s13671_s0 + $0x291] sm:$0xff]  ;;  %v10273_v17 = vld [vmem:[%s13671_s0 + $0xfa] sm:$0xff] }
  0x1d   :  { %8449 = vmatmul.mubr.msk.f32.gmra.mrb[12].mxu1 %vm151_vm0, %v7207_v18  ;;  %v137_v18 = vld [vmem:[%s13671_s0 + $0x2a1] sm:$0xff] }
  0x1e   :  { %8841 = vmatmul.mubr.msk.f32.gmra.mrb[12].mxu0 %vm151_vm0, %v7209_v20  ;;  %8451 = vmatprep.mubr.msk.f32.mxu1 %vm151_vm0, %v7208_v19  ;;  %v10281_v19 = vld [vmem:[%s13671_s0 + $0x10a] sm:$0xff] }
  0x1f   :  { %8843 = vmatprep.mubr.msk.f32.mxu0 %vm151_vm0, %v7210_v21 }
  0x21   :  { %8452 = vmatmul.mubr.msk.f32.gmra.mrb[14].mxu1 %vm151_vm0, %v7209_v20  ;;  %v138_v20 = vld [vmem:[%s13671_s0 + $0x2a9] sm:$0xff] }
  0x22   :  { %8844 = vmatmul.mubr.msk.f32.gmra.mrb[14].mxu0 %vm151_vm0, %v7211_v22  ;;  %8454 = vmatprep.mubr.msk.f32.mxu1 %vm151_vm0, %v7210_v21  ;;  %v10295_v21 = vld [vmem:[%s13671_s0 + $0x112] sm:$0xff] }
  0x23   :  { %8846 = vmatprep.mubr.msk.f32.mxu0 %vm151_vm0, %v7212_v23 }
  0x25   :  { %8455 = vmatmul.mubr.msk.f32.gmra.mrb[16].mxu1 %vm151_vm0, %v7211_v22  ;;  %v139_v22 = vld [vmem:[%s13671_s0 + $0x2b9] sm:$0xff] }
  0x26   :  { %8847 = vmatmul.mubr.msk.f32.gmra.mrb[16].mxu0 %vm151_vm0, %v7213_v24  ;;  %8457 = vmatprep.mubr.msk.f32.mxu1 %vm151_vm0, %v7212_v23  ;;  %v10303_v23 = vld [vmem:[%s13671_s0 + $0x122] sm:$0xff] }
  0x27   :  { %8849 = vmatprep.mubr.msk.f32.mxu0 %vm151_vm0, %v7214_v25 }
  0x29   :  { %8458 = vmatmul.mubr.msk.f32.gmra.mrb[18].mxu1 %vm151_vm0, %v7213_v24  ;;  %v140_v24 = vld [vmem:[%s13671_s0 + $0x2c1] sm:$0xff] }
  0x2a   :  { %8850 = vmatmul.mubr.msk.f32.gmra.mrb[18].mxu0 %vm151_vm0, %v7215_v27  ;;  %8460 = vmatprep.mubr.msk.f32.mxu1 %vm151_vm0, %v7214_v25  ;;  %v10317_v25 = vld [vmem:[%s13671_s0 + $0x12a] sm:$0xff] }
  0x2b   :  { %8852 = vmatprep.mubr.msk.f32.mxu0 %vm151_vm0, %v7216_v28 }
  0x2d   :  { %8461 = vmatmul.mubr.msk.f32.gmra.mrb[20].mxu1 %vm151_vm0, %v7215_v27  ;;  %v141_v27 = vld [vmem:[%s13671_s0 + $0x2d1] sm:$0xff] }
  0x2e   :  { %8853 = vmatmul.mubr.msk.f32.gmra.mrb[20].mxu0 %vm151_vm0, %v7217_v29  ;;  %8463 = vmatprep.mubr.msk.f32.mxu1 %vm151_vm0, %v7216_v28  ;;  %v10325_v28 = vld [vmem:[%s13671_s0 + $0x13a] sm:$0xff] }
  0x2f   :  { %8855 = vmatprep.mubr.msk.f32.mxu0 %vm151_vm0, %v7218_v30 }
  0x31   :  { %8464 = vmatmul.mubr.msk.f32.gmra.mrb[22].mxu1 %vm151_vm0, %v7217_v29  ;;  %v142_v29 = vld [vmem:[%s13671_s0 + $0x2d9] sm:$0xff] }
  0x32   :  { %8856 = vmatmul.mubr.msk.f32.gmra.mrb[22].mxu0 %vm151_vm0, %v7219_v31  ;;  %8466 = vmatprep.mubr.msk.f32.mxu1 %vm151_vm0, %v7218_v30  ;;  %v10339_v30 = vld [vmem:[%s13671_s0 + $0x142] sm:$0xff] }
  0x33   :  { %8858 = vmatprep.mubr.msk.f32.mxu0 %vm151_vm0, %v7220_v32 }
  0x35   :  { %8467 = vmatmul.mubr.msk.f32.gmra.mrb[24].mxu1 %vm151_vm0, %v7219_v31  ;;  %v143_v31 = vld [vmem:[%s13671_s0 + $0x2e9] sm:$0xff] }
  0x36   :  { %8859 = vmatmul.mubr.msk.f32.gmra.mrb[24].mxu0 %vm151_vm0, %v7221_v33  ;;  %8469 = vmatprep.mubr.msk.f32.mxu1 %vm151_vm0, %v7220_v32  ;;  %v10347_v32 = vld [vmem:[%s13671_s0 + $0x152] sm:$0xff] }
  0x37   :  { %8861 = vmatprep.mubr.msk.f32.mxu0 %vm151_vm0, %v7222_v34 }
  0x39   :  { %8470 = vmatmul.mubr.msk.f32.gmra.mrb[26].mxu1 %vm151_vm0, %v7221_v33  ;;  %v144_v33 = vld [vmem:[%s13671_s0 + $0x2f1] sm:$0xff] }
  0x3a   :  { %8862 = vmatmul.mubr.msk.f32.gmra.mrb[26].mxu0 %vm151_vm0, %v7223_v35  ;;  %8472 = vmatprep.mubr.msk.f32.mxu1 %vm151_vm0, %v7222_v34  ;;  %v10361_v34 = vld [vmem:[%s13671_s0 + $0x15a] sm:$0xff] }
  0x3b   :  { %8864 = vmatprep.mubr.msk.f32.mxu0 %vm151_vm0, %v7224_v36 }
  0x3d   :  { %8473 = vmatmul.mubr.msk.f32.gmra.mrb[28].mxu1 %vm151_vm0, %v7223_v35  ;;  %v145_v35 = vld [vmem:[%s13671_s0 + $0x301] sm:$0xff] }
  0x3e   :  { %8865 = vmatmul.mubr.msk.f32.gmra.mrb[28].mxu0 %vm151_vm0, %v7225_v37  ;;  %8475 = vmatprep.mubr.msk.f32.mxu1 %vm151_vm0, %v7224_v36  ;;  %v10369_v36 = vld [vmem:[%s13671_s0 + $0x16a] sm:$0xff] }
  0x3f   :  { %8867 = vmatprep.mubr.msk.f32.mxu0 %vm151_vm0, %v7226_v38  ;;  %v10383_v38 = vld [vmem:[%s13671_s0 + $0x172] sm:$0xff] }
  0x40   :  { %13753 = vst [vmem:[#allocation2_spill] sm:$0xff] %v10383_v38 }
  0x41   :  { %8476 = vmatmul.mubr.msk.f32.gmra.mrb[30].mxu1 %vm151_vm0, %v7225_v37  ;;  %v146_v37 = vld [vmem:[%s13671_s0 + $0x309] sm:$0xff] }
  0x42   :  { %8868 = vmatmul.mubr.msk.f32.gmra.mrb[30].mxu0 %vm151_vm0, %v7227_v39  ;;  %8478 = vmatprep.mubr.msk.f32.mxu1 %vm151_vm0, %v117_v40  ;;  %v147_v39 = vld [vmem:[%s13671_s0 + $0x319] sm:$0xff]  ;;  %v7355_v40 = vld [vmem:[%s13671_s0 + $0x182] sm:$0xff] }
  0x43   :  { %8920 = vmatprep.mubr.msk.f32.mxu0 %vm151_vm0, %v10055_v41 }
  0x45   :  { %8479 = vmatmul.mubr.msk.f32.gmra.mrb[32].mxu1 %vm151_vm0, %v118_v42  ;;  %v148_v42 = vld [vmem:[%s13671_s0 + $0x321] sm:$0xff] }
  0x46   :  { %8921 = vmatmul.mubr.msk.f32.vlgmr.msra.gmra.mrb[0].mxu0 %vm151_vm0, %v10068_v43  ;;  %8481 = vmatprep.mubr.msk.f32.mxu1 %vm151_vm0, %v119_v44  ;;  %v7356_v44 = vld [vmem:[%s13671_s0 + $0x18a] sm:$0xff] }
  0x47   :  { %9017 = vmatpush3.msra.mxu0 %v9920_v14  ;;  %8923 = vmatprep.mubr.msk.f32.mxu0 %vm151_vm0, %v10076_v45  ;;  %v135_v14 = vld [vmem:[%s13671_s0 + $0x289] sm:$0xff] }
  0x48   :  { %9114 = vmatprep.subr.mxu0 %v10088_v47 }
  0x49   :  { %8482 = vmatmul.mubr.msk.f32.gmra.mrb[34].mxu1 %vm151_vm0, %v120_v46  ;;  %v20_v46 = vld [vmem:[%s13671_s0] sm:$0xff] }
  0x4a   :  { %8924 = vmatmul.mubr.msk.f32.gmra.mrb[2].mxu0 %vm151_vm0, %v10096_v48  ;;  %8484 = vmatprep.mubr.msk.f32.mxu1 %vm151_vm0, %v121_v49  ;;  %v10408_v49 = vld [vmem:[%s13671_s0 + $0x1ca] sm:$0xff] }
  0x4b   :  { %8926 = vmatprep.mubr.msk.f32.mxu0 %vm151_vm0, %v10104_v50  ;;  %13754 = vst [vmem:[#allocation3_spill] sm:$0xff] %v10408_v49 }
  0x4d   :  { %8485 = vmatmul.mubr.msk.f32.gmra.mrb[36].mxu1 %vm151_vm0, %v122_v51  ;;  %v21_v51 = vld [vmem:[%s13671_s0 + $0x8] sm:$0xff] }
  0x4e   :  { %8927 = vmatmul.mubr.msk.f32.gmra.mrb[4].mxu0 %vm151_vm0, %v10119_v52  ;;  %8487 = vmatprep.mubr.msk.f32.mxu1 %vm151_vm0, %v123_v53  ;;  %v10421_v53 = vld [vmem:[%s13671_s0 + $0x1d2] sm:$0xff] }
  0x4f   :  { %8929 = vmatprep.mubr.msk.f32.mxu0 %vm151_vm0, %v10127_v54  ;;  %13755 = vst [vmem:[#allocation4_spill] sm:$0xff] %v10421_v53 }
  0x51   :  { %8488 = vmatmul.mubr.msk.f32.gmra.mrb[38].mxu1 %vm151_vm0, %v124_v55  ;;  %v22_v55 = vld [vmem:[%s13671_s0 + $0x18] sm:$0xff] }
  0x52   :  { %8930 = vmatmul.mubr.msk.f32.gmra.mrb[6].mxu0 %vm151_vm0, %v10141_v56  ;;  %8490 = vmatprep.mubr.msk.f32.mxu1 %vm151_vm0, %v125_v57  ;;  %v10429_v57 = vld [vmem:[%s13671_s0 + $0x1e2] sm:$0xff] }
  0x53   :  { %8932 = vmatprep.mubr.msk.f32.mxu0 %vm151_vm0, %v10149_v58  ;;  %13756 = vst [vmem:[#allocation5_spill] sm:$0xff] %v10429_v57 }
  0x55   :  { %8491 = vmatmul.mubr.msk.f32.gmra.mrb[40].mxu1 %vm151_vm0, %v126_v59  ;;  %v10435_v59 = vld [vmem:[%s13670_s1 + $0x18] sm:$0xff] }
  0x56   :  { %8933 = vmatmul.mubr.msk.f32.gmra.mrb[8].mxu0 %vm151_vm0, %v10163_v60  ;;  %8493 = vmatprep.mubr.msk.f32.mxu1 %vm151_vm0, %v127_v61  ;;  %v23_v61 = vld [vmem:[%s13671_s0 + $0x20] sm:$0xff] }
  0x57   :  { %8935 = vmatprep.mubr.msk.f32.mxu0 %vm151_vm0, %v10171_v62 }
  0x59   :  { %8494 = vmatmul.mubr.msk.f32.gmra.mrb[42].mxu1 %vm151_vm0, %v128_v63  ;;  %v10449_v63 = vld [vmem:[%s13671_s0 + $0x1ea] sm:$0xff] }
  0x5a   :  { %8936 = vmatmul.mubr.msk.f32.gmra.mrb[10].mxu0 %vm151_vm0, %v10185_v0  ;;  %8496 = vmatprep.mubr.msk.f32.mxu1 %vm151_vm0, %v129_v2  ;;  %13757 = vst [vmem:[#allocation6_spill] sm:$0xff] %v10449_v63  ;;  %v10454_v2 = vld [vmem:[%s13671_s0 + $0x30] sm:$0xff] }
  0x5b   :  { %8938 = vmatprep.mubr.msk.f32.mxu0 %vm151_vm0, %v10193_v3 }
  0x5d   :  { %8497 = vmatmul.mubr.msk.f32.gmra.mrb[44].mxu1 %vm151_vm0, %v130_v4  ;;  %v10470_v4 = vld [vmem:[%s13671_s0 + $0x38] sm:$0xff] }
  0x5e   :  { %8939 = vmatmul.mubr.msk.f32.gmra.mrb[12].mxu0 %vm151_vm0, %v10207_v5  ;;  %8499 = vmatprep.mubr.msk.f32.mxu1 %vm151_vm0, %v131_v6  ;;  %v10477_v6 = vld [vmem:[%s13671_s0 + $0x202] sm:$0xff] }
  0x5f   :  { %8941 = vmatprep.mubr.msk.f32.mxu0 %vm151_vm0, %v10215_v7  ;;  %13759 = vst [vmem:[#allocation8_spill] sm:$0xff] %v10477_v6 }
  0x61   :  { %8500 = vmatmul.mubr.msk.f32.gmra.mrb[46].mxu1 %vm151_vm0, %v132_v8  ;;  %v10482_v8 = vld [vmem:[%s13671_s0 + $0x48] sm:$0xff] }
  0x62   :  { %8942 = vmatmul.mubr.msk.f32.gmra.mrb[14].mxu0 %vm151_vm0, %v10229_v9  ;;  %8502 = vmatprep.mubr.msk.f32.mxu1 %vm151_vm0, %v133_v10  ;;  %v10487_v10 = vld [vmem:[%s13671_s0 + $0x212] sm:$0xff] }
  0x63   :  { %8944 = vmatprep.mubr.msk.f32.mxu0 %vm151_vm0, %v10237_v11  ;;  %13760 = vst [vmem:[#allocation9_spill] sm:$0xff] %v10487_v10 }
  0x65   :  { %8503 = vmatmul.mubr.msk.f32.gmra.mrb[48].mxu1 %vm151_vm0, %v134_v12  ;;  %v10498_v12 = vld [vmem:[%s13671_s0 + $0x50] sm:$0xff] }
  0x66   :  { %8945 = vmatmul.mubr.msk.f32.gmra.mrb[16].mxu0 %vm151_vm0, %v10251_v13  ;;  %8505 = vmatprep.mubr.msk.f32.mxu1 %vm151_vm0, %v135_v14  ;;  %v10505_v14 = vld [vmem:[%s13671_s0 + $0x21a] sm:$0xff] }
  0x67   :  { %8947 = vmatprep.mubr.msk.f32.mxu0 %vm151_vm0, %v10259_v15  ;;  %13761 = vst [vmem:[#allocation10_spill] sm:$0xff] %v10505_v14 }
  0x69   :  { %8506 = vmatmul.mubr.msk.f32.gmra.mrb[50].mxu1 %vm151_vm0, %v136_v16  ;;  %v10510_v16 = vld [vmem:[%s13671_s0 + $0x60] sm:$0xff] }
  0x6a   :  { %8948 = vmatmul.mubr.msk.f32.gmra.mrb[18].mxu0 %vm151_vm0, %v10273_v17  ;;  %8508 = vmatprep.mubr.msk.f32.mxu1 %vm151_vm0, %v137_v18  ;;  %v10515_v18 = vld [vmem:[%s13671_s0 + $0x22a] sm:$0xff] }
  0x6b   :  { %8950 = vmatprep.mubr.msk.f32.mxu0 %vm151_vm0, %v10281_v19  ;;  %13762 = vst [vmem:[#allocation11_spill] sm:$0xff] %v10515_v18 }
  0x6d   :  { %8509 = vmatmul.mubr.msk.f32.gmra.mrb[52].mxu1 %vm151_vm0, %v138_v20  ;;  %v10526_v20 = vld [vmem:[%s13671_s0 + $0x68] sm:$0xff] }
  0x6e   :  { %8951 = vmatmul.mubr.msk.f32.gmra.mrb[20].mxu0 %vm151_vm0, %v10295_v21  ;;  %8511 = vmatprep.mubr.msk.f32.mxu1 %vm151_vm0, %v139_v22  ;;  %v10533_v22 = vld [vmem:[%s13671_s0 + $0x232] sm:$0xff] }
  0x6f   :  { %8953 = vmatprep.mubr.msk.f32.mxu0 %vm151_vm0, %v10303_v23  ;;  %13763 = vst [vmem:[#allocation12_spill] sm:$0xff] %v10533_v22 }
  0x71   :  { %8512 = vmatmul.mubr.msk.f32.gmra.mrb[54].mxu1 %vm151_vm0, %v140_v24  ;;  %v10538_v24 = vld [vmem:[%s13671_s0 + $0x78] sm:$0xff] }
  0x72   :  { %8954 = vmatmul.mubr.msk.f32.gmra.mrb[22].mxu0 %vm151_vm0, %v10317_v25  ;;  %8514 = vmatprep.mubr.msk.f32.mxu1 %vm151_vm0, %v141_v27  ;;  %v10543_v27 = vld [vmem:[%s13671_s0 + $0x242] sm:$0xff] }
  0x73   :  { %8956 = vmatprep.mubr.msk.f32.mxu0 %vm151_vm0, %v10325_v28  ;;  %13764 = vst [vmem:[#allocation13_spill] sm:$0xff] %v10543_v27 }
  0x75   :  { %8515 = vmatmul.mubr.msk.f32.gmra.mrb[56].mxu1 %vm151_vm0, %v142_v29  ;;  %v10554_v29 = vld [vmem:[%s13671_s0 + $0x80] sm:$0xff] }
  0x76   :  { %8957 = vmatmul.mubr.msk.f32.gmra.mrb[24].mxu0 %vm151_vm0, %v10339_v30  ;;  %8517 = vmatprep.mubr.msk.f32.mxu1 %vm151_vm0, %v143_v31  ;;  %v10561_v31 = vld [vmem:[%s13671_s0 + $0x24a] sm:$0xff] }
  0x77   :  { %8959 = vmatprep.mubr.msk.f32.mxu0 %vm151_vm0, %v10347_v32  ;;  %13765 = vst [vmem:[#allocation14_spill] sm:$0xff] %v10561_v31 }
  0x79   :  { %8518 = vmatmul.mubr.msk.f32.gmra.mrb[58].mxu1 %vm151_vm0, %v144_v33  ;;  %v10566_v33 = vld [vmem:[%s13671_s0 + $0x90] sm:$0xff] }
  0x7a   :  { %8960 = vmatmul.mubr.msk.f32.gmra.mrb[26].mxu0 %vm151_vm0, %v10361_v34  ;;  %8520 = vmatprep.mubr.msk.f32.mxu1 %vm151_vm0, %v145_v35  ;;  %v10571_v35 = vld [vmem:[%s13671_s0 + $0x25a] sm:$0xff] }
  0x7b   :  { %8962 = vmatprep.mubr.msk.f32.mxu0 %vm151_vm0, %v10369_v36  ;;  %13766 = vst [vmem:[#allocation15_spill] sm:$0xff] %v10571_v35 }
  0x7d   :  { %8521 = vmatmul.mubr.msk.f32.gmra.mrb[60].mxu1 %vm151_vm0, %v146_v37  ;;  %v10582_v37 = vld [vmem:[%s13671_s0 + $0x98] sm:$0xff] }
  0x7e   :  { %8963 = vmatmul.mubr.msk.f32.gmra.mrb[28].mxu0 %vm151_vm0, %v10383_v38  ;;  %8523 = vmatprep.mubr.msk.f32.mxu1 %vm151_vm0, %v147_v39  ;;  %v10589_v39 = vld [vmem:[%s13671_s0 + $0x262] sm:$0xff]  ;;  %v52_v38 = vld [vmem:[%s13671_s0 + $0x1b0] sm:$0xff] }
  0x7f   :  { %8965 = vmatprep.mubr.msk.f32.mxu0 %vm151_vm0, %v7355_v40  ;;  %13767 = vst [vmem:[#allocation16_spill] sm:$0xff] %v10589_v39  ;;  %v10594_v40 = vld [vmem:[%s13671_s0 + $0xa8] sm:$0xff] }
  0x81   :  { %8524 = vmatmul.mubr.msk.f32.gmra.mrb[62].mxu1 %vm151_vm0, %v148_v42  ;;  %v10599_v42 = vld [vmem:[%s13671_s0 + $0x272] sm:$0xff] }
  0x82   :  { %8966 = vmatmul.mubr.msk.f32.gmra.mrb[30].mxu0 %vm151_vm0, %v7356_v44  ;;  %8528 = vmatprep.mubr.msk.f32.mxu1 %vm151_vm0, %v20_v46  ;;  %13768 = vst [vmem:[#allocation17_spill] sm:$0xff] %v10599_v42  ;;  %v10610_v44 = vld [vmem:[%s13671_s0 + $0xb0] sm:$0xff]  ;;  %v10617_v46 = vld [vmem:[%s13671_s0 + $0x27a] sm:$0xff] }
  0x83   :  { %8968 = vmatprep.mubr.msk.f32.mxu0 %vm151_vm0, %v10408_v49  ;;  %13769 = vst [vmem:[#allocation18_spill] sm:$0xff] %v10617_v46  ;;  %v7388_v49 = vld [vmem:[%s13671_s0 + $0x33a] sm:$0xff] }
  0x85   :  { %8529 = vmatmul.mubr.msk.f32.vlgmr.msra.gmra.mrb[0].mxu1 %vm151_vm0, %v21_v51  ;;  %v10622_v51 = vld [vmem:[%s13671_s0 + $0xc0] sm:$0xff] }
  0x86   :  { %8969 = vmatmul.mubr.msk.f32.gmra.mrb[32].mxu0 %vm151_vm0, %v10421_v53  ;;  %8625 = vmatpush3.msra.mxu1 %v9979_v26  ;;  %v10459_v26 = vld [vmem:[%s13671_s0 + $0x1fa] sm:$0xff]  ;;  %v7387_v53 = vld [vmem:[%s13671_s0 + $0x332] sm:$0xff] }
  0x87   :  { %8531 = vmatprep.mubr.msk.f32.mxu1 %vm151_vm0, %v22_v55  ;;  %8971 = vmatprep.mubr.msk.f32.mxu0 %vm151_vm0, %v10429_v57  ;;  %13758 = vst [vmem:[#allocation7_spill] sm:$0xff] %v10459_v26  ;;  %v10627_v55 = vld [vmem:[%s13671_s0 + $0x28a] sm:$0xff]  ;;  %v10813_v57 = vld [vmem:[%s13671_s0 + $0x322] sm:$0xff] }
  0x88   :  { %8722 = vmatprep.subr.mxu1 %v10435_v59  ;;  %13770 = vst [vmem:[#allocation19_spill] sm:$0xff] %v10627_v55  ;;  %13783 = vst [vmem:[#allocation32_spill] sm:$0xff] %v10813_v57 }
  0x89   :  { %8532 = vmatmul.mubr.msk.f32.gmra.mrb[2].mxu1 %vm151_vm0, %v23_v61  ;;  %v10638_v61 = vld [vmem:[%s13671_s0 + $0xc8] sm:$0xff] }
  0x8a   :  { %8972 = vmatmul.mubr.msk.f32.gmra.mrb[34].mxu0 %vm151_vm0, %v10449_v63  ;;  %8534 = vmatprep.mubr.msk.f32.mxu1 %vm151_vm0, %v10454_v2  ;;  %v10795_v63 = vld [vmem:[%s13671_s0 + $0x31a] sm:$0xff] }
  0x8b   :  { %8974 = vmatprep.mubr.msk.f32.mxu0 %vm151_vm0, %v10459_v26  ;;  %v10785_v26 = vld [vmem:[%s13671_s0 + $0x30a] sm:$0xff]  ;;  %13782 = vst [vmem:[#allocation31_spill] sm:$0xff] %v10795_v63 }
  0x8c   :  { %13781 = vst [vmem:[#allocation30_spill] sm:$0xff] %v10785_v26 }
  0x8d   :  { %8535 = vmatmul.mubr.msk.f32.gmra.mrb[4].mxu1 %vm151_vm0, %v10470_v4 }
  0x8e   :  { %8975 = vmatmul.mubr.msk.f32.gmra.mrb[36].mxu0 %vm151_vm0, %v10477_v6  ;;  %8537 = vmatprep.mubr.msk.f32.mxu1 %vm151_vm0, %v10482_v8  ;;  %v10767_v6 = vld [vmem:[%s13671_s0 + $0x302] sm:$0xff] }
  0x8f   :  { %8977 = vmatprep.mubr.msk.f32.mxu0 %vm151_vm0, %v10487_v10  ;;  %v10757_v10 = vld [vmem:[%s13671_s0 + $0x2f2] sm:$0xff]  ;;  %13780 = vst [vmem:[#allocation29_spill] sm:$0xff] %v10767_v6 }
  0x90   :  { %13779 = vst [vmem:[#allocation28_spill] sm:$0xff] %v10757_v10 }
  0x91   :  { %8538 = vmatmul.mubr.msk.f32.gmra.mrb[6].mxu1 %vm151_vm0, %v10498_v12 }
  0x92   :  { %8978 = vmatmul.mubr.msk.f32.gmra.mrb[38].mxu0 %vm151_vm0, %v10505_v14  ;;  %8540 = vmatprep.mubr.msk.f32.mxu1 %vm151_vm0, %v10510_v16  ;;  %v10739_v14 = vld [vmem:[%s13671_s0 + $0x2ea] sm:$0xff] }
  0x93   :  { %8980 = vmatprep.mubr.msk.f32.mxu0 %vm151_vm0, %v10515_v18  ;;  %v10729_v18 = vld [vmem:[%s13671_s0 + $0x2da] sm:$0xff]  ;;  %13778 = vst [vmem:[#allocation27_spill] sm:$0xff] %v10739_v14 }
  0x94   :  { %13777 = vst [vmem:[#allocation26_spill] sm:$0xff] %v10729_v18 }
  0x95   :  { %8541 = vmatmul.mubr.msk.f32.gmra.mrb[8].mxu1 %vm151_vm0, %v10526_v20 }
  0x96   :  { %8981 = vmatmul.mubr.msk.f32.gmra.mrb[40].mxu0 %vm151_vm0, %v10533_v22  ;;  %8543 = vmatprep.mubr.msk.f32.mxu1 %vm151_vm0, %v10538_v24  ;;  %v10711_v22 = vld [vmem:[%s13671_s0 + $0x2d2] sm:$0xff] }
  0x97   :  { %8983 = vmatprep.mubr.msk.f32.mxu0 %vm151_vm0, %v10543_v27  ;;  %v10701_v27 = vld [vmem:[%s13671_s0 + $0x2c2] sm:$0xff]  ;;  %13776 = vst [vmem:[#allocation25_spill] sm:$0xff] %v10711_v22 }
  0x98   :  { %13775 = vst [vmem:[#allocation24_spill] sm:$0xff] %v10701_v27 }
  0x99   :  { %8544 = vmatmul.mubr.msk.f32.gmra.mrb[10].mxu1 %vm151_vm0, %v10554_v29 }
  0x9a   :  { %8984 = vmatmul.mubr.msk.f32.gmra.mrb[42].mxu0 %vm151_vm0, %v10561_v31  ;;  %8546 = vmatprep.mubr.msk.f32.mxu1 %vm151_vm0, %v10566_v33  ;;  %v10683_v31 = vld [vmem:[%s13671_s0 + $0x2ba] sm:$0xff] }
  0x9b   :  { %8986 = vmatprep.mubr.msk.f32.mxu0 %vm151_vm0, %v10571_v35  ;;  %v10673_v35 = vld [vmem:[%s13671_s0 + $0x2aa] sm:$0xff]  ;;  %13774 = vst [vmem:[#allocation23_spill] sm:$0xff] %v10683_v31 }
  0x9c   :  { %13773 = vst [vmem:[#allocation22_spill] sm:$0xff] %v10673_v35 }
  0x9d   :  { %8547 = vmatmul.mubr.msk.f32.gmra.mrb[12].mxu1 %vm151_vm0, %v10582_v37 }
  0x9e   :  { %8987 = vmatmul.mubr.msk.f32.gmra.mrb[44].mxu0 %vm151_vm0, %v10589_v39  ;;  %8549 = vmatprep.mubr.msk.f32.mxu1 %vm151_vm0, %v10594_v40  ;;  %v10655_v39 = vld [vmem:[%s13671_s0 + $0x2a2] sm:$0xff] }
  0x9f   :  { %8989 = vmatprep.mubr.msk.f32.mxu0 %vm151_vm0, %v10599_v42  ;;  %v10645_v42 = vld [vmem:[%s13671_s0 + $0x292] sm:$0xff]  ;;  %13772 = vst [vmem:[#allocation21_spill] sm:$0xff] %v10655_v39 }
  0xa0   :  { %13771 = vst [vmem:[#allocation20_spill] sm:$0xff] %v10645_v42 }
  0xa1   :  { %8550 = vmatmul.mubr.msk.f32.gmra.mrb[14].mxu1 %vm151_vm0, %v10610_v44 }
  0xa2   :  { %8990 = vmatmul.mubr.msk.f32.gmra.mrb[46].mxu0 %vm151_vm0, %v10617_v46  ;;  %8552 = vmatprep.mubr.msk.f32.mxu1 %vm151_vm0, %v10622_v51  ;;  %v10650_v46 = vld [vmem:[%s13671_s0 + $0xd8] sm:$0xff] }
  0xa3   :  { %8992 = vmatprep.mubr.msk.f32.mxu0 %vm151_vm0, %v10627_v55  ;;  %v10666_v55 = vld [vmem:[%s13671_s0 + $0xe0] sm:$0xff] }
  0xa5   :  { %8553 = vmatmul.mubr.msk.f32.gmra.mrb[16].mxu1 %vm151_vm0, %v10638_v61 }
  0xa6   :  { %8993 = vmatmul.mubr.msk.f32.gmra.mrb[48].mxu0 %vm151_vm0, %v10645_v42  ;;  %8555 = vmatprep.mubr.msk.f32.mxu1 %vm151_vm0, %v10650_v46  ;;  %v10678_v42 = vld [vmem:[%s13671_s0 + $0xf0] sm:$0xff] }
  0xa7   :  { %8995 = vmatprep.mubr.msk.f32.mxu0 %vm151_vm0, %v10655_v39  ;;  %v10694_v39 = vld [vmem:[%s13671_s0 + $0xf8] sm:$0xff] }
  0xa9   :  { %8556 = vmatmul.mubr.msk.f32.gmra.mrb[18].mxu1 %vm151_vm0, %v10666_v55 }
  0xaa   :  { %8996 = vmatmul.mubr.msk.f32.gmra.mrb[50].mxu0 %vm151_vm0, %v10673_v35  ;;  %8558 = vmatprep.mubr.msk.f32.mxu1 %vm151_vm0, %v10678_v42  ;;  %v10706_v35 = vld [vmem:[%s13671_s0 + $0x108] sm:$0xff] }
  0xab   :  { %8998 = vmatprep.mubr.msk.f32.mxu0 %vm151_vm0, %v10683_v31  ;;  %v10722_v31 = vld [vmem:[%s13671_s0 + $0x110] sm:$0xff] }
  0xad   :  { %8559 = vmatmul.mubr.msk.f32.gmra.mrb[20].mxu1 %vm151_vm0, %v10694_v39 }
  0xae   :  { %8999 = vmatmul.mubr.msk.f32.gmra.mrb[52].mxu0 %vm151_vm0, %v10701_v27  ;;  %8561 = vmatprep.mubr.msk.f32.mxu1 %vm151_vm0, %v10706_v35  ;;  %v10734_v27 = vld [vmem:[%s13671_s0 + $0x120] sm:$0xff] }
  0xaf   :  { %9001 = vmatprep.mubr.msk.f32.mxu0 %vm151_vm0, %v10711_v22  ;;  %v10750_v22 = vld [vmem:[%s13671_s0 + $0x128] sm:$0xff] }
  0xb1   :  { %8562 = vmatmul.mubr.msk.f32.gmra.mrb[22].mxu1 %vm151_vm0, %v10722_v31 }
  0xb2   :  { %9002 = vmatmul.mubr.msk.f32.gmra.mrb[54].mxu0 %vm151_vm0, %v10729_v18  ;;  %8564 = vmatprep.mubr.msk.f32.mxu1 %vm151_vm0, %v10734_v27  ;;  %v10762_v18 = vld [vmem:[%s13671_s0 + $0x138] sm:$0xff] }
  0xb3   :  { %9004 = vmatprep.mubr.msk.f32.mxu0 %vm151_vm0, %v10739_v14  ;;  %v10778_v14 = vld [vmem:[%s13671_s0 + $0x140] sm:$0xff] }
  0xb5   :  { %8565 = vmatmul.mubr.msk.f32.gmra.mrb[24].mxu1 %vm151_vm0, %v10750_v22 }
  0xb6   :  { %9005 = vmatmul.mubr.msk.f32.gmra.mrb[56].mxu0 %vm151_vm0, %v10757_v10  ;;  %8567 = vmatprep.mubr.msk.f32.mxu1 %vm151_vm0, %v10762_v18  ;;  %v10790_v10 = vld [vmem:[%s13671_s0 + $0x150] sm:$0xff] }
  0xb7   :  { %9007 = vmatprep.mubr.msk.f32.mxu0 %vm151_vm0, %v10767_v6  ;;  %v10806_v6 = vld [vmem:[%s13671_s0 + $0x158] sm:$0xff] }
  0xb9   :  { %8568 = vmatmul.mubr.msk.f32.gmra.mrb[26].mxu1 %vm151_vm0, %v10778_v14 }
  0xba   :  { %9008 = vmatmul.mubr.msk.f32.gmra.mrb[58].mxu0 %vm151_vm0, %v10785_v26  ;;  %8570 = vmatprep.mubr.msk.f32.mxu1 %vm151_vm0, %v10790_v10  ;;  %v10818_v26 = vld [vmem:[%s13671_s0 + $0x168] sm:$0xff] }
  0xbb   :  { %9010 = vmatprep.mubr.msk.f32.mxu0 %vm151_vm0, %v10795_v63  ;;  %v10832_v63 = vld [vmem:[%s13671_s0 + $0x170] sm:$0xff] }
  0xbd   :  { %8571 = vmatmul.mubr.msk.f32.gmra.mrb[28].mxu1 %vm151_vm0, %v10806_v6 }
  0xbe   :  { %9011 = vmatmul.mubr.msk.f32.gmra.mrb[60].mxu0 %vm151_vm0, %v10813_v57  ;;  %8573 = vmatprep.mubr.msk.f32.mxu1 %vm151_vm0, %v10818_v26  ;;  %v53_v57 = vld [vmem:[%s13671_s0 + $0x1b8] sm:$0xff] }
  0xbf   :  { %9013 = vmatprep.mubr.msk.f32.mxu0 %vm151_vm0, %v7387_v53  ;;  %v10853_v53 = vld [vmem:[%s13671_s0 + $0x1c8] sm:$0xff] }
  0xc0   :  { %13784 = vst [vmem:[#allocation33_spill] sm:$0xff] %v10853_v53 }
  0xc1   :  { %8574 = vmatmul.mubr.msk.f32.gmra.mrb[30].mxu1 %vm151_vm0, %v10832_v63 }
  0xc2   :  { %9014 = vmatmul.mubr.msk.f32.gmra.mrb[62].mxu0 %vm151_vm0, %v7388_v49  ;;  %8576 = vmatprep.mubr.msk.f32.mxu1 %vm151_vm0, %v52_v38  ;;  %v10863_v38 = vld [vmem:[%s13671_s0 + $0x1d0] sm:$0xff]  ;;  %v10868_v49 = vld [vmem:[%s13670_s1 + $0x40] sm:$0xff] }
  0xc3   :  { %9018 = vmatprep.mubr.msk.f32.mxu0 %vm151_vm0, %v10454_v2  ;;  %13785 = vst [vmem:[#allocation34_spill] sm:$0xff] %v10863_v38  ;;  %v10895_v2 = vld [vmem:[%s13671_s0 + $0x1f8] sm:$0xff] }
  0xc5   :  { %8577 = vmatmul.mubr.msk.f32.gmra.mrb[32].mxu1 %vm151_vm0, %v53_v57  ;;  %v10876_v57 = vld [vmem:[%s13671_s0 + $0x1e0] sm:$0xff] }
  0xc6   :  { %9019 = vmatmul.mubr.msk.f32.vlgmr.msra.gmra.mrb[0].mxu0 %vm151_vm0, %v10470_v4  ;;  %8579 = vmatprep.mubr.msk.f32.mxu1 %vm151_vm0, %v10853_v53  ;;  %v10906_v4 = vld [vmem:[%s13671_s0 + $0x200] sm:$0xff] }
  0xc7   :  { %9115 = vmatpush3.msra.mxu0 %v10088_v47  ;;  %9021 = vmatprep.mubr.msk.f32.mxu0 %vm151_vm0, %v10482_v8  ;;  %v10888_v47 = vld [vmem:[%s13671_s0 + $0x1e8] sm:$0xff]  ;;  %v10913_v8 = vld [vmem:[%s13671_s0 + $0x210] sm:$0xff]  ;;  %v7485_v53 = vld [vmem:[%s13671_s0 + $0x1a0] sm:$0xff] }
  0xc8   :  { %9212 = vmatprep.subr.mxu0 %v10868_v49 }
  0xc9   :  { %8580 = vmatmul.mubr.msk.f32.gmra.mrb[34].mxu1 %vm151_vm0, %v10863_v38  ;;  %v11135_v38 = vld [vmem:[%s13671_s0 + $0x320] sm:$0xff] }
  0xca   :  { %9022 = vmatmul.mubr.msk.f32.gmra.mrb[2].mxu0 %vm151_vm0, %v10498_v12  ;;  %8582 = vmatprep.mubr.msk.f32.mxu1 %vm151_vm0, %v10876_v57  ;;  %v10924_v12 = vld [vmem:[%s13671_s0 + $0x218] sm:$0xff] }
  0xcb   :  { %9024 = vmatprep.mubr.msk.f32.mxu0 %vm151_vm0, %v10510_v16  ;;  %v10931_v16 = vld [vmem:[%s13671_s0 + $0x228] sm:$0xff] }
  0xcd   :  { %8583 = vmatmul.mubr.msk.f32.gmra.mrb[36].mxu1 %vm151_vm0, %v10888_v47 }
  0xce   :  { %9025 = vmatmul.mubr.msk.f32.gmra.mrb[4].mxu0 %vm151_vm0, %v10526_v20  ;;  %8585 = vmatprep.mubr.msk.f32.mxu1 %vm151_vm0, %v10895_v2  ;;  %v10942_v20 = vld [vmem:[%s13671_s0 + $0x230] sm:$0xff] }
  0xcf   :  { %9027 = vmatprep.mubr.msk.f32.mxu0 %vm151_vm0, %v10538_v24  ;;  %v10949_v24 = vld [vmem:[%s13671_s0 + $0x240] sm:$0xff] }
  0xd1   :  { %8586 = vmatmul.mubr.msk.f32.gmra.mrb[38].mxu1 %vm151_vm0, %v10906_v4 }
  0xd2   :  { %9028 = vmatmul.mubr.msk.f32.gmra.mrb[6].mxu0 %vm151_vm0, %v10554_v29  ;;  %8588 = vmatprep.mubr.msk.f32.mxu1 %vm151_vm0, %v10913_v8  ;;  %v10960_v29 = vld [vmem:[%s13671_s0 + $0x248] sm:$0xff] }
  0xd3   :  { %9030 = vmatprep.mubr.msk.f32.mxu0 %vm151_vm0, %v10566_v33  ;;  %v10967_v33 = vld [vmem:[%s13671_s0 + $0x258] sm:$0xff] }
  0xd5   :  { %8589 = vmatmul.mubr.msk.f32.gmra.mrb[40].mxu1 %vm151_vm0, %v10924_v12 }
  0xd6   :  { %9031 = vmatmul.mubr.msk.f32.gmra.mrb[8].mxu0 %vm151_vm0, %v10582_v37  ;;  %8591 = vmatprep.mubr.msk.f32.mxu1 %vm151_vm0, %v10931_v16  ;;  %v10978_v37 = vld [vmem:[%s13671_s0 + $0x260] sm:$0xff] }
  0xd7   :  { %9033 = vmatprep.mubr.msk.f32.mxu0 %vm151_vm0, %v10594_v40  ;;  %v10985_v40 = vld [vmem:[%s13671_s0 + $0x270] sm:$0xff] }
  0xd9   :  { %8592 = vmatmul.mubr.msk.f32.gmra.mrb[42].mxu1 %vm151_vm0, %v10942_v20 }
  0xda   :  { %9034 = vmatmul.mubr.msk.f32.gmra.mrb[10].mxu0 %vm151_vm0, %v10610_v44  ;;  %8594 = vmatprep.mubr.msk.f32.mxu1 %vm151_vm0, %v10949_v24  ;;  %v10996_v44 = vld [vmem:[%s13671_s0 + $0x278] sm:$0xff] }
  0xdb   :  { %9036 = vmatprep.mubr.msk.f32.mxu0 %vm151_vm0, %v10622_v51  ;;  %v11014_v51 = vld [vmem:[%s13671_s0 + $0x290] sm:$0xff] }
  0xdd   :  { %8595 = vmatmul.mubr.msk.f32.gmra.mrb[44].mxu1 %vm151_vm0, %v10960_v29 }
  0xde   :  { %9037 = vmatmul.mubr.msk.f32.gmra.mrb[12].mxu0 %vm151_vm0, %v10638_v61  ;;  %8597 = vmatprep.mubr.msk.f32.mxu1 %vm151_vm0, %v10967_v33  ;;  %v7484_v61 = vld [vmem:[%s13671_s0 + $0x198] sm:$0xff] }
  0xdf   :  { %9039 = vmatprep.mubr.msk.f32.mxu0 %vm151_vm0, %v10650_v46  ;;  %v11003_v46 = vld [vmem:[%s13671_s0 + $0x288] sm:$0xff] }
  0xe1   :  { %8598 = vmatmul.mubr.msk.f32.gmra.mrb[46].mxu1 %vm151_vm0, %v10978_v37 }
  0xe2   :  { %9040 = vmatmul.mubr.msk.f32.gmra.mrb[14].mxu0 %vm151_vm0, %v10666_v55  ;;  %8600 = vmatprep.mubr.msk.f32.mxu1 %vm151_vm0, %v10985_v40  ;;  %v11116_v55 = vld [vmem:[%s13671_s0 + $0x188] sm:$0xff] }
  0xe3   :  { %9042 = vmatprep.mubr.msk.f32.mxu0 %vm151_vm0, %v10678_v42  ;;  %v11021_v42 = vld [vmem:[%s13671_s0 + $0x2a0] sm:$0xff]  ;;  %13787 = vst [vmem:[#allocation36_spill] sm:$0xff] %v11116_v55 }
  0xe5   :  { %8601 = vmatmul.mubr.msk.f32.gmra.mrb[48].mxu1 %vm151_vm0, %v10996_v44 }
  0xe6   :  { %9043 = vmatmul.mubr.msk.f32.gmra.mrb[16].mxu0 %vm151_vm0, %v10694_v39  ;;  %8603 = vmatprep.mubr.msk.f32.mxu1 %vm151_vm0, %v11003_v46  ;;  %v11032_v39 = vld [vmem:[%s13671_s0 + $0x2a8] sm:$0xff] }
  0xe7   :  { %9045 = vmatprep.mubr.msk.f32.mxu0 %vm151_vm0, %v10706_v35  ;;  %v11039_v35 = vld [vmem:[%s13671_s0 + $0x2b8] sm:$0xff] }
  0xe9   :  { %8604 = vmatmul.mubr.msk.f32.gmra.mrb[50].mxu1 %vm151_vm0, %v11014_v51 }
  0xea   :  { %9046 = vmatmul.mubr.msk.f32.gmra.mrb[18].mxu0 %vm151_vm0, %v10722_v31  ;;  %8606 = vmatprep.mubr.msk.f32.mxu1 %vm151_vm0, %v11021_v42  ;;  %v11050_v31 = vld [vmem:[%s13671_s0 + $0x2c0] sm:$0xff] }
  0xeb   :  { %9048 = vmatprep.mubr.msk.f32.mxu0 %vm151_vm0, %v10734_v27  ;;  %v11057_v27 = vld [vmem:[%s13671_s0 + $0x2d0] sm:$0xff] }
  0xed   :  { %8607 = vmatmul.mubr.msk.f32.gmra.mrb[52].mxu1 %vm151_vm0, %v11032_v39 }
  0xee   :  { %9049 = vmatmul.mubr.msk.f32.gmra.mrb[20].mxu0 %vm151_vm0, %v10750_v22  ;;  %8609 = vmatprep.mubr.msk.f32.mxu1 %vm151_vm0, %v11039_v35  ;;  %v11068_v22 = vld [vmem:[%s13671_s0 + $0x2d8] sm:$0xff] }
  0xef   :  { %9051 = vmatprep.mubr.msk.f32.mxu0 %vm151_vm0, %v10762_v18  ;;  %v11075_v18 = vld [vmem:[%s13671_s0 + $0x2e8] sm:$0xff] }
  0xf1   :  { %8610 = vmatmul.mubr.msk.f32.gmra.mrb[54].mxu1 %vm151_vm0, %v11050_v31 }
  0xf2   :  { %9052 = vmatmul.mubr.msk.f32.gmra.mrb[22].mxu0 %vm151_vm0, %v10778_v14  ;;  %8612 = vmatprep.mubr.msk.f32.mxu1 %vm151_vm0, %v11057_v27  ;;  %v11086_v14 = vld [vmem:[%s13671_s0 + $0x2f0] sm:$0xff] }
  0xf3   :  { %9054 = vmatprep.mubr.msk.f32.mxu0 %vm151_vm0, %v10790_v10  ;;  %v11093_v10 = vld [vmem:[%s13671_s0 + $0x300] sm:$0xff] }
  0xf5   :  { %8613 = vmatmul.mubr.msk.f32.gmra.mrb[56].mxu1 %vm151_vm0, %v11068_v22 }
  0xf6   :  { %9055 = vmatmul.mubr.msk.f32.gmra.mrb[24].mxu0 %vm151_vm0, %v10806_v6  ;;  %8615 = vmatprep.mubr.msk.f32.mxu1 %vm151_vm0, %v11075_v18  ;;  %v11098_v6 = vld [vmem:[%s13671_s0 + $0x180] sm:$0xff] }
  0xf7   :  { %9057 = vmatprep.mubr.msk.f32.mxu0 %vm151_vm0, %v10818_v26  ;;  %13786 = vst [vmem:[#allocation35_spill] sm:$0xff] %v11098_v6  ;;  %v11109_v26 = vld [vmem:[%s13671_s0 + $0x308] sm:$0xff] }
  0xf9   :  { %8616 = vmatmul.mubr.msk.f32.gmra.mrb[58].mxu1 %vm151_vm0, %v11086_v14 }
  0xfa   :  { %9058 = vmatmul.mubr.msk.f32.gmra.mrb[26].mxu0 %vm151_vm0, %v10832_v63  ;;  %8618 = vmatprep.mubr.msk.f32.mxu1 %vm151_vm0, %v11093_v10  ;;  %v11121_v63 = vld [vmem:[%s13671_s0 + $0x318] sm:$0xff] }
  0xfb   :  { %9060 = vmatprep.mubr.msk.f32.mxu0 %vm151_vm0, %v11098_v6  ;;  %v1306_v6 = vld [vmem:[%s13671_s0 + $0x2] sm:$0xff] }
  0xfd   :  { %8619 = vmatmul.mubr.msk.f32.gmra.mrb[60].mxu1 %vm151_vm0, %v11109_v26 }
  0xfe   :  { %9061 = vmatmul.mubr.msk.f32.gmra.mrb[28].mxu0 %vm151_vm0, %v11116_v55  ;;  %8621 = vmatprep.mubr.msk.f32.mxu1 %vm151_vm0, %v11121_v63  ;;  %v1307_v55 = vld [vmem:[%s13671_s0 + $0xa] sm:$0xff] }
  0xff   :  { %9063 = vmatprep.mubr.msk.f32.mxu0 %vm151_vm0, %v7484_v61  ;;  %v7598_v61 = vld [vmem:[%s13671_s0 + $0xe1] sm:$0xff] }
 0x101   :  { %8622 = vmatmul.mubr.msk.f32.gmra.mrb[62].mxu1 %vm151_vm0, %v11135_v38 }
 0x102   :  { %9064 = vmatmul.mubr.msk.f32.gmra.mrb[30].mxu0 %vm151_vm0, %v7485_v53  ;;  %8626 = vmatprep.mubr.msk.f32.mxu1 %vm151_vm0, %v1306_v6  ;;  %v7596_v53 = vld [vmem:[%s13671_s0 + $0xc9] sm:$0xff]  ;;  %v13800_v6 = vld [vmem:[#allocation14_spill] sm:$0xff] }
 0x103   :  { %9066 = vmatprep.mubr.msk.f32.mxu0 %vm151_vm0, %v10876_v57 }
 0x105   :  { %8627 = vmatmul.mubr.msk.f32.vlgmr.msra.gmra.mrb[0].mxu1 %vm151_vm0, %v1307_v55  ;;  %v13801_v55 = vld [vmem:[#allocation15_spill] sm:$0xff] }
 0x106   :  { %9067 = vmatmul.mubr.msk.f32.gmra.mrb[32].mxu0 %vm151_vm0, %v10888_v47  ;;  %8723 = vmatpush3.msra.mxu1 %v10435_v59  ;;  %v13799_v59 = vld [vmem:[#allocation13_spill] sm:$0xff] }
 0x107   :  { %8629 = vmatprep.mubr.msk.f32.mxu1 %vm151_vm0, %v10055_v41  ;;  %9069 = vmatprep.mubr.msk.f32.mxu0 %vm151_vm0, %v10895_v2  ;;  %v11274_v41 = vld [vmem:[%s13671_s0 + $0x338] sm:$0xff] }
 0x108   :  { %9310 = vmatprep.subr.mxu1 %v9863_v1  ;;  %v11261_v1 = vld [vmem:[%s13671_s0 + $0x330] sm:$0xff] }
 0x109   :  { %8630 = vmatmul.mubr.msk.f32.gmra.mrb[2].mxu1 %vm151_vm0, %v10068_v43  ;;  %v7516_v43 = vld [vmem:[%s13671_s0 + $0x348] sm:$0xff] }
 0x10a   :  { %9070 = vmatmul.mubr.msk.f32.gmra.mrb[34].mxu0 %vm151_vm0, %v10906_v4  ;;  %8632 = vmatprep.mubr.msk.f32.mxu1 %vm151_vm0, %v10076_v45  ;;  %v7517_v45 = vld [vmem:[%s13671_s0 + $0x350] sm:$0xff] }
 0x10b   :  { %9072 = vmatprep.mubr.msk.f32.mxu0 %vm151_vm0, %v10913_v8 }
 0x10d   :  { %8633 = vmatmul.mubr.msk.f32.gmra.mrb[4].mxu1 %vm151_vm0, %v10096_v48  ;;  %v1338_v48 = vld [vmem:[%s13671_s0 + $0x1b2] sm:$0xff] }
 0x10e   :  { %9073 = vmatmul.mubr.msk.f32.gmra.mrb[36].mxu0 %vm151_vm0, %v10924_v12  ;;  %8635 = vmatprep.mubr.msk.f32.mxu1 %vm151_vm0, %v10104_v50  ;;  %v7583_v50 = vld [vmem:[%s13671_s0 + $0x31] sm:$0xff] }
 0x10f   :  { %9075 = vmatprep.mubr.msk.f32.mxu0 %vm151_vm0, %v10931_v16 }
 0x111   :  { %8636 = vmatmul.mubr.msk.f32.gmra.mrb[6].mxu1 %vm151_vm0, %v10119_v52  ;;  %v13788_v52 = vld [vmem:[#allocation2_spill] sm:$0xff] }
 0x112   :  { %9076 = vmatmul.mubr.msk.f32.gmra.mrb[38].mxu0 %vm151_vm0, %v10942_v20  ;;  %8638 = vmatprep.mubr.msk.f32.mxu1 %vm151_vm0, %v10127_v54  ;;  %v1339_v54 = vld [vmem:[%s13671_s0 + $0x1ba] sm:$0xff] }
 0x113   :  { %9078 = vmatprep.mubr.msk.f32.mxu0 %vm151_vm0, %v10949_v24 }
 0x115   :  { %8639 = vmatmul.mubr.msk.f32.gmra.mrb[8].mxu1 %vm151_vm0, %v10141_v56  ;;  %v7584_v56 = vld [vmem:[%s13671_s0 + $0x39] sm:$0xff] }
 0x116   :  { %9079 = vmatmul.mubr.msk.f32.gmra.mrb[40].mxu0 %vm151_vm0, %v10960_v29  ;;  %8641 = vmatprep.mubr.msk.f32.mxu1 %vm151_vm0, %v10149_v58  ;;  %v7585_v58 = vld [vmem:[%s13671_s0 + $0x49] sm:$0xff] }
 0x117   :  { %9081 = vmatprep.mubr.msk.f32.mxu0 %vm151_vm0, %v10967_v33 }
 0x119   :  { %8642 = vmatmul.mubr.msk.f32.gmra.mrb[10].mxu1 %vm151_vm0, %v10163_v60  ;;  %v13789_v60 = vld [vmem:[#allocation3_spill] sm:$0xff] }
 0x11a   :  { %9082 = vmatmul.mubr.msk.f32.gmra.mrb[42].mxu0 %vm151_vm0, %v10978_v37  ;;  %8644 = vmatprep.mubr.msk.f32.mxu1 %vm151_vm0, %v10171_v62  ;;  %v7586_v62 = vld [vmem:[%s13671_s0 + $0x51] sm:$0xff] }
 0x11b   :  { %9084 = vmatprep.mubr.msk.f32.mxu0 %vm151_vm0, %v10985_v40 }
 0x11d   :  { %8645 = vmatmul.mubr.msk.f32.gmra.mrb[12].mxu1 %vm151_vm0, %v10185_v0  ;;  %v7587_v0 = vld [vmem:[%s13671_s0 + $0x61] sm:$0xff] }
 0x11e   :  { %9085 = vmatmul.mubr.msk.f32.gmra.mrb[44].mxu0 %vm151_vm0, %v10996_v44  ;;  %8647 = vmatprep.mubr.msk.f32.mxu1 %vm151_vm0, %v10193_v3  ;;  %v13790_v3 = vld [vmem:[#allocation4_spill] sm:$0xff] }
 0x11f   :  { %9087 = vmatprep.mubr.msk.f32.mxu0 %vm151_vm0, %v11003_v46 }
 0x121   :  { %8648 = vmatmul.mubr.msk.f32.gmra.mrb[14].mxu1 %vm151_vm0, %v10207_v5  ;;  %v13791_v5 = vld [vmem:[#allocation5_spill] sm:$0xff] }
 0x122   :  { %9088 = vmatmul.mubr.msk.f32.gmra.mrb[46].mxu0 %vm151_vm0, %v11014_v51  ;;  %8650 = vmatprep.mubr.msk.f32.mxu1 %vm151_vm0, %v10215_v7  ;;  %v7588_v7 = vld [vmem:[%s13671_s0 + $0x69] sm:$0xff] }
 0x123   :  { %9090 = vmatprep.mubr.msk.f32.mxu0 %vm151_vm0, %v11021_v42 }
 0x125   :  { %8651 = vmatmul.mubr.msk.f32.gmra.mrb[16].mxu1 %vm151_vm0, %v10229_v9  ;;  %v7589_v9 = vld [vmem:[%s13671_s0 + $0x79] sm:$0xff] }
 0x126   :  { %9091 = vmatmul.mubr.msk.f32.gmra.mrb[48].mxu0 %vm151_vm0, %v11032_v39  ;;  %8653 = vmatprep.mubr.msk.f32.mxu1 %vm151_vm0, %v10237_v11  ;;  %v13792_v11 = vld [vmem:[#allocation6_spill] sm:$0xff] }
 0x127   :  { %9093 = vmatprep.mubr.msk.f32.mxu0 %vm151_vm0, %v11039_v35 }
 0x129   :  { %8654 = vmatmul.mubr.msk.f32.gmra.mrb[18].mxu1 %vm151_vm0, %v10251_v13  ;;  %v13793_v13 = vld [vmem:[#allocation7_spill] sm:$0xff] }
 0x12a   :  { %9094 = vmatmul.mubr.msk.f32.gmra.mrb[50].mxu0 %vm151_vm0, %v11050_v31  ;;  %8656 = vmatprep.mubr.msk.f32.mxu1 %vm151_vm0, %v10259_v15  ;;  %v7590_v15 = vld [vmem:[%s13671_s0 + $0x81] sm:$0xff] }
 0x12b   :  { %9096 = vmatprep.mubr.msk.f32.mxu0 %vm151_vm0, %v11057_v27 }
 0x12d   :  { %8657 = vmatmul.mubr.msk.f32.gmra.mrb[20].mxu1 %vm151_vm0, %v10273_v17  ;;  %v7591_v17 = vld [vmem:[%s13671_s0 + $0x91] sm:$0xff] }
 0x12e   :  { %9097 = vmatmul.mubr.msk.f32.gmra.mrb[52].mxu0 %vm151_vm0, %v11068_v22  ;;  %8659 = vmatprep.mubr.msk.f32.mxu1 %vm151_vm0, %v10281_v19  ;;  %v13794_v19 = vld [vmem:[#allocation8_spill] sm:$0xff] }
 0x12f   :  { %9099 = vmatprep.mubr.msk.f32.mxu0 %vm151_vm0, %v11075_v18 }
 0x131   :  { %8660 = vmatmul.mubr.msk.f32.gmra.mrb[22].mxu1 %vm151_vm0, %v10295_v21  ;;  %v13795_v21 = vld [vmem:[#allocation9_spill] sm:$0xff] }
 0x132   :  { %9100 = vmatmul.mubr.msk.f32.gmra.mrb[54].mxu0 %vm151_vm0, %v11086_v14  ;;  %8662 = vmatprep.mubr.msk.f32.mxu1 %vm151_vm0, %v10303_v23  ;;  %v7592_v23 = vld [vmem:[%s13671_s0 + $0x99] sm:$0xff] }
 0x133   :  { %9102 = vmatprep.mubr.msk.f32.mxu0 %vm151_vm0, %v11093_v10 }
 0x135   :  { %8663 = vmatmul.mubr.msk.f32.gmra.mrb[24].mxu1 %vm151_vm0, %v10317_v25  ;;  %v7593_v25 = vld [vmem:[%s13671_s0 + $0xa9] sm:$0xff] }
 0x136   :  { %9103 = vmatmul.mubr.msk.f32.gmra.mrb[56].mxu0 %vm151_vm0, %v11109_v26  ;;  %8665 = vmatprep.mubr.msk.f32.mxu1 %vm151_vm0, %v10325_v28  ;;  %v13796_v28 = vld [vmem:[#allocation10_spill] sm:$0xff] }
 0x137   :  { %9105 = vmatprep.mubr.msk.f32.mxu0 %vm151_vm0, %v11121_v63 }
 0x139   :  { %8666 = vmatmul.mubr.msk.f32.gmra.mrb[26].mxu1 %vm151_vm0, %v10339_v30  ;;  %v13797_v30 = vld [vmem:[#allocation11_spill] sm:$0xff] }
 0x13a   :  { %9106 = vmatmul.mubr.msk.f32.gmra.mrb[58].mxu0 %vm151_vm0, %v11135_v38  ;;  %8668 = vmatprep.mubr.msk.f32.mxu1 %vm151_vm0, %v10347_v32  ;;  %v7594_v32 = vld [vmem:[%s13671_s0 + $0xb1] sm:$0xff] }
 0x13b   :  { %9108 = vmatprep.mubr.msk.f32.mxu0 %vm151_vm0, %v11261_v1 }
 0x13d   :  { %8669 = vmatmul.mubr.msk.f32.gmra.mrb[28].mxu1 %vm151_vm0, %v10361_v34  ;;  %v7595_v34 = vld [vmem:[%s13671_s0 + $0xc1] sm:$0xff] }
 0x13e   :  { %9109 = vmatmul.mubr.msk.f32.gmra.mrb[60].mxu0 %vm151_vm0, %v11274_v41  ;;  %8671 = vmatprep.mubr.msk.f32.mxu1 %vm151_vm0, %v10369_v36  ;;  %v13798_v36 = vld [vmem:[#allocation12_spill] sm:$0xff] }
 0x13f   :  { %9111 = vmatprep.mubr.msk.f32.mxu0 %vm151_vm0, %v7516_v43  ;;  %v7599_v43 = vld [vmem:[%s13671_s0 + $0xf1] sm:$0xff] }
 0x141   :  { %8672 = vmatmul.mubr.msk.f32.gmra.mrb[30].mxu1 %vm151_vm0, %v13788_v52  ;;  %v7601_v52 = vld [vmem:[%s13671_s0 + $0x109] sm:$0xff] }
 0x142   :  { %9112 = vmatmul.mubr.msk.f32.gmra.mrb[62].mxu0 %vm151_vm0, %v7517_v45  ;;  %8674 = vmatprep.mubr.msk.f32.mxu1 %vm151_vm0, %v1338_v48  ;;  %v13802_v45 = vld [vmem:[#allocation16_spill] sm:$0xff]  ;;  %v13803_v48 = vld [vmem:[#allocation17_spill] sm:$0xff] }
 0x143   :  { %9116 = vmatprep.mubr.msk.f32.mxu0 %vm151_vm0, %v7583_v50  ;;  %v7600_v50 = vld [vmem:[%s13671_s0 + $0xf9] sm:$0xff] }
 0x145   :  { %8675 = vmatmul.mubr.msk.f32.gmra.mrb[32].mxu1 %vm151_vm0, %v1339_v54  ;;  %v13804_v54 = vld [vmem:[#allocation18_spill] sm:$0xff] }
 0x146   :  { %9117 = vmatmul.mubr.msk.f32.vlgmr.msra.gmra.mrb[0].mxu0 %vm151_vm0, %v7584_v56  ;;  %8677 = vmatprep.mubr.msk.f32.mxu1 %vm151_vm0, %v13789_v60  ;;  %v13805_v56 = vld [vmem:[#allocation19_spill] sm:$0xff] }
 0x147   :  { %9213 = vmatpush3.msra.mxu0 %v10868_v49  ;;  %9119 = vmatprep.mubr.msk.f32.mxu0 %vm151_vm0, %v7585_v58  ;;  %v7597_v49 = vld [vmem:[%s13671_s0 + $0xd9] sm:$0xff]  ;;  %v7602_v58 = vld [vmem:[%s13671_s0 + $0x111] sm:$0xff]  ;;  %v7603_v60 = vld [vmem:[%s13671_s0 + $0x121] sm:$0xff] }
 0x149   :  { %8678 = vmatmul.mubr.msk.f32.gmra.mrb[34].mxu1 %vm151_vm0, %v13790_v3  ;;  %v7604_v3 = vld [vmem:[%s13671_s0 + $0x129] sm:$0xff] }
 0x14a   :  { %9120 = vmatmul.mubr.msk.f32.gmra.mrb[2].mxu0 %vm151_vm0, %v7586_v62  ;;  %8680 = vmatprep.mubr.msk.f32.mxu1 %vm151_vm0, %v13791_v5  ;;  %v13806_v62 = vld [vmem:[#allocation20_spill] sm:$0xff]  ;;  %v7605_v5 = vld [vmem:[%s13671_s0 + $0x139] sm:$0xff] }
 0x14b   :  { %9122 = vmatprep.mubr.msk.f32.mxu0 %vm151_vm0, %v7587_v0  ;;  %v13807_v0 = vld [vmem:[#allocation21_spill] sm:$0xff] }
 0x14d   :  { %8681 = vmatmul.mubr.msk.f32.gmra.mrb[36].mxu1 %vm151_vm0, %v13792_v11  ;;  %v7606_v11 = vld [vmem:[%s13671_s0 + $0x141] sm:$0xff] }
 0x14e   :  { %9123 = vmatmul.mubr.msk.f32.gmra.mrb[4].mxu0 %vm151_vm0, %v7588_v7  ;;  %8683 = vmatprep.mubr.msk.f32.mxu1 %vm151_vm0, %v13793_v13  ;;  %v13808_v7 = vld [vmem:[#allocation22_spill] sm:$0xff]  ;;  %v7607_v13 = vld [vmem:[%s13671_s0 + $0x151] sm:$0xff] }
 0x14f   :  { %9125 = vmatprep.mubr.msk.f32.mxu0 %vm151_vm0, %v7589_v9  ;;  %v13809_v9 = vld [vmem:[#allocation23_spill] sm:$0xff] }
 0x151   :  { %8684 = vmatmul.mubr.msk.f32.gmra.mrb[38].mxu1 %vm151_vm0, %v13794_v19  ;;  %v7608_v19 = vld [vmem:[%s13671_s0 + $0x159] sm:$0xff] }
 0x152   :  { %9126 = vmatmul.mubr.msk.f32.gmra.mrb[6].mxu0 %vm151_vm0, %v7590_v15  ;;  %8686 = vmatprep.mubr.msk.f32.mxu1 %vm151_vm0, %v13795_v21  ;;  %v13810_v15 = vld [vmem:[#allocation24_spill] sm:$0xff] }
 0x153   :  { %9128 = vmatprep.mubr.msk.f32.mxu0 %vm151_vm0, %v7591_v17  ;;  %v13811_v17 = vld [vmem:[#allocation25_spill] sm:$0xff]  ;;  %v7609_v21 = vld [vmem:[%s13671_s0 + $0x169] sm:$0xff] }
 0x155   :  { %8687 = vmatmul.mubr.msk.f32.gmra.mrb[40].mxu1 %vm151_vm0, %v13796_v28  ;;  %v7610_v28 = vld [vmem:[%s13671_s0 + $0x171] sm:$0xff] }
 0x156   :  { %9129 = vmatmul.mubr.msk.f32.gmra.mrb[8].mxu0 %vm151_vm0, %v7592_v23  ;;  %8689 = vmatprep.mubr.msk.f32.mxu1 %vm151_vm0, %v13797_v30  ;;  %v13812_v23 = vld [vmem:[#allocation26_spill] sm:$0xff] }
 0x157   :  { %9131 = vmatprep.mubr.msk.f32.mxu0 %vm151_vm0, %v7593_v25  ;;  %v13813_v25 = vld [vmem:[#allocation27_spill] sm:$0xff] }
 0x158   :  { %v7611_v30 = vld [vmem:[%s13671_s0 + $0x181] sm:$0xff] }
 0x159   :  { %8690 = vmatmul.mubr.msk.f32.gmra.mrb[42].mxu1 %vm151_vm0, %v13798_v36  ;;  %v7612_v36 = vld [vmem:[%s13671_s0 + $0x189] sm:$0xff] }
 0x15a   :  { %9132 = vmatmul.mubr.msk.f32.gmra.mrb[10].mxu0 %vm151_vm0, %v7594_v32  ;;  %8692 = vmatprep.mubr.msk.f32.mxu1 %vm151_vm0, %v13799_v59  ;;  %v13814_v32 = vld [vmem:[#allocation28_spill] sm:$0xff]  ;;  %v7613_v59 = vld [vmem:[%s13671_s0 + $0x199] sm:$0xff] }
 0x15b   :  { %9134 = vmatprep.mubr.msk.f32.mxu0 %vm151_vm0, %v7595_v34  ;;  %v13815_v34 = vld [vmem:[#allocation29_spill] sm:$0xff] }
 0x15d   :  { %8693 = vmatmul.mubr.msk.f32.gmra.mrb[44].mxu1 %vm151_vm0, %v13800_v6  ;;  %v7614_v6 = vld [vmem:[%s13671_s0 + $0x1a1] sm:$0xff] }
 0x15e   :  { %9135 = vmatmul.mubr.msk.f32.gmra.mrb[12].mxu0 %vm151_vm0, %v7596_v53  ;;  %8695 = vmatprep.mubr.msk.f32.mxu1 %vm151_vm0, %v13801_v55  ;;  %v13816_v53 = vld [vmem:[#allocation30_spill] sm:$0xff]  ;;  %v7067_v55 = vld [vmem:[%s13671_s0 + $0x18] sm:$0xff] }
 0x15f   :  { %9137 = vmatprep.mubr.msk.f32.mxu0 %vm151_vm0, %v7597_v49  ;;  %v13817_v49 = vld [vmem:[#allocation31_spill] sm:$0xff] }
 0x161   :  { %8696 = vmatmul.mubr.msk.f32.gmra.mrb[46].mxu1 %vm151_vm0, %v13802_v45  ;;  %v7068_v45 = vld [vmem:[%s13671_s0 + $0x20] sm:$0xff] }
 0x162   :  { %9138 = vmatmul.mubr.msk.f32.gmra.mrb[14].mxu0 %vm151_vm0, %v7598_v61  ;;  %8698 = vmatprep.mubr.msk.f32.mxu1 %vm151_vm0, %v13803_v48  ;;  %v11492_v61 = vld [vmem:[%s13671_s0 + $0x1e1] sm:$0xff]  ;;  %v11506_v48 = vld [vmem:[%s13671_s0 + $0x1e9] sm:$0xff] }
 0x163   :  { %9140 = vmatprep.mubr.msk.f32.mxu0 %vm151_vm0, %v7599_v43  ;;  %v13818_v43 = vld [vmem:[#allocation32_spill] sm:$0xff] }
 0x165   :  { %8699 = vmatmul.mubr.msk.f32.gmra.mrb[48].mxu1 %vm151_vm0, %v13804_v54  ;;  %v9826_v54 = vld [vmem:[%s13670_s1 + $0x20] sm:$0xff] }
 0x166   :  { %9141 = vmatmul.mubr.msk.f32.gmra.mrb[16].mxu0 %vm151_vm0, %v7600_v50  ;;  %8701 = vmatprep.mubr.msk.f32.mxu1 %vm151_vm0, %v13805_v56  ;;  %v7069_v50 = vld [vmem:[%s13671_s0 + $0x30] sm:$0xff]  ;;  %v7070_v56 = vld [vmem:[%s13671_s0 + $0x38] sm:$0xff] }
 0x167   :  { %9143 = vmatprep.mubr.msk.f32.mxu0 %vm151_vm0, %v7601_v52  ;;  %v11514_v52 = vld [vmem:[%s13671_s0 + $0x1f9] sm:$0xff] }
 0x169   :  { %8702 = vmatmul.mubr.msk.f32.gmra.mrb[50].mxu1 %vm151_vm0, %v13806_v62  ;;  %v11539_v62 = vld [vmem:[%s13671_s0 + $0x211] sm:$0xff] }
 0x16a   :  { %9144 = vmatmul.mubr.msk.f32.gmra.mrb[18].mxu0 %vm151_vm0, %v7602_v58  ;;  %8704 = vmatprep.mubr.msk.f32.mxu1 %vm151_vm0, %v13807_v0  ;;  %v11531_v58 = vld [vmem:[%s13671_s0 + $0x201] sm:$0xff]  ;;  %v7072_v0 = vld [vmem:[%s13671_s0 + $0x50] sm:$0xff] }
 0x16b   :  { %9146 = vmatprep.mubr.msk.f32.mxu0 %vm151_vm0, %v7603_v60  ;;  %v7071_v60 = vld [vmem:[%s13671_s0 + $0x48] sm:$0xff] }
 0x16d   :  { %8705 = vmatmul.mubr.msk.f32.gmra.mrb[52].mxu1 %vm151_vm0, %v13808_v7  ;;  %v11561_v7 = vld [vmem:[%s13671_s0 + $0x229] sm:$0xff] }
 0x16e   :  { %9147 = vmatmul.mubr.msk.f32.gmra.mrb[20].mxu0 %vm151_vm0, %v7604_v3  ;;  %8707 = vmatprep.mubr.msk.f32.mxu1 %vm151_vm0, %v13809_v9  ;;  %v11553_v3 = vld [vmem:[%s13671_s0 + $0x219] sm:$0xff]  ;;  %v7074_v9 = vld [vmem:[%s13671_s0 + $0x68] sm:$0xff] }
 0x16f   :  { %9149 = vmatprep.mubr.msk.f32.mxu0 %vm151_vm0, %v7605_v5  ;;  %v7073_v5 = vld [vmem:[%s13671_s0 + $0x60] sm:$0xff] }
 0x171   :  { %8708 = vmatmul.mubr.msk.f32.gmra.mrb[54].mxu1 %vm151_vm0, %v13810_v15  ;;  %v11583_v15 = vld [vmem:[%s13671_s0 + $0x241] sm:$0xff] }
 0x172   :  { %9150 = vmatmul.mubr.msk.f32.gmra.mrb[22].mxu0 %vm151_vm0, %v7606_v11  ;;  %8710 = vmatprep.mubr.msk.f32.mxu1 %vm151_vm0, %v13811_v17  ;;  %v11575_v11 = vld [vmem:[%s13671_s0 + $0x231] sm:$0xff]  ;;  %v7076_v17 = vld [vmem:[%s13671_s0 + $0x80] sm:$0xff] }
 0x173   :  { %9152 = vmatprep.mubr.msk.f32.mxu0 %vm151_vm0, %v7607_v13  ;;  %v7075_v13 = vld [vmem:[%s13671_s0 + $0x78] sm:$0xff] }
 0x175   :  { %8711 = vmatmul.mubr.msk.f32.gmra.mrb[56].mxu1 %vm151_vm0, %v13812_v23  ;;  %v11605_v23 = vld [vmem:[%s13671_s0 + $0x259] sm:$0xff] }
 0x176   :  { %9153 = vmatmul.mubr.msk.f32.gmra.mrb[24].mxu0 %vm151_vm0, %v7608_v19  ;;  %8713 = vmatprep.mubr.msk.f32.mxu1 %vm151_vm0, %v13813_v25  ;;  %v11597_v19 = vld [vmem:[%s13671_s0 + $0x249] sm:$0xff]  ;;  %v7078_v25 = vld [vmem:[%s13671_s0 + $0x98] sm:$0xff] }
 0x177   :  { %9155 = vmatprep.mubr.msk.f32.mxu0 %vm151_vm0, %v7609_v21  ;;  %v7077_v21 = vld [vmem:[%s13671_s0 + $0x90] sm:$0xff] }
 0x179   :  { %8714 = vmatmul.mubr.msk.f32.gmra.mrb[58].mxu1 %vm151_vm0, %v13814_v32  ;;  %v11627_v32 = vld [vmem:[%s13671_s0 + $0x271] sm:$0xff] }
 0x17a   :  { %9156 = vmatmul.mubr.msk.f32.gmra.mrb[26].mxu0 %vm151_vm0, %v7610_v28  ;;  %8716 = vmatprep.mubr.msk.f32.mxu1 %vm151_vm0, %v13815_v34  ;;  %v11619_v28 = vld [vmem:[%s13671_s0 + $0x261] sm:$0xff]  ;;  %v7080_v34 = vld [vmem:[%s13671_s0 + $0xb0] sm:$0xff] }
 0x17b   :  { %9158 = vmatprep.mubr.msk.f32.mxu0 %vm151_vm0, %v7611_v30  ;;  %v7079_v30 = vld [vmem:[%s13671_s0 + $0xa8] sm:$0xff] }
 0x17d   :  { %8717 = vmatmul.mubr.msk.f32.gmra.mrb[60].mxu1 %vm151_vm0, %v13816_v53  ;;  %v11649_v53 = vld [vmem:[%s13671_s0 + $0x289] sm:$0xff] }
 0x17e   :  { %9159 = vmatmul.mubr.msk.f32.gmra.mrb[28].mxu0 %vm151_vm0, %v7612_v36  ;;  %8719 = vmatprep.mubr.msk.f32.mxu1 %vm151_vm0, %v13817_v49  ;;  %v11641_v36 = vld [vmem:[%s13671_s0 + $0x279] sm:$0xff]  ;;  %v7082_v49 = vld [vmem:[%s13671_s0 + $0xc8] sm:$0xff] }
 0x17f   :  { %9161 = vmatprep.mubr.msk.f32.mxu0 %vm151_vm0, %v7613_v59  ;;  %v7081_v59 = vld [vmem:[%s13671_s0 + $0xc0] sm:$0xff] }
 0x181   :  { %8720 = vmatmul.mubr.msk.f32.gmra.mrb[62].mxu1 %vm151_vm0, %v13818_v43  ;;  %v11671_v43 = vld [vmem:[%s13671_s0 + $0x2a1] sm:$0xff] }
 0x182   :  { %9162 = vmatmul.mubr.msk.f32.gmra.mrb[30].mxu0 %vm151_vm0, %v7614_v6  ;;  %8724 = vmatprep.mubr.msk.f32.mxu1 %vm151_vm0, %v7067_v55  ;;  %v11663_v6 = vld [vmem:[%s13671_s0 + $0x291] sm:$0xff] }
 0x183   :  { %9164 = vmatprep.mubr.msk.f32.mxu0 %vm151_vm0, %v11492_v61  ;;  %v7083_v55 = vld [vmem:[%s13671_s0 + $0xd8] sm:$0xff] }
 0x185   :  { %8725 = vmatmul.mubr.msk.f32.vlgmr.msra.gmra.mrb[0].mxu1 %vm151_vm0, %v7068_v45  ;;  %v7084_v45 = vld [vmem:[%s13671_s0 + $0xe0] sm:$0xff] }
 0x186   :  { %9165 = vmatmul.mubr.msk.f32.gmra.mrb[32].mxu0 %vm151_vm0, %v11506_v48  ;;  %9311 = vmatpush3.msra.mxu1 %v9826_v54  ;;  %v7085_v54 = vld [vmem:[%s13671_s0 + $0xf0] sm:$0xff] }
 0x187   :  { %8727 = vmatprep.mubr.msk.f32.mxu1 %vm151_vm0, %v7069_v50  ;;  %9167 = vmatprep.mubr.msk.f32.mxu0 %vm151_vm0, %v11514_v52  ;;  %v11685_v50 = vld [vmem:[%s13671_s0 + $0x2a9] sm:$0xff] }
 0x189   :  { %8728 = vmatmul.mubr.msk.f32.gmra.mrb[2].mxu1 %vm151_vm0, %v7070_v56  ;;  %v11693_v56 = vld [vmem:[%s13671_s0 + $0x2b9] sm:$0xff] }
 0x18a   :  { %9168 = vmatmul.mubr.msk.f32.gmra.mrb[34].mxu0 %vm151_vm0, %v11531_v58  ;;  %8730 = vmatprep.mubr.msk.f32.mxu1 %vm151_vm0, %v7071_v60  ;;  %v7086_v60 = vld [vmem:[%s13671_s0 + $0xf8] sm:$0xff] }
 0x18b   :  { %9170 = vmatprep.mubr.msk.f32.mxu0 %vm151_vm0, %v11539_v62 }
 0x18d   :  { %8731 = vmatmul.mubr.msk.f32.gmra.mrb[4].mxu1 %vm151_vm0, %v7072_v0  ;;  %v11707_v0 = vld [vmem:[%s13671_s0 + $0x2c1] sm:$0xff] }
 0x18e   :  { %9171 = vmatmul.mubr.msk.f32.gmra.mrb[36].mxu0 %vm151_vm0, %v11553_v3  ;;  %8733 = vmatprep.mubr.msk.f32.mxu1 %vm151_vm0, %v7073_v5  ;;  %v7087_v5 = vld [vmem:[%s13671_s0 + $0x108] sm:$0xff] }
 0x18f   :  { %9173 = vmatprep.mubr.msk.f32.mxu0 %vm151_vm0, %v11561_v7 }
 0x191   :  { %8734 = vmatmul.mubr.msk.f32.gmra.mrb[6].mxu1 %vm151_vm0, %v7074_v9  ;;  %v11715_v9 = vld [vmem:[%s13671_s0 + $0x2d1] sm:$0xff] }
 0x192   :  { %9174 = vmatmul.mubr.msk.f32.gmra.mrb[38].mxu0 %vm151_vm0, %v11575_v11  ;;  %8736 = vmatprep.mubr.msk.f32.mxu1 %vm151_vm0, %v7075_v13  ;;  %v7088_v13 = vld [vmem:[%s13671_s0 + $0x110] sm:$0xff] }
 0x193   :  { %9176 = vmatprep.mubr.msk.f32.mxu0 %vm151_vm0, %v11583_v15 }
 0x195   :  { %8737 = vmatmul.mubr.msk.f32.gmra.mrb[8].mxu1 %vm151_vm0, %v7076_v17  ;;  %v11729_v17 = vld [vmem:[%s13671_s0 + $0x2d9] sm:$0xff] }
 0x196   :  { %9177 = vmatmul.mubr.msk.f32.gmra.mrb[40].mxu0 %vm151_vm0, %v11597_v19  ;;  %8739 = vmatprep.mubr.msk.f32.mxu1 %vm151_vm0, %v7077_v21  ;;  %v7089_v21 = vld [vmem:[%s13671_s0 + $0x120] sm:$0xff] }
 0x197   :  { %9179 = vmatprep.mubr.msk.f32.mxu0 %vm151_vm0, %v11605_v23 }
 0x199   :  { %8740 = vmatmul.mubr.msk.f32.gmra.mrb[10].mxu1 %vm151_vm0, %v7078_v25  ;;  %v11737_v25 = vld [vmem:[%s13671_s0 + $0x2e9] sm:$0xff] }
 0x19a   :  { %9180 = vmatmul.mubr.msk.f32.gmra.mrb[42].mxu0 %vm151_vm0, %v11619_v28  ;;  %8742 = vmatprep.mubr.msk.f32.mxu1 %vm151_vm0, %v7079_v30  ;;  %v7090_v30 = vld [vmem:[%s13671_s0 + $0x128] sm:$0xff] }
 0x19b   :  { %9182 = vmatprep.mubr.msk.f32.mxu0 %vm151_vm0, %v11627_v32 }
 0x19d   :  { %8743 = vmatmul.mubr.msk.f32.gmra.mrb[12].mxu1 %vm151_vm0, %v7080_v34  ;;  %v11751_v34 = vld [vmem:[%s13671_s0 + $0x2f1] sm:$0xff] }
 0x19e   :  { %9183 = vmatmul.mubr.msk.f32.gmra.mrb[44].mxu0 %vm151_vm0, %v11641_v36  ;;  %8745 = vmatprep.mubr.msk.f32.mxu1 %vm151_vm0, %v7081_v59  ;;  %v7091_v59 = vld [vmem:[%s13671_s0 + $0x138] sm:$0xff] }
 0x19f   :  { %9185 = vmatprep.mubr.msk.f32.mxu0 %vm151_vm0, %v11649_v53 }
 0x1a1   :  { %8746 = vmatmul.mubr.msk.f32.gmra.mrb[14].mxu1 %vm151_vm0, %v7082_v49  ;;  %v11759_v49 = vld [vmem:[%s13671_s0 + $0x301] sm:$0xff] }
 0x1a2   :  { %9186 = vmatmul.mubr.msk.f32.gmra.mrb[46].mxu0 %vm151_vm0, %v11663_v6  ;;  %8748 = vmatprep.mubr.msk.f32.mxu1 %vm151_vm0, %v7083_v55  ;;  %v7092_v55 = vld [vmem:[%s13671_s0 + $0x140] sm:$0xff] }
 0x1a3   :  { %9188 = vmatprep.mubr.msk.f32.mxu0 %vm151_vm0, %v11671_v43 }
 0x1a5   :  { %8749 = vmatmul.mubr.msk.f32.gmra.mrb[16].mxu1 %vm151_vm0, %v7084_v45  ;;  %v11773_v45 = vld [vmem:[%s13671_s0 + $0x309] sm:$0xff] }
 0x1a6   :  { %9189 = vmatmul.mubr.msk.f32.gmra.mrb[48].mxu0 %vm151_vm0, %v11685_v50  ;;  %8751 = vmatprep.mubr.msk.f32.mxu1 %vm151_vm0, %v7085_v54  ;;  %v7093_v54 = vld [vmem:[%s13671_s0 + $0x150] sm:$0xff] }
 0x1a7   :  { %9191 = vmatprep.mubr.msk.f32.mxu0 %vm151_vm0, %v11693_v56 }
 0x1a9   :  { %8752 = vmatmul.mubr.msk.f32.gmra.mrb[18].mxu1 %vm151_vm0, %v7086_v60  ;;  %v11781_v60 = vld [vmem:[%s13671_s0 + $0x319] sm:$0xff] }
 0x1aa   :  { %9192 = vmatmul.mubr.msk.f32.gmra.mrb[50].mxu0 %vm151_vm0, %v11707_v0  ;;  %8754 = vmatprep.mubr.msk.f32.mxu1 %vm151_vm0, %v7087_v5  ;;  %v7094_v5 = vld [vmem:[%s13671_s0 + $0x158] sm:$0xff] }
 0x1ab   :  { %9194 = vmatprep.mubr.msk.f32.mxu0 %vm151_vm0, %v11715_v9 }
 0x1ad   :  { %8755 = vmatmul.mubr.msk.f32.gmra.mrb[20].mxu1 %vm151_vm0, %v7088_v13  ;;  %v11795_v13 = vld [vmem:[%s13671_s0 + $0x321] sm:$0xff] }
 0x1ae   :  { %9195 = vmatmul.mubr.msk.f32.gmra.mrb[52].mxu0 %vm151_vm0, %v11729_v17  ;;  %8757 = vmatprep.mubr.msk.f32.mxu1 %vm151_vm0, %v7089_v21  ;;  %13819 = vst [vmem:[#allocation2_spill] sm:$0xff] %v11795_v13  ;;  %v7095_v21 = vld [vmem:[%s13671_s0 + $0x168] sm:$0xff] }
 0x1af   :  { %9197 = vmatprep.mubr.msk.f32.mxu0 %vm151_vm0, %v11737_v25 }
 0x1b1   :  { %8758 = vmatmul.mubr.msk.f32.gmra.mrb[22].mxu1 %vm151_vm0, %v7090_v30  ;;  %v11803_v30 = vld [vmem:[%s13671_s0 + $0x331] sm:$0xff] }
 0x1b2   :  { %9198 = vmatmul.mubr.msk.f32.gmra.mrb[54].mxu0 %vm151_vm0, %v11751_v34  ;;  %8760 = vmatprep.mubr.msk.f32.mxu1 %vm151_vm0, %v7091_v59  ;;  %13820 = vst [vmem:[#allocation3_spill] sm:$0xff] %v11803_v30  ;;  %v7096_v59 = vld [vmem:[%s13671_s0 + $0x170] sm:$0xff] }
 0x1b3   :  { %9200 = vmatprep.mubr.msk.f32.mxu0 %vm151_vm0, %v11759_v49 }
 0x1b5   :  { %8761 = vmatmul.mubr.msk.f32.gmra.mrb[24].mxu1 %vm151_vm0, %v7092_v55  ;;  %v11817_v55 = vld [vmem:[%s13671_s0 + $0x339] sm:$0xff] }
 0x1b6   :  { %9201 = vmatmul.mubr.msk.f32.gmra.mrb[56].mxu0 %vm151_vm0, %v11773_v45  ;;  %8763 = vmatprep.mubr.msk.f32.mxu1 %vm151_vm0, %v7093_v54  ;;  %13821 = vst [vmem:[#allocation4_spill] sm:$0xff] %v11817_v55  ;;  %v7645_v54 = vld [vmem:[%s13671_s0 + $0x349] sm:$0xff] }
 0x1b7   :  { %9203 = vmatprep.mubr.msk.f32.mxu0 %vm151_vm0, %v11781_v60 }
 0x1b9   :  { %8764 = vmatmul.mubr.msk.f32.gmra.mrb[26].mxu1 %vm151_vm0, %v7094_v5  ;;  %v13822_v5 = vld [vmem:[#allocation35_spill] sm:$0xff] }
 0x1ba   :  { %9204 = vmatmul.mubr.msk.f32.gmra.mrb[58].mxu0 %vm151_vm0, %v11795_v13  ;;  %8766 = vmatprep.mubr.msk.f32.mxu1 %vm151_vm0, %v7095_v21  ;;  %v7646_v21 = vld [vmem:[%s13671_s0 + $0x351] sm:$0xff] }
 0x1bb   :  { %9206 = vmatprep.mubr.msk.f32.mxu0 %vm151_vm0, %v11803_v30  ;;  %v7712_v30 = vld [vmem:[%s13671_s0 + $0x32] sm:$0xff] }
 0x1bc   :  { %v13823_v13 = vld [vmem:[#allocation36_spill] sm:$0xff] }
 0x1bd   :  { %8767 = vmatmul.mubr.msk.f32.gmra.mrb[28].mxu1 %vm151_vm0, %v7096_v59  ;;  %v13824_v59 = vld [vmem:[#allocation33_spill] sm:$0xff] }
 0x1be   :  { %9207 = vmatmul.mubr.msk.f32.gmra.mrb[60].mxu0 %vm151_vm0, %v11817_v55  ;;  %8769 = vmatprep.mubr.msk.f32.mxu1 %vm151_vm0, %v13822_v5  ;;  %v7714_v5 = vld [vmem:[%s13671_s0 + $0x4a] sm:$0xff]  ;;  %v13825_v55 = vld [vmem:[#allocation34_spill] sm:$0xff] }
 0x1bf   :  { %9209 = vmatprep.mubr.msk.f32.mxu0 %vm151_vm0, %v7645_v54  ;;  %v7713_v54 = vld [vmem:[%s13671_s0 + $0x3a] sm:$0xff] }
 0x1c1   :  { %8770 = vmatmul.mubr.msk.f32.gmra.mrb[30].mxu1 %vm151_vm0, %v13823_v13  ;;  %v7715_v13 = vld [vmem:[%s13671_s0 + $0x52] sm:$0xff] }
 0x1c2   :  { %9210 = vmatmul.mubr.msk.f32.gmra.mrb[62].mxu0 %vm151_vm0, %v7646_v21  ;;  %8772 = vmatprep.mubr.msk.f32.mxu1 %vm151_vm0, %v13824_v59  ;;  %v7744_v21 = vld [vmem:[%s13671_s0 + $0x1e2] sm:$0xff]  ;;  %v7746_v59 = vld [vmem:[%s13671_s0 + $0x1fa] sm:$0xff] }
 0x1c3   :  { %9214 = vmatprep.mubr.msk.f32.mxu0 %vm151_vm0, %v7712_v30  ;;  %v7716_v30 = vld [vmem:[%s13671_s0 + $0x62] sm:$0xff] }
 0x1c5   :  { %8773 = vmatmul.mubr.msk.f32.gmra.mrb[32].mxu1 %vm151_vm0, %v13825_v55  ;;  %v7718_v55 = vld [vmem:[%s13671_s0 + $0x7a] sm:$0xff] }
 0x1c6   :  { %9215 = vmatmul.mubr.msk.f32.vlgmr.msra.gmra.mrb[0].mxu0 %vm151_vm0, %v7713_v54  ;;  %8775 = vmatprep.mubr.msk.f32.mxu1 %vm151_vm0, %v10876_v57  ;;  %v7717_v57 = vld [vmem:[%s13671_s0 + $0x6a] sm:$0xff]  ;;  %v7748_v54 = vld [vmem:[%s13671_s0 + $0x212] sm:$0xff] }
 0x1c7   :  { %9217 = vmatprep.mubr.msk.f32.mxu0 %vm151_vm0, %v7714_v5  ;;  %v7750_v5 = vld [vmem:[%s13671_s0 + $0x22a] sm:$0xff] }
 0x1c9   :  { %8776 = vmatmul.mubr.msk.f32.gmra.mrb[34].mxu1 %vm151_vm0, %v10888_v47  ;;  %v7719_v47 = vld [vmem:[%s13671_s0 + $0x82] sm:$0xff] }
 0x1ca   :  { %9218 = vmatmul.mubr.msk.f32.gmra.mrb[2].mxu0 %vm151_vm0, %v7715_v13  ;;  %8778 = vmatprep.mubr.msk.f32.mxu1 %vm151_vm0, %v10895_v2  ;;  %v7720_v2 = vld [vmem:[%s13671_s0 + $0x92] sm:$0xff]  ;;  %v13826_v13 = vld [vmem:[#allocation2_spill] sm:$0xff] }
 0x1cb   :  { %9220 = vmatprep.mubr.msk.f32.mxu0 %vm151_vm0, %v7716_v30  ;;  %v13828_v30 = vld [vmem:[#allocation4_spill] sm:$0xff] }
 0x1cd   :  { %8779 = vmatmul.mubr.msk.f32.gmra.mrb[36].mxu1 %vm151_vm0, %v10906_v4  ;;  %v7721_v4 = vld [vmem:[%s13671_s0 + $0x9a] sm:$0xff] }
 0x1ce   :  { %9221 = vmatmul.mubr.msk.f32.gmra.mrb[4].mxu0 %vm151_vm0, %v7717_v57  ;;  %8781 = vmatprep.mubr.msk.f32.mxu1 %vm151_vm0, %v10913_v8  ;;  %v7722_v8 = vld [vmem:[%s13671_s0 + $0xaa] sm:$0xff] }
 0x1cf   :  { %9223 = vmatprep.mubr.msk.f32.mxu0 %vm151_vm0, %v7718_v55 }
 0x1d1   :  { %8782 = vmatmul.mubr.msk.f32.gmra.mrb[38].mxu1 %vm151_vm0, %v10924_v12  ;;  %v7723_v12 = vld [vmem:[%s13671_s0 + $0xb2] sm:$0xff] }
 0x1d2   :  { %9224 = vmatmul.mubr.msk.f32.gmra.mrb[6].mxu0 %vm151_vm0, %v7719_v47  ;;  %8784 = vmatprep.mubr.msk.f32.mxu1 %vm151_vm0, %v10931_v16  ;;  %v7724_v16 = vld [vmem:[%s13671_s0 + $0xc2] sm:$0xff] }
 0x1d3   :  { %9226 = vmatprep.mubr.msk.f32.mxu0 %vm151_vm0, %v7720_v2 }
 0x1d5   :  { %8785 = vmatmul.mubr.msk.f32.gmra.mrb[40].mxu1 %vm151_vm0, %v10942_v20  ;;  %v7725_v20 = vld [vmem:[%s13671_s0 + $0xca] sm:$0xff] }
 0x1d6   :  { %9227 = vmatmul.mubr.msk.f32.gmra.mrb[8].mxu0 %vm151_vm0, %v7721_v4  ;;  %8787 = vmatprep.mubr.msk.f32.mxu1 %vm151_vm0, %v10949_v24  ;;  %v7726_v24 = vld [vmem:[%s13671_s0 + $0xda] sm:$0xff] }
 0x1d7   :  { %9229 = vmatprep.mubr.msk.f32.mxu0 %vm151_vm0, %v7722_v8 }
 0x1d9   :  { %8788 = vmatmul.mubr.msk.f32.gmra.mrb[42].mxu1 %vm151_vm0, %v10960_v29  ;;  %v7727_v29 = vld [vmem:[%s13671_s0 + $0xe2] sm:$0xff] }
 0x1da   :  { %9230 = vmatmul.mubr.msk.f32.gmra.mrb[10].mxu0 %vm151_vm0, %v7723_v12  ;;  %8790 = vmatprep.mubr.msk.f32.mxu1 %vm151_vm0, %v10967_v33  ;;  %v7728_v33 = vld [vmem:[%s13671_s0 + $0xf2] sm:$0xff] }
 0x1db   :  { %9232 = vmatprep.mubr.msk.f32.mxu0 %vm151_vm0, %v7724_v16 }
 0x1dd   :  { %8791 = vmatmul.mubr.msk.f32.gmra.mrb[44].mxu1 %vm151_vm0, %v10978_v37  ;;  %v7729_v37 = vld [vmem:[%s13671_s0 + $0xfa] sm:$0xff] }
 0x1de   :  { %9233 = vmatmul.mubr.msk.f32.gmra.mrb[12].mxu0 %vm151_vm0, %v7725_v20  ;;  %8793 = vmatprep.mubr.msk.f32.mxu1 %vm151_vm0, %v10985_v40  ;;  %v7730_v40 = vld [vmem:[%s13671_s0 + $0x10a] sm:$0xff] }
 0x1df   :  { %9235 = vmatprep.mubr.msk.f32.mxu0 %vm151_vm0, %v7726_v24 }
 0x1e1   :  { %8794 = vmatmul.mubr.msk.f32.gmra.mrb[46].mxu1 %vm151_vm0, %v10996_v44  ;;  %v7731_v44 = vld [vmem:[%s13671_s0 + $0x112] sm:$0xff] }
 0x1e2   :  { %9236 = vmatmul.mubr.msk.f32.gmra.mrb[14].mxu0 %vm151_vm0, %v7727_v29  ;;  %8796 = vmatprep.mubr.msk.f32.mxu1 %vm151_vm0, %v11003_v46  ;;  %v7732_v46 = vld [vmem:[%s13671_s0 + $0x122] sm:$0xff] }
 0x1e3   :  { %9238 = vmatprep.mubr.msk.f32.mxu0 %vm151_vm0, %v7728_v33 }
 0x1e5   :  { %8797 = vmatmul.mubr.msk.f32.gmra.mrb[48].mxu1 %vm151_vm0, %v11014_v51  ;;  %v7733_v51 = vld [vmem:[%s13671_s0 + $0x12a] sm:$0xff] }
 0x1e6   :  { %9239 = vmatmul.mubr.msk.f32.gmra.mrb[16].mxu0 %vm151_vm0, %v7729_v37  ;;  %8799 = vmatprep.mubr.msk.f32.mxu1 %vm151_vm0, %v11021_v42  ;;  %v7734_v42 = vld [vmem:[%s13671_s0 + $0x13a] sm:$0xff] }
 0x1e7   :  { %9241 = vmatprep.mubr.msk.f32.mxu0 %vm151_vm0, %v7730_v40 }
 0x1e9   :  { %8800 = vmatmul.mubr.msk.f32.gmra.mrb[50].mxu1 %vm151_vm0, %v11032_v39  ;;  %v7735_v39 = vld [vmem:[%s13671_s0 + $0x142] sm:$0xff] }
 0x1ea   :  { %9242 = vmatmul.mubr.msk.f32.gmra.mrb[18].mxu0 %vm151_vm0, %v7731_v44  ;;  %8802 = vmatprep.mubr.msk.f32.mxu1 %vm151_vm0, %v11039_v35  ;;  %v7736_v35 = vld [vmem:[%s13671_s0 + $0x152] sm:$0xff] }
 0x1eb   :  { %9244 = vmatprep.mubr.msk.f32.mxu0 %vm151_vm0, %v7732_v46 }
 0x1ed   :  { %8803 = vmatmul.mubr.msk.f32.gmra.mrb[52].mxu1 %vm151_vm0, %v11050_v31  ;;  %v7737_v31 = vld [vmem:[%s13671_s0 + $0x15a] sm:$0xff] }
 0x1ee   :  { %9245 = vmatmul.mubr.msk.f32.gmra.mrb[20].mxu0 %vm151_vm0, %v7733_v51  ;;  %8805 = vmatprep.mubr.msk.f32.mxu1 %vm151_vm0, %v11057_v27  ;;  %v7738_v27 = vld [vmem:[%s13671_s0 + $0x16a] sm:$0xff] }
 0x1ef   :  { %9247 = vmatprep.mubr.msk.f32.mxu0 %vm151_vm0, %v7734_v42 }
 0x1f1   :  { %8806 = vmatmul.mubr.msk.f32.gmra.mrb[54].mxu1 %vm151_vm0, %v11068_v22  ;;  %v7739_v22 = vld [vmem:[%s13671_s0 + $0x172] sm:$0xff] }
 0x1f2   :  { %9248 = vmatmul.mubr.msk.f32.gmra.mrb[22].mxu0 %vm151_vm0, %v7735_v39  ;;  %8808 = vmatprep.mubr.msk.f32.mxu1 %vm151_vm0, %v11075_v18  ;;  %v7740_v18 = vld [vmem:[%s13671_s0 + $0x182] sm:$0xff] }
 0x1f3   :  { %9250 = vmatprep.mubr.msk.f32.mxu0 %vm151_vm0, %v7736_v35 }
 0x1f5   :  { %8809 = vmatmul.mubr.msk.f32.gmra.mrb[56].mxu1 %vm151_vm0, %v11086_v14  ;;  %v7741_v14 = vld [vmem:[%s13671_s0 + $0x18a] sm:$0xff] }
 0x1f6   :  { %9251 = vmatmul.mubr.msk.f32.gmra.mrb[24].mxu0 %vm151_vm0, %v7737_v31  ;;  %8811 = vmatprep.mubr.msk.f32.mxu1 %vm151_vm0, %v11093_v10  ;;  %v7742_v10 = vld [vmem:[%s13671_s0 + $0x19a] sm:$0xff] }
 0x1f7   :  { %9253 = vmatprep.mubr.msk.f32.mxu0 %vm151_vm0, %v7738_v27 }
 0x1f9   :  { %8812 = vmatmul.mubr.msk.f32.gmra.mrb[58].mxu1 %vm151_vm0, %v11109_v26  ;;  %v7743_v26 = vld [vmem:[%s13671_s0 + $0x1a2] sm:$0xff] }
 0x1fa   :  { %9254 = vmatmul.mubr.msk.f32.gmra.mrb[26].mxu0 %vm151_vm0, %v7739_v22  ;;  %8814 = vmatprep.mubr.msk.f32.mxu1 %vm151_vm0, %v11121_v63  ;;  %v7228_v63 = vld [vmem:[%s13671_s0 + $0x1c9] sm:$0xff] }
 0x1fb   :  { %9256 = vmatprep.mubr.msk.f32.mxu0 %vm151_vm0, %v7740_v18 }
 0x1fd   :  { %8815 = vmatmul.mubr.msk.f32.gmra.mrb[60].mxu1 %vm151_vm0, %v11135_v38  ;;  %v7229_v38 = vld [vmem:[%s13671_s0 + $0x1d1] sm:$0xff] }
 0x1fe   :  { %9257 = vmatmul.mubr.msk.f32.gmra.mrb[28].mxu0 %vm151_vm0, %v7741_v14  ;;  %8817 = vmatprep.mubr.msk.f32.mxu1 %vm151_vm0, %v11261_v1  ;;  %v7745_v1 = vld [vmem:[%s13671_s0 + $0x1ea] sm:$0xff] }
 0x1ff   :  { %9259 = vmatprep.mubr.msk.f32.mxu0 %vm151_vm0, %v7742_v10 }
 0x201   :  { %8818 = vmatmul.mubr.msk.f32.gmra.mrb[62].mxu1 %vm151_vm0, %v11274_v41  ;;  %v7747_v41 = vld [vmem:[%s13671_s0 + $0x202] sm:$0xff] }
 0x202   :  { %9260 = vmatmul.mubr.msk.f32.gmra.mrb[30].mxu0 %vm151_vm0, %v7743_v26  ;;  %8870 = vmatprep.mubr.msk.f32.mxu1 %vm151_vm0, %v7228_v63 }
 0x203   :  { %9262 = vmatprep.mubr.msk.f32.mxu0 %vm151_vm0, %v7744_v21 }
 0x205   :  { %8871 = vmatmul.mubr.msk.f32.vlgmr.msra.gmra.mrb[32].mxu1 %vm151_vm0, %v7229_v38 }
 0x206   :  { %9263 = vmatmul.mubr.msk.f32.gmra.mrb[32].mxu0 %vm151_vm0, %v7745_v1  ;;  %8873 = vmatprep.mubr.msk.f32.mxu1 %vm151_vm0, %v11492_v61  ;;  %v7749_v61 = vld [vmem:[%s13671_s0 + $0x21a] sm:$0xff] }
 0x207   :  { %9265 = vmatprep.mubr.msk.f32.mxu0 %vm151_vm0, %v7746_v59 }
 0x209   :  { %8874 = vmatmul.mubr.msk.f32.gmra.mrb[34].mxu1 %vm151_vm0, %v11506_v48  ;;  %v7751_v48 = vld [vmem:[%s13671_s0 + $0x232] sm:$0xff] }
 0x20a   :  { %9266 = vmatmul.mubr.msk.f32.gmra.mrb[34].mxu0 %vm151_vm0, %v7747_v41  ;;  %8876 = vmatprep.mubr.msk.f32.mxu1 %vm151_vm0, %v11514_v52  ;;  %v7752_v52 = vld [vmem:[%s13671_s0 + $0x242] sm:$0xff] }
 0x20b   :  { %9268 = vmatprep.mubr.msk.f32.mxu0 %vm151_vm0, %v7748_v54 }
 0x20d   :  { %8877 = vmatmul.mubr.msk.f32.gmra.mrb[36].mxu1 %vm151_vm0, %v11531_v58  ;;  %v7753_v58 = vld [vmem:[%s13671_s0 + $0x24a] sm:$0xff] }
 0x20e   :  { %9269 = vmatmul.mubr.msk.f32.gmra.mrb[36].mxu0 %vm151_vm0, %v7749_v61  ;;  %8879 = vmatprep.mubr.msk.f32.mxu1 %vm151_vm0, %v11539_v62  ;;  %v7754_v62 = vld [vmem:[%s13671_s0 + $0x25a] sm:$0xff] }
 0x20f   :  { %9271 = vmatprep.mubr.msk.f32.mxu0 %vm151_vm0, %v7750_v5  ;;  %v12267_v61 = vld [vmem:[%s13672_s2] ss:$0 sm:$0xff] }
 0x211   :  { %8880 = vmatmul.mubr.msk.f32.gmra.mrb[38].mxu1 %vm151_vm0, %v11553_v3  ;;  %v7755_v3 = vld [vmem:[%s13671_s0 + $0x262] sm:$0xff] }
 0x212   :  { %9272 = vmatmul.mubr.msk.f32.gmra.mrb[38].mxu0 %vm151_vm0, %v7751_v48  ;;  %8882 = vmatprep.mubr.msk.f32.mxu1 %vm151_vm0, %v11561_v7  ;;  %v7756_v7 = vld [vmem:[%s13671_s0 + $0x272] sm:$0xff] }
 0x213   :  { %9274 = vmatprep.mubr.msk.f32.mxu0 %vm151_vm0, %v7752_v52 }
 0x215   :  { %8883 = vmatmul.mubr.msk.f32.gmra.mrb[40].mxu1 %vm151_vm0, %v11575_v11  ;;  %v7757_v11 = vld [vmem:[%s13671_s0 + $0x27a] sm:$0xff] }
 0x216   :  { %9275 = vmatmul.mubr.msk.f32.gmra.mrb[40].mxu0 %vm151_vm0, %v7753_v58  ;;  %8885 = vmatprep.mubr.msk.f32.mxu1 %vm151_vm0, %v11583_v15  ;;  %v7758_v15 = vld [vmem:[%s13671_s0 + $0x28a] sm:$0xff] }
 0x217   :  { %9277 = vmatprep.mubr.msk.f32.mxu0 %vm151_vm0, %v7754_v62 }
 0x219   :  { %8886 = vmatmul.mubr.msk.f32.gmra.mrb[42].mxu1 %vm151_vm0, %v11597_v19  ;;  %v7759_v19 = vld [vmem:[%s13671_s0 + $0x292] sm:$0xff] }
 0x21a   :  { %9278 = vmatmul.mubr.msk.f32.gmra.mrb[42].mxu0 %vm151_vm0, %v7755_v3  ;;  %8888 = vmatprep.mubr.msk.f32.mxu1 %vm151_vm0, %v11605_v23  ;;  %v7760_v23 = vld [vmem:[%s13671_s0 + $0x2a2] sm:$0xff] }
 0x21b   :  { %9280 = vmatprep.mubr.msk.f32.mxu0 %vm151_vm0, %v7756_v7 }
 0x21d   :  { %8889 = vmatmul.mubr.msk.f32.gmra.mrb[44].mxu1 %vm151_vm0, %v11619_v28  ;;  %v7761_v28 = vld [vmem:[%s13671_s0 + $0x2aa] sm:$0xff] }
 0x21e   :  { %9281 = vmatmul.mubr.msk.f32.gmra.mrb[44].mxu0 %vm151_vm0, %v7757_v11  ;;  %8891 = vmatprep.mubr.msk.f32.mxu1 %vm151_vm0, %v11627_v32  ;;  %v7762_v32 = vld [vmem:[%s13671_s0 + $0x2ba] sm:$0xff] }
 0x21f   :  { %9283 = vmatprep.mubr.msk.f32.mxu0 %vm151_vm0, %v7758_v15 }
 0x221   :  { %8892 = vmatmul.mubr.msk.f32.gmra.mrb[46].mxu1 %vm151_vm0, %v11641_v36  ;;  %v7763_v36 = vld [vmem:[%s13671_s0 + $0x2c2] sm:$0xff] }
 0x222   :  { %9284 = vmatmul.mubr.msk.f32.gmra.mrb[46].mxu0 %vm151_vm0, %v7759_v19  ;;  %8894 = vmatprep.mubr.msk.f32.mxu1 %vm151_vm0, %v11649_v53  ;;  %v7764_v53 = vld [vmem:[%s13671_s0 + $0x2d2] sm:$0xff] }
 0x223   :  { %9286 = vmatprep.mubr.msk.f32.mxu0 %vm151_vm0, %v7760_v23 }
 0x225   :  { %8895 = vmatmul.mubr.msk.f32.gmra.mrb[48].mxu1 %vm151_vm0, %v11663_v6  ;;  %v7765_v6 = vld [vmem:[%s13671_s0 + $0x2da] sm:$0xff] }
 0x226   :  { %9287 = vmatmul.mubr.msk.f32.gmra.mrb[48].mxu0 %vm151_vm0, %v7761_v28  ;;  %8897 = vmatprep.mubr.msk.f32.mxu1 %vm151_vm0, %v11671_v43  ;;  %v7766_v43 = vld [vmem:[%s13671_s0 + $0x2ea] sm:$0xff] }
 0x227   :  { %9289 = vmatprep.mubr.msk.f32.mxu0 %vm151_vm0, %v7762_v32 }
 0x229   :  { %8898 = vmatmul.mubr.msk.f32.gmra.mrb[50].mxu1 %vm151_vm0, %v11685_v50  ;;  %v7767_v50 = vld [vmem:[%s13671_s0 + $0x2f2] sm:$0xff] }
 0x22a   :  { %9290 = vmatmul.mubr.msk.f32.gmra.mrb[50].mxu0 %vm151_vm0, %v7763_v36  ;;  %8900 = vmatprep.mubr.msk.f32.mxu1 %vm151_vm0, %v11693_v56  ;;  %v7768_v56 = vld [vmem:[%s13671_s0 + $0x302] sm:$0xff] }
 0x22b   :  { %9292 = vmatprep.mubr.msk.f32.mxu0 %vm151_vm0, %v7764_v53 }
 0x22d   :  { %8901 = vmatmul.mubr.msk.f32.gmra.mrb[52].mxu1 %vm151_vm0, %v11707_v0  ;;  %v7769_v0 = vld [vmem:[%s13671_s0 + $0x30a] sm:$0xff] }
 0x22e   :  { %9293 = vmatmul.mubr.msk.f32.gmra.mrb[52].mxu0 %vm151_vm0, %v7765_v6  ;;  %8903 = vmatprep.mubr.msk.f32.mxu1 %vm151_vm0, %v11715_v9  ;;  %v7770_v9 = vld [vmem:[%s13671_s0 + $0x31a] sm:$0xff] }
 0x22f   :  { %9295 = vmatprep.mubr.msk.f32.mxu0 %vm151_vm0, %v7766_v43 }
 0x231   :  { %8904 = vmatmul.mubr.msk.f32.gmra.mrb[54].mxu1 %vm151_vm0, %v11729_v17  ;;  %v7771_v17 = vld [vmem:[%s13671_s0 + $0x322] sm:$0xff] }
 0x232   :  { %9296 = vmatmul.mubr.msk.f32.gmra.mrb[54].mxu0 %vm151_vm0, %v7767_v50  ;;  %8906 = vmatprep.mubr.msk.f32.mxu1 %vm151_vm0, %v11737_v25  ;;  %v7772_v25 = vld [vmem:[%s13671_s0 + $0x332] sm:$0xff] }
 0x233   :  { %9298 = vmatprep.mubr.msk.f32.mxu0 %vm151_vm0, %v7768_v56 }
 0x235   :  { %8907 = vmatmul.mubr.msk.f32.gmra.mrb[56].mxu1 %vm151_vm0, %v11751_v34  ;;  %v7773_v34 = vld [vmem:[%s13671_s0 + $0x33a] sm:$0xff] }
 0x236   :  { %9299 = vmatmul.mubr.msk.f32.gmra.mrb[56].mxu0 %vm151_vm0, %v7769_v0  ;;  %8909 = vmatprep.mubr.msk.f32.mxu1 %vm151_vm0, %v11759_v49  ;;  %v7774_v49 = vld [vmem:[%s13671_s0 + $0x34a] sm:$0xff] }
 0x237   :  { %9301 = vmatprep.mubr.msk.f32.mxu0 %vm151_vm0, %v7770_v9 }
 0x239   :  { %8910 = vmatmul.mubr.msk.f32.gmra.mrb[58].mxu1 %vm151_vm0, %v11773_v45  ;;  %v13827_v45 = vld [vmem:[#allocation3_spill] sm:$0xff] }
 0x23a   :  { %9302 = vmatmul.mubr.msk.f32.gmra.mrb[58].mxu0 %vm151_vm0, %v7771_v17  ;;  %8912 = vmatprep.mubr.msk.f32.mxu1 %vm151_vm0, %v11781_v60  ;;  %v7775_v60 = vld [vmem:[%s13671_s0 + $0x352] sm:$0xff] }
 0x23b   :  { %9304 = vmatprep.mubr.msk.f32.mxu0 %vm151_vm0, %v7772_v25 }
 0x23d   :  { %8913 = vmatmul.mubr.msk.f32.gmra.mrb[60].mxu1 %vm151_vm0, %v13826_v13 }
 0x23e   :  { %9305 = vmatmul.mubr.msk.f32.gmra.mrb[60].mxu0 %vm151_vm0, %v7773_v34  ;;  %8915 = vmatprep.mubr.msk.f32.mxu1 %vm151_vm0, %v13827_v45 }
 0x23f   :  { %9307 = vmatprep.mubr.msk.f32.mxu0 %vm151_vm0, %v7774_v49 }
 0x241   :  { %8916 = vmatmul.mubr.msk.f32.gmra.mrb[62].mxu1 %vm151_vm0, %v13828_v30 }
 0x242   :  { %9308 = vmatmul.mubr.msk.f32.gmra.mrb[62].mxu0 %vm151_vm0, %v7775_v60 }
 0x258   :  { %v8726_v57 = vpop.f32.mrb[0].mxu1 }
 0x259   :  { %v2338_v55 = vpop.f32.mrb[1].mxu1 }
 0x25c   :  { %v8729_v47 = vpop.f32.mrb[2].mxu1 }
 0x25d   :  { %v2348_v2 = vpop.f32.mrb[3].mxu1 }
 0x260   :  { %v8732_v4 = vpop.f32.mrb[4].mxu1 }
 0x261   :  { %v2358_v8 = vpop.f32.mrb[5].mxu1 }
 0x264   :  { %v8735_v12 = vpop.f32.mrb[6].mxu1 }
 0x265   :  { %v2368_v16 = vpop.f32.mrb[7].mxu1 }
 0x268   :  { %v8738_v20 = vpop.f32.mrb[8].mxu1 }
 0x269   :  { %v2378_v24 = vpop.f32.mrb[9].mxu1 }
 0x26c   :  { %v8741_v29 = vpop.f32.mrb[10].mxu1 }
 0x26d   :  { %v12222_v33 = vpop.f32.mrb[11].mxu1 }
 0x270   :  { %v12224_v37 = vpop.f32.mrb[12].mxu1 }
 0x271   :  { %v12226_v40 = vpop.f32.mrb[13].mxu1 }
 0x274   :  { %v12228_v44 = vpop.f32.mrb[14].mxu1 }
 0x275   :  { %v12230_v46 = vpop.f32.mrb[15].mxu1 }
 0x278   :  { %v12232_v51 = vpop.f32.mrb[16].mxu1 }
 0x279   :  { %v12234_v42 = vpop.f32.mrb[17].mxu1 }
 0x27c   :  { %v12236_v39 = vpop.f32.mrb[18].mxu1 }
 0x27d   :  { %v12238_v35 = vpop.f32.mrb[19].mxu1 }
 0x280   :  { %v12240_v31 = vpop.f32.mrb[20].mxu1 }
 0x281   :  { %v12242_v27 = vpop.f32.mrb[21].mxu1 }
 0x284   :  { %v12244_v22 = vpop.f32.mrb[22].mxu1 }
 0x285   :  { %v12246_v18 = vpop.f32.mrb[23].mxu1 }
 0x288   :  { %v12248_v14 = vpop.f32.mrb[24].mxu1 }
 0x289   :  { %v12250_v10 = vpop.f32.mrb[25].mxu1 }
 0x28c   :  { %v12252_v26 = vpop.f32.mrb[26].mxu1 }
 0x28d   :  { %v12254_v63 = vpop.f32.mrb[27].mxu1 }
 0x290   :  { %v12256_v21 = vpop.f32.mrb[28].mxu1 }
 0x291   :  { %v12258_v38 = vpop.f32.mrb[29].mxu1 }
 0x294   :  { %v12260_v1 = vpop.f32.mrb[30].mxu1 }
 0x295   :  { %v12262_v59 = vpop.f32.mrb[31].mxu1 }
 0x299   :  { %v9216_v41 = vpop.f32.mrb[0].mxu0 }
 0x29a   :  { %v9312_v54 = vadd.f32 %v9216_v41, %v8726_v57  ;;  %v5874_v5 = vpop.f32.mrb[1].mxu0 }
 0x29b   :  { %v9313_v48 = vadd.f32 %v5874_v5, %v2338_v55 }
 0x29c   :  { %v12270_v52 = vadd.f32 %v9312_v54, %v12267_v61 }
 0x29d   :  { %v12273_v58 = vadd.f32 %v9313_v48, %v12267_v61  ;;  %v9219_v62 = vpop.f32.mrb[2].mxu0 }
 0x29e   :  { %v9314_v3 = vadd.f32 %v9219_v62, %v8729_v47  ;;  %v5884_v7 = vpop.f32.mrb[3].mxu0 }
 0x29f   :  { %v9315_v11 = vadd.f32 %v5884_v7, %v2348_v2  ;;  %v6328_v15 = vadd.f32 %v12270_v52, %v12273_v58 }
 0x2a0   :  { %v12281_v36 = vadd.f32 %v9314_v3, %v12267_v61 }
 0x2a1   :  { %v12278_v19 = vadd.f32 %v9315_v11, %v12267_v61  ;;  %v9222_v23 = vpop.f32.mrb[4].mxu0 }
 0x2a2   :  { %v9316_v28 = vadd.f32 %v9222_v23, %v8732_v4  ;;  %v5894_v32 = vpop.f32.mrb[5].mxu0 }
 0x2a3   :  { %v6329_v53 = vadd.f32 %v6328_v15, %v12278_v19  ;;  %v9317_v6 = vadd.f32 %v5894_v32, %v2358_v8 }
 0x2a4   :  { %v12289_v17 = vadd.f32 %v9316_v28, %v12267_v61 }
 0x2a5   :  { %v6330_v43 = vadd.f32 %v6329_v53, %v12281_v36  ;;  %v12286_v50 = vadd.f32 %v9317_v6, %v12267_v61  ;;  %v9225_v56 = vpop.f32.mrb[6].mxu0 }
 0x2a6   :  { %v9318_v0 = vadd.f32 %v9225_v56, %v8735_v12  ;;  %v5904_v9 = vpop.f32.mrb[7].mxu0 }
 0x2a7   :  { %v6331_v25 = vadd.f32 %v6330_v43, %v12286_v50  ;;  %v9319_v34 = vadd.f32 %v5904_v9, %v2368_v16 }
 0x2a8   :  { %v12297_v57 = vadd.f32 %v9318_v0, %v12267_v61 }
 0x2a9   :  { %v12293_v49 = vadd.f32 %v9319_v34, %v12267_v61  ;;  %v6332_v13 = vadd.f32 %v6331_v25, %v12289_v17  ;;  %v9228_v45 = vpop.f32.mrb[8].mxu0 }
 0x2aa   :  { %v9320_v60 = vadd.f32 %v9228_v45, %v8738_v20  ;;  %v5914_v30 = vpop.f32.mrb[9].mxu0 }
 0x2ab   :  { %v6333_v55 = vadd.f32 %v6332_v13, %v12293_v49  ;;  %v9321_v47 = vadd.f32 %v5914_v30, %v2378_v24 }
 0x2ac   :  { %v12305_v41 = vadd.f32 %v9320_v60, %v12267_v61 }
 0x2ad   :  { %v12301_v2 = vadd.f32 %v9321_v47, %v12267_v61  ;;  %v6334_v4 = vadd.f32 %v6333_v55, %v12297_v57  ;;  %v9231_v8 = vpop.f32.mrb[10].mxu0 }
 0x2ae   :  { %v9322_v12 = vadd.f32 %v9231_v8, %v8741_v29  ;;  %v5924_v16 = vpop.f32.mrb[11].mxu0 }
 0x2af   :  { %v6335_v20 = vadd.f32 %v6334_v4, %v12301_v2  ;;  %v9323_v54 = vadd.f32 %v5924_v16, %v12222_v33 }
 0x2b0   :  { %v12315_v7 = vadd.f32 %v9322_v12, %v12267_v61 }
 0x2b1   :  { %v12310_v5 = vadd.f32 %v9323_v54, %v12267_v61  ;;  %v6336_v24 = vadd.f32 %v6335_v20, %v12305_v41  ;;  %v9234_v48 = vpop.f32.mrb[12].mxu0 }
 0x2b2   :  { %v9324_v62 = vadd.f32 %v9234_v48, %v12224_v37  ;;  %v5934_v3 = vpop.f32.mrb[13].mxu0 }
 0x2b3   :  { %v6337_v29 = vadd.f32 %v6336_v24, %v12310_v5  ;;  %v9325_v11 = vadd.f32 %v5934_v3, %v12226_v40 }
 0x2b4   :  { %v12325_v53 = vadd.f32 %v9324_v62, %v12267_v61 }
 0x2b5   :  { %v12320_v15 = vadd.f32 %v9325_v11, %v12267_v61  ;;  %v6338_v33 = vadd.f32 %v6337_v29, %v12315_v7  ;;  %v9237_v23 = vpop.f32.mrb[14].mxu0 }
 0x2b6   :  { %v9326_v28 = vadd.f32 %v9237_v23, %v12228_v44  ;;  %v5944_v32 = vpop.f32.mrb[15].mxu0 }
 0x2b7   :  { %v6339_v37 = vadd.f32 %v6338_v33, %v12320_v15  ;;  %v9327_v6 = vadd.f32 %v5944_v32, %v12230_v46 }
 0x2b8   :  { %v12335_v25 = vadd.f32 %v9326_v28, %v12267_v61 }
 0x2b9   :  { %v12330_v43 = vadd.f32 %v9327_v6, %v12267_v61  ;;  %v6340_v40 = vadd.f32 %v6339_v37, %v12325_v53  ;;  %v9240_v56 = vpop.f32.mrb[16].mxu0 }
 0x2ba   :  { %v9328_v0 = vadd.f32 %v9240_v56, %v12232_v51  ;;  %v5954_v9 = vpop.f32.mrb[17].mxu0 }
 0x2bb   :  { %v6341_v44 = vadd.f32 %v6340_v40, %v12330_v43  ;;  %v9329_v34 = vadd.f32 %v5954_v9, %v12234_v42 }
 0x2bc   :  { %v12345_v55 = vadd.f32 %v9328_v0, %v12267_v61 }
 0x2bd   :  { %v12340_v13 = vadd.f32 %v9329_v34, %v12267_v61  ;;  %v6342_v46 = vadd.f32 %v6341_v44, %v12335_v25  ;;  %v9243_v45 = vpop.f32.mrb[18].mxu0 }
 0x2be   :  { %v9330_v60 = vadd.f32 %v9243_v45, %v12236_v39  ;;  %v5964_v30 = vpop.f32.mrb[19].mxu0 }
 0x2bf   :  { %v6343_v51 = vadd.f32 %v6342_v46, %v12340_v13  ;;  %v9331_v47 = vadd.f32 %v5964_v30, %v12238_v35 }
 0x2c0   :  { %v12355_v20 = vadd.f32 %v9330_v60, %v12267_v61 }
 0x2c1   :  { %v12350_v4 = vadd.f32 %v9331_v47, %v12267_v61  ;;  %v6344_v42 = vadd.f32 %v6343_v51, %v12345_v55  ;;  %v9246_v8 = vpop.f32.mrb[20].mxu0 }
 0x2c2   :  { %v9332_v12 = vadd.f32 %v9246_v8, %v12240_v31  ;;  %v5974_v16 = vpop.f32.mrb[21].mxu0 }
 0x2c3   :  { %v6345_v39 = vadd.f32 %v6344_v42, %v12350_v4  ;;  %v9333_v54 = vadd.f32 %v5974_v16, %v12242_v27 }
 0x2c4   :  { %v12365_v29 = vadd.f32 %v9332_v12, %v12267_v61 }
 0x2c5   :  { %v12360_v24 = vadd.f32 %v9333_v54, %v12267_v61  ;;  %v6346_v35 = vadd.f32 %v6345_v39, %v12355_v20  ;;  %v9249_v48 = vpop.f32.mrb[22].mxu0 }
 0x2c6   :  { %v9334_v62 = vadd.f32 %v9249_v48, %v12244_v22  ;;  %v5984_v3 = vpop.f32.mrb[23].mxu0 }
 0x2c7   :  { %v6347_v31 = vadd.f32 %v6346_v35, %v12360_v24  ;;  %v9335_v11 = vadd.f32 %v5984_v3, %v12246_v18 }
 0x2c8   :  { %v12375_v37 = vadd.f32 %v9334_v62, %v12267_v61 }
 0x2c9   :  { %v12370_v33 = vadd.f32 %v9335_v11, %v12267_v61  ;;  %v6348_v27 = vadd.f32 %v6347_v31, %v12365_v29  ;;  %v9252_v23 = vpop.f32.mrb[24].mxu0 }
 0x2ca   :  { %v9336_v28 = vadd.f32 %v9252_v23, %v12248_v14  ;;  %v5994_v32 = vpop.f32.mrb[25].mxu0 }
 0x2cb   :  { %v6349_v22 = vadd.f32 %v6348_v27, %v12370_v33  ;;  %v9337_v6 = vadd.f32 %v5994_v32, %v12250_v10 }
 0x2cc   :  { %v12385_v44 = vadd.f32 %v9336_v28, %v12267_v61 }
 0x2cd   :  { %v12380_v40 = vadd.f32 %v9337_v6, %v12267_v61  ;;  %v6350_v18 = vadd.f32 %v6349_v22, %v12375_v37  ;;  %v9255_v56 = vpop.f32.mrb[26].mxu0 }
 0x2ce   :  { %v9338_v0 = vadd.f32 %v9255_v56, %v12252_v26  ;;  %v6004_v9 = vpop.f32.mrb[27].mxu0  ;;  %13829 = vst [vmem:[#allocation5_spill] sm:$0xff] %v12385_v44 }
 0x2cf   :  { %v6351_v14 = vadd.f32 %v6350_v18, %v12380_v40  ;;  %v9339_v34 = vadd.f32 %v6004_v9, %v12254_v63 }
 0x2d0   :  { %v12395_v51 = vadd.f32 %v9338_v0, %v12267_v61 }
 0x2d1   :  { %v12390_v46 = vadd.f32 %v9339_v34, %v12267_v61  ;;  %v6352_v10 = vadd.f32 %v6351_v14, %v12385_v44  ;;  %v9258_v45 = vpop.f32.mrb[28].mxu0 }
 0x2d2   :  { %v9340_v60 = vadd.f32 %v9258_v45, %v12256_v21  ;;  %v6014_v30 = vpop.f32.mrb[29].mxu0  ;;  %13831 = vst [vmem:[#allocation7_spill] sm:$0xff] %v12395_v51 }
 0x2d3   :  { %13830 = vst [vmem:[#allocation6_spill] sm:$0xff] %v12390_v46  ;;  %v6353_v26 = vadd.f32 %v6352_v10, %v12390_v46  ;;  %v9341_v47 = vadd.f32 %v6014_v30, %v12258_v38 }
 0x2d4   :  { %v12405_v39 = vadd.f32 %v9340_v60, %v12267_v61 }
 0x2d5   :  { %v12400_v42 = vadd.f32 %v9341_v47, %v12267_v61  ;;  %v6354_v63 = vadd.f32 %v6353_v26, %v12395_v51  ;;  %v9261_v8 = vpop.f32.mrb[30].mxu0 }
 0x2d6   :  { %v9342_v12 = vadd.f32 %v9261_v8, %v12260_v1  ;;  %v6024_v16 = vpop.f32.mrb[31].mxu0  ;;  %13833 = vst [vmem:[#allocation9_spill] sm:$0xff] %v12405_v39 }
 0x2d7   :  { %13832 = vst [vmem:[#allocation8_spill] sm:$0xff] %v12400_v42  ;;  %v6355_v21 = vadd.f32 %v6354_v63, %v12400_v42  ;;  %v9343_v54 = vadd.f32 %v6024_v16, %v12262_v59 }
 0x2d8   :  { %v8872_v35 = vpop.f32.mrb[32].mxu1  ;;  %v12414_v1 = vadd.f32 %v9342_v12, %v12267_v61 }
 0x2d9   :  { %v12410_v48 = vadd.f32 %v9343_v54, %v12267_v61  ;;  %v6356_v38 = vadd.f32 %v6355_v21, %v12405_v39  ;;  %v9264_v62 = vpop.f32.mrb[32].mxu0  ;;  %v3205_v3 = vpop.f32.mrb[33].mxu1 }
 0x2da   :  { %v9344_v31 = vadd.f32 %v9264_v62, %v8872_v35  ;;  %v6034_v11 = vpop.f32.mrb[33].mxu0  ;;  %13835 = vst [vmem:[#allocation11_spill] sm:$0xff] %v12414_v1 }
 0x2db   :  { %13834 = vst [vmem:[#allocation10_spill] sm:$0xff] %v12410_v48  ;;  %v6357_v27 = vadd.f32 %v6356_v38, %v12410_v48  ;;  %v9345_v23 = vadd.f32 %v6034_v11, %v3205_v3 }
 0x2dc   :  { %v8875_v28 = vpop.f32.mrb[34].mxu1  ;;  %v12422_v0 = vadd.f32 %v9344_v31, %v12267_v61 }
 0x2dd   :  { %v12418_v32 = vadd.f32 %v9345_v23, %v12267_v61  ;;  %v6358_v59 = vadd.f32 %v6357_v27, %v12414_v1  ;;  %v9267_v22 = vpop.f32.mrb[34].mxu0  ;;  %v3215_v6 = vpop.f32.mrb[35].mxu1 }
 0x2de   :  { %v9346_v18 = vadd.f32 %v9267_v22, %v8875_v28  ;;  %v6044_v56 = vpop.f32.mrb[35].mxu0  ;;  %13837 = vst [vmem:[#allocation13_spill] sm:$0xff] %v12422_v0 }
 0x2df   :  { %13836 = vst [vmem:[#allocation12_spill] sm:$0xff] %v12418_v32  ;;  %v6359_v9 = vadd.f32 %v6358_v59, %v12418_v32  ;;  %v9347_v14 = vadd.f32 %v6044_v56, %v3215_v6 }
 0x2e0   :  { %v8878_v34 = vpop.f32.mrb[36].mxu1  ;;  %v12430_v63 = vadd.f32 %v9346_v18, %v12267_v61 }
 0x2e1   :  { %v12426_v10 = vadd.f32 %v9347_v14, %v12267_v61  ;;  %v6360_v45 = vadd.f32 %v6359_v9, %v12422_v0  ;;  %v9270_v60 = vpop.f32.mrb[36].mxu0  ;;  %v3225_v30 = vpop.f32.mrb[37].mxu1 }
 0x2e2   :  { %v9348_v26 = vadd.f32 %v9270_v60, %v8878_v34  ;;  %v6054_v47 = vpop.f32.mrb[37].mxu0  ;;  %13839 = vst [vmem:[#allocation15_spill] sm:$0xff] %v12430_v63 }
 0x2e3   :  { %13838 = vst [vmem:[#allocation14_spill] sm:$0xff] %v12426_v10  ;;  %v6361_v8 = vadd.f32 %v6360_v45, %v12426_v10  ;;  %v9349_v12 = vadd.f32 %v6054_v47, %v3225_v30 }
 0x2e4   :  { %v8881_v16 = vpop.f32.mrb[38].mxu1  ;;  %v12438_v31 = vadd.f32 %v9348_v26, %v12267_v61 }
 0x2e5   :  { %v12434_v21 = vadd.f32 %v9349_v12, %v12267_v61  ;;  %v6362_v54 = vadd.f32 %v6361_v8, %v12430_v63  ;;  %v9273_v35 = vpop.f32.mrb[38].mxu0  ;;  %v3235_v38 = vpop.f32.mrb[39].mxu1 }
 0x2e6   :  { %v9350_v62 = vadd.f32 %v9273_v35, %v8881_v16  ;;  %v6064_v3 = vpop.f32.mrb[39].mxu0  ;;  %13841 = vst [vmem:[#allocation17_spill] sm:$0xff] %v12438_v31 }
 0x2e7   :  { %13840 = vst [vmem:[#allocation16_spill] sm:$0xff] %v12434_v21  ;;  %v6363_v11 = vadd.f32 %v6362_v54, %v12434_v21  ;;  %v9351_v27 = vadd.f32 %v6064_v3, %v3235_v38 }
 0x2e8   :  { %v8884_v23 = vpop.f32.mrb[40].mxu1  ;;  %v12446_v9 = vadd.f32 %v9350_v62, %v12267_v61 }
 0x2e9   :  { %v12442_v28 = vadd.f32 %v9351_v27, %v12267_v61  ;;  %v6364_v59 = vadd.f32 %v6363_v11, %v12438_v31  ;;  %v9276_v22 = vpop.f32.mrb[40].mxu0  ;;  %v3245_v6 = vpop.f32.mrb[41].mxu1 }
 0x2ea   :  { %v9352_v18 = vadd.f32 %v9276_v22, %v8884_v23  ;;  %v6074_v56 = vpop.f32.mrb[41].mxu0  ;;  %13843 = vst [vmem:[#allocation19_spill] sm:$0xff] %v12446_v9 }
 0x2eb   :  { %13842 = vst [vmem:[#allocation18_spill] sm:$0xff] %v12442_v28  ;;  %v6365_v14 = vadd.f32 %v6364_v59, %v12442_v28  ;;  %v9353_v34 = vadd.f32 %v6074_v56, %v3245_v6 }
 0x2ec   :  { %v8887_v45 = vpop.f32.mrb[42].mxu1  ;;  %v12454_v16 = vadd.f32 %v9352_v18, %v12267_v61 }
 0x2ed   :  { %v12450_v60 = vadd.f32 %v9353_v34, %v12267_v61  ;;  %v6366_v30 = vadd.f32 %v6365_v14, %v12446_v9  ;;  %v9279_v26 = vpop.f32.mrb[42].mxu0  ;;  %v3255_v47 = vpop.f32.mrb[43].mxu1 }
 0x2ee   :  { %v9354_v8 = vadd.f32 %v9279_v26, %v8887_v45  ;;  %v6084_v12 = vpop.f32.mrb[43].mxu0  ;;  %13845 = vst [vmem:[#allocation21_spill] sm:$0xff] %v12454_v16 }
 0x2ef   :  { %13844 = vst [vmem:[#allocation20_spill] sm:$0xff] %v12450_v60  ;;  %v6367_v54 = vadd.f32 %v6366_v30, %v12450_v60  ;;  %v9355_v35 = vadd.f32 %v6084_v12, %v3255_v47 }
 0x2f0   :  { %v8890_v38 = vpop.f32.mrb[44].mxu1  ;;  %v12462_v22 = vadd.f32 %v9354_v8, %v12267_v61 }
 0x2f1   :  { %v12458_v62 = vadd.f32 %v9355_v35, %v12267_v61  ;;  %v6368_v3 = vadd.f32 %v6367_v54, %v12454_v16  ;;  %v9282_v11 = vpop.f32.mrb[44].mxu0  ;;  %v3265_v27 = vpop.f32.mrb[45].mxu1 }
 0x2f2   :  { %v9356_v23 = vadd.f32 %v9282_v11, %v8890_v38  ;;  %v6094_v59 = vpop.f32.mrb[45].mxu0  ;;  %13847 = vst [vmem:[#allocation23_spill] sm:$0xff] %v12462_v22 }
 0x2f3   :  { %13846 = vst [vmem:[#allocation22_spill] sm:$0xff] %v12458_v62  ;;  %v6369_v6 = vadd.f32 %v6368_v3, %v12458_v62  ;;  %v9357_v18 = vadd.f32 %v6094_v59, %v3265_v27 }
 0x2f4   :  { %v8893_v56 = vpop.f32.mrb[46].mxu1  ;;  %v12470_v12 = vadd.f32 %v9356_v23, %v12267_v61 }
 0x2f5   :  { %v12466_v14 = vadd.f32 %v9357_v18, %v12267_v61  ;;  %v6370_v34 = vadd.f32 %v6369_v6, %v12462_v22  ;;  %v9285_v45 = vpop.f32.mrb[46].mxu0  ;;  %v3275_v30 = vpop.f32.mrb[47].mxu1 }
 0x2f6   :  { %v9358_v26 = vadd.f32 %v9285_v45, %v8893_v56  ;;  %v6104_v47 = vpop.f32.mrb[47].mxu0 }
 0x2f7   :  { %13848 = vst [vmem:[#allocation24_spill] sm:$0xff] %v12466_v14  ;;  %v6371_v54 = vadd.f32 %v6370_v34, %v12466_v14  ;;  %v9359_v8 = vadd.f32 %v6104_v47, %v3275_v30 }
 0x2f8   :  { %v8896_v35 = vpop.f32.mrb[48].mxu1  ;;  %v12478_v18 = vadd.f32 %v9358_v26, %v12267_v61 }
 0x2f9   :  { %v12474_v38 = vadd.f32 %v9359_v8, %v12267_v61  ;;  %v6372_v3 = vadd.f32 %v6371_v54, %v12470_v12  ;;  %v9288_v11 = vpop.f32.mrb[48].mxu0  ;;  %v3285_v27 = vpop.f32.mrb[49].mxu1 }
 0x2fa   :  { %v9360_v59 = vadd.f32 %v9288_v11, %v8896_v35  ;;  %v6114_v6 = vpop.f32.mrb[49].mxu0 }
 0x2fb   :  { %v6373_v56 = vadd.f32 %v6372_v3, %v12474_v38  ;;  %v9361_v23 = vadd.f32 %v6114_v6, %v3285_v27 }
 0x2fc   :  { %v8899_v45 = vpop.f32.mrb[50].mxu1  ;;  %v12486_v22 = vadd.f32 %v9360_v59, %v12267_v61 }
 0x2fd   :  { %v12482_v34 = vadd.f32 %v9361_v23, %v12267_v61  ;;  %v6374_v30 = vadd.f32 %v6373_v56, %v12478_v18  ;;  %v9291_v47 = vpop.f32.mrb[50].mxu0  ;;  %v3295_v8 = vpop.f32.mrb[51].mxu1 }
 0x2fe   :  { %v9362_v14 = vadd.f32 %v9291_v47, %v8899_v45  ;;  %v6124_v54 = vpop.f32.mrb[51].mxu0 }
 0x2ff   :  { %v6375_v35 = vadd.f32 %v6374_v30, %v12482_v34  ;;  %v9363_v26 = vadd.f32 %v6124_v54, %v3295_v8 }
 0x300   :  { %v8902_v11 = vpop.f32.mrb[52].mxu1  ;;  %v12494_v16 = vadd.f32 %v9362_v14, %v12267_v61 }
 0x301   :  { %v12490_v3 = vadd.f32 %v9363_v26, %v12267_v61  ;;  %v6376_v27 = vadd.f32 %v6375_v35, %v12486_v22  ;;  %v9294_v6 = vpop.f32.mrb[52].mxu0  ;;  %v3305_v23 = vpop.f32.mrb[53].mxu1 }
 0x302   :  { %v9364_v62 = vadd.f32 %v9294_v6, %v8902_v11  ;;  %v6134_v56 = vpop.f32.mrb[53].mxu0 }
 0x303   :  { %v6377_v45 = vadd.f32 %v6376_v27, %v12490_v3  ;;  %v9365_v59 = vadd.f32 %v6134_v56, %v3305_v23 }
 0x304   :  { %v8905_v47 = vpop.f32.mrb[54].mxu1  ;;  %v12502_v9 = vadd.f32 %v9364_v62, %v12267_v61 }
 0x305   :  { %v12498_v30 = vadd.f32 %v9365_v59, %v12267_v61  ;;  %v6378_v8 = vadd.f32 %v6377_v45, %v12494_v16  ;;  %v9297_v54 = vpop.f32.mrb[54].mxu0  ;;  %v3315_v26 = vpop.f32.mrb[55].mxu1 }
 0x306   :  { %v9366_v60 = vadd.f32 %v9297_v54, %v8905_v47  ;;  %v6144_v35 = vpop.f32.mrb[55].mxu0 }
 0x307   :  { %v6379_v11 = vadd.f32 %v6378_v8, %v12498_v30  ;;  %v9367_v14 = vadd.f32 %v6144_v35, %v3315_v26 }
 0x308   :  { %v8908_v6 = vpop.f32.mrb[56].mxu1  ;;  %v6319_v45 = vadd.f32 %v9366_v60, %v12267_v61 }
 0x309   :  { %v6318_v27 = vadd.f32 %v9367_v14, %v12267_v61  ;;  %v6380_v23 = vadd.f32 %v6379_v11, %v12502_v9  ;;  %v9300_v56 = vpop.f32.mrb[56].mxu0  ;;  %v3325_v59 = vpop.f32.mrb[57].mxu1 }
 0x30a   :  { %v9368_v28 = vadd.f32 %v9300_v56, %v8908_v6  ;;  %v6154_v31 = vpop.f32.mrb[57].mxu0 }
 0x30b   :  { %v6381_v21 = vadd.f32 %v6380_v23, %v6318_v27  ;;  %v9369_v47 = vadd.f32 %v6154_v31, %v3325_v59 }
 0x30c   :  { %v8911_v54 = vpop.f32.mrb[58].mxu1  ;;  %v6321_v14 = vadd.f32 %v9368_v28, %v12267_v61 }
 0x30d   :  { %v6320_v62 = vadd.f32 %v9369_v47, %v12267_v61  ;;  %v6382_v63 = vadd.f32 %v6381_v21, %v6319_v45  ;;  %v9303_v10 = vpop.f32.mrb[58].mxu0  ;;  %v3335_v8 = vpop.f32.mrb[59].mxu1 }
 0x30e   :  { %v9370_v26 = vadd.f32 %v9303_v10, %v8911_v54  ;;  %v6164_v35 = vpop.f32.mrb[59].mxu0 }
 0x30f   :  { %v6383_v0 = vadd.f32 %v6382_v63, %v6320_v62  ;;  %v9371_v11 = vadd.f32 %v6164_v35, %v3335_v8 }
 0x310   :  { %v8914_v32 = vpop.f32.mrb[60].mxu1  ;;  %v6323_v59 = vadd.f32 %v9370_v26, %v12267_v61 }
 0x311   :  { %v6322_v6 = vadd.f32 %v9371_v11, %v12267_v61  ;;  %v6384_v56 = vadd.f32 %v6383_v0, %v6321_v14  ;;  %v9306_v1 = vpop.f32.mrb[60].mxu0  ;;  %v3345_v60 = vpop.f32.mrb[61].mxu1 }
 0x312   :  { %v9372_v23 = vadd.f32 %v9306_v1, %v8914_v32  ;;  %v6174_v31 = vpop.f32.mrb[61].mxu0 }
 0x313   :  { %v6385_v47 = vadd.f32 %v6384_v56, %v6322_v6  ;;  %v9373_v21 = vadd.f32 %v6174_v31, %v3345_v60 }
 0x314   :  { %v8917_v48 = vpop.f32.mrb[62].mxu1  ;;  %v6325_v35 = vadd.f32 %v9372_v23, %v12267_v61 }
 0x315   :  { %v6324_v10 = vadd.f32 %v9373_v21, %v12267_v61  ;;  %v6386_v54 = vadd.f32 %v6385_v47, %v6323_v59  ;;  %v9309_v39 = vpop.f32.mrb[62].mxu0  ;;  %v3355_v28 = vpop.f32.mrb[63].mxu1 }
 0x316   :  { %v9374_v63 = vadd.f32 %v9309_v39, %v8917_v48  ;;  %v6184_v8 = vpop.f32.mrb[63].mxu0 }
 0x317   :  { %v6387_v11 = vadd.f32 %v6386_v54, %v6324_v10  ;;  %v9375_v0 = vadd.f32 %v6184_v8, %v3355_v28 }
 0x318   :  { %v6327_v32 = vadd.f32 %v9374_v63, %v12267_v61 }
 0x319   :  { %v6326_v42 = vadd.f32 %v9375_v0, %v12267_v61  ;;  %v6388_v1 = vadd.f32 %v6387_v11, %v6325_v35 }
 0x31b   :  { %v6389_v26 = vadd.f32 %v6388_v1, %v6326_v42 }
 0x31d   :  { %v6390_v56 = vadd.f32 %v6389_v26, %v6327_v32 }
 0x31f   :  { %v6391_v60 = vrot.slane %v6390_v56, 4 }
 0x321   :  { %v6392_v31 = vadd.f32 %v6391_v60, %v6390_v56 }
 0x323   :  { %v6393_v51 = vrot.slane %v6392_v31, 2 }
 0x325   :  { %v6394_v21 = vadd.f32 %v6393_v51, %v6392_v31 }
 0x327   :  { %v6395_v47 = vrot.slane %v6394_v21, 1 }
 0x329   :  { %v6396_v46 = vadd.f32 %v6395_v47, %v6394_v21 }
 0x32b   :  { %v12516_v44 = vmul.f32 0.001953125, %v6396_v46 }
 0x32d   :  { %v12520_v39 = vsub.f32 %v12470_v12, %v12516_v44  ;;  %v12524_v48 = vsub.f32 %v12474_v38, %v12516_v44  ;;  %v12528_v61 = vsub.f32 %v12478_v18, %v12516_v44  ;;  %v12532_v23 = vsub.f32 %v12482_v34, %v12516_v44 }
 0x32e   :  { %v12536_v46 = vsub.f32 %v12486_v22, %v12516_v44  ;;  %v12540_v51 = vsub.f32 %v12490_v3, %v12516_v44  ;;  %v12544_v12 = vsub.f32 %v12494_v16, %v12516_v44  ;;  %v12548_v38 = vsub.f32 %v12498_v30, %v12516_v44 }
 0x32f   :  { %v12552_v18 = vsub.f32 %v12502_v9, %v12516_v44  ;;  %v12555_v34 = vsub.f32 %v6318_v27, %v12516_v44  ;;  %v12558_v22 = vsub.f32 %v6319_v45, %v12516_v44  ;;  %v12561_v3 = vsub.f32 %v6320_v62, %v12516_v44 }
 0x330   :  { %v12564_v16 = vsub.f32 %v6321_v14, %v12516_v44  ;;  %v12567_v54 = vsub.f32 %v6322_v6, %v12516_v44  ;;  %v12570_v30 = vsub.f32 %v6323_v59, %v12516_v44  ;;  %v12573_v9 = vsub.f32 %v6324_v10, %v12516_v44 }
 0x331   :  { %v12576_v27 = vsub.f32 %v6325_v35, %v12516_v44  ;;  %v12579_v45 = vsub.f32 %v6326_v42, %v12516_v44  ;;  %v12582_v62 = vsub.f32 %v6327_v32, %v12516_v44  ;;  %v12586_v14 = vsub.f32 %v12273_v58, %v12516_v44 }
 0x332   :  { %13849 = vst [vmem:[#allocation25_spill] sm:$0xff] %v12564_v16  ;;  %13850 = vst [vmem:[#allocation26_spill] sm:$0xff] %v12567_v54  ;;  %v12590_v6 = vsub.f32 %v12270_v52, %v12516_v44  ;;  %v12594_v59 = vsub.f32 %v12278_v19, %v12516_v44  ;;  %v12602_v28 = vsub.f32 %v12281_v36, %v12516_v44 }
 0x333   :  { %13851 = vst [vmem:[#allocation27_spill] sm:$0xff] %v12570_v30  ;;  %13852 = vst [vmem:[#allocation28_spill] sm:$0xff] %v12573_v9  ;;  %v6462_v10 = vmul.f32 %v12586_v14, %v12586_v14  ;;  %v12606_v58 = vsub.f32 %v12286_v50, %v12516_v44  ;;  %v12612_v19 = vsub.f32 %v12289_v17, %v12516_v44 }
 0x334   :  { %13853 = vst [vmem:[#allocation29_spill] sm:$0xff] %v12576_v27  ;;  %13854 = vst [vmem:[#allocation30_spill] sm:$0xff] %v12582_v62  ;;  %v6463_v42 = vmul.f32 %v12590_v6, %v12590_v6  ;;  %v6464_v52 = vmul.f32 %v12594_v59, %v12594_v59  ;;  %v6465_v8 = vmul.f32 %v12602_v28, %v12602_v28 }
 0x335   :  { %v12618_v36 = vsub.f32 %v12293_v49, %v12516_v44  ;;  %v6466_v50 = vmul.f32 %v12606_v58, %v12606_v58  ;;  %v12624_v0 = vsub.f32 %v12297_v57, %v12516_v44  ;;  %v6467_v17 = vmul.f32 %v12612_v19, %v12612_v19 }
 0x336   :  { %v6526_v63 = vadd.f32 %v6463_v42, %v6462_v10  ;;  %v12630_v32 = vsub.f32 %v12301_v2, %v12516_v44  ;;  %v12636_v56 = vsub.f32 %v12305_v41, %v12516_v44  ;;  %v12642_v31 = vsub.f32 %v12310_v5, %v12516_v44 }
 0x337   :  { %v6468_v49 = vmul.f32 %v12618_v36, %v12618_v36  ;;  %v6469_v57 = vmul.f32 %v12624_v0, %v12624_v0  ;;  %v12648_v47 = vsub.f32 %v12315_v7, %v12516_v44  ;;  %v12654_v42 = vsub.f32 %v12320_v15, %v12516_v44 }
 0x338   :  { %v6527_v35 = vadd.f32 %v6526_v63, %v6464_v52  ;;  %v6470_v2 = vmul.f32 %v12630_v32, %v12630_v32  ;;  %v6471_v41 = vmul.f32 %v12636_v56, %v12636_v56  ;;  %v6472_v5 = vmul.f32 %v12642_v31, %v12642_v31 }
 0x339   :  { %v12660_v63 = vsub.f32 %v12325_v53, %v12516_v44  ;;  %v6473_v7 = vmul.f32 %v12648_v47, %v12648_v47  ;;  %v6474_v15 = vmul.f32 %v12654_v42, %v12654_v42 }
 0x33a   :  { %v6528_v11 = vadd.f32 %v6527_v35, %v6465_v8  ;;  %v12666_v35 = vsub.f32 %v12330_v43, %v12516_v44 }
 0x33b   :  { %v6475_v53 = vmul.f32 %v12660_v63, %v12660_v63 }
 0x33c   :  { %v6529_v1 = vadd.f32 %v6528_v11, %v6466_v50  ;;  %v12672_v11 = vsub.f32 %v12335_v25, %v12516_v44  ;;  %v6476_v43 = vmul.f32 %v12666_v35, %v12666_v35 }
 0x33e   :  { %v6530_v26 = vadd.f32 %v6529_v1, %v6467_v17  ;;  %v12678_v1 = vsub.f32 %v12340_v13, %v12516_v44  ;;  %v6477_v25 = vmul.f32 %v12672_v11, %v12672_v11 }
 0x340   :  { %v6531_v60 = vadd.f32 %v6530_v26, %v6468_v49  ;;  %v12684_v26 = vsub.f32 %v12345_v55, %v12516_v44  ;;  %v6478_v13 = vmul.f32 %v12678_v1, %v12678_v1 }
 0x342   :  { %v6532_v21 = vadd.f32 %v6531_v60, %v6469_v57  ;;  %v12690_v60 = vsub.f32 %v12350_v4, %v12516_v44  ;;  %v6479_v55 = vmul.f32 %v12684_v26, %v12684_v26 }
 0x344   :  { %v6533_v10 = vadd.f32 %v6532_v21, %v6470_v2  ;;  %v12696_v21 = vsub.f32 %v12355_v20, %v12516_v44  ;;  %v6480_v4 = vmul.f32 %v12690_v60, %v12690_v60 }
 0x346   :  { %v6534_v52 = vadd.f32 %v6533_v10, %v6471_v41  ;;  %v12702_v10 = vsub.f32 %v12360_v24, %v12516_v44  ;;  %v6481_v20 = vmul.f32 %v12696_v21, %v12696_v21 }
 0x348   :  { %v6535_v8 = vadd.f32 %v6534_v52, %v6472_v5  ;;  %v12708_v52 = vsub.f32 %v12365_v29, %v12516_v44  ;;  %v6482_v24 = vmul.f32 %v12702_v10, %v12702_v10 }
 0x34a   :  { %v6536_v50 = vadd.f32 %v6535_v8, %v6473_v7  ;;  %v12714_v8 = vsub.f32 %v12370_v33, %v12516_v44  ;;  %v6483_v29 = vmul.f32 %v12708_v52, %v12708_v52 }
 0x34c   :  { %v6537_v17 = vadd.f32 %v6536_v50, %v6474_v15  ;;  %v12720_v50 = vsub.f32 %v12375_v37, %v12516_v44  ;;  %v6484_v33 = vmul.f32 %v12714_v8, %v12714_v8 }
 0x34e   :  { %v6538_v49 = vadd.f32 %v6537_v17, %v6475_v53  ;;  %v12726_v17 = vsub.f32 %v12380_v40, %v12516_v44  ;;  %v6485_v37 = vmul.f32 %v12720_v50, %v12720_v50 }
 0x350   :  { %v6539_v57 = vadd.f32 %v6538_v49, %v6476_v43  ;;  %v13855_v49 = vld [vmem:[#allocation5_spill] sm:$0xff]  ;;  %v6486_v40 = vmul.f32 %v12726_v17, %v12726_v17 }
 0x352   :  { %v6540_v2 = vadd.f32 %v6539_v57, %v6477_v25  ;;  %v12732_v25 = vsub.f32 %v13855_v49, %v12516_v44 }
 0x354   :  { %v6541_v41 = vadd.f32 %v6540_v2, %v6478_v13  ;;  %v13856_v13 = vld [vmem:[#allocation6_spill] sm:$0xff] }
 0x355   :  { %v12738_v2 = vsub.f32 %v13856_v13, %v12516_v44 }
 0x356   :  { %v6542_v5 = vadd.f32 %v6541_v41, %v6479_v55  ;;  %v13857_v41 = vld [vmem:[#allocation7_spill] sm:$0xff] }
 0x358   :  { %v6543_v7 = vadd.f32 %v6542_v5, %v6480_v4  ;;  %v12744_v4 = vsub.f32 %v13857_v41, %v12516_v44  ;;  %v6487_v5 = vmul.f32 %v12732_v25, %v12732_v25 }
 0x35a   :  { %v6544_v15 = vadd.f32 %v6543_v7, %v6481_v20  ;;  %v13858_v7 = vld [vmem:[#allocation8_spill] sm:$0xff] }
 0x35c   :  { %v6545_v53 = vadd.f32 %v6544_v15, %v6482_v24  ;;  %v12750_v24 = vsub.f32 %v13858_v7, %v12516_v44  ;;  %v6488_v15 = vmul.f32 %v12738_v2, %v12738_v2  ;;  %v13866_v7 = vld [vmem:[#allocation12_spill] sm:$0xff] }
 0x35e   :  { %v6546_v43 = vadd.f32 %v6545_v53, %v6483_v29  ;;  %13859 = vst [vmem:[#allocation31_spill] sm:$0xff] %v12750_v24  ;;  %v13860_v53 = vld [vmem:[#allocation9_spill] sm:$0xff]  ;;  %v6490_v13 = vmul.f32 %v12750_v24, %v12750_v24 }
 0x360   :  { %v6547_v57 = vadd.f32 %v6546_v43, %v6484_v33  ;;  %v12756_v33 = vsub.f32 %v13860_v53, %v12516_v44  ;;  %v6489_v43 = vmul.f32 %v12744_v4, %v12744_v4  ;;  %v12774_v53 = vsub.f32 %v13866_v7, %v12516_v44  ;;  %v13872_v7 = vld [vmem:[#allocation15_spill] sm:$0xff] }
 0x362   :  { %v6548_v55 = vadd.f32 %v6547_v57, %v6485_v37  ;;  %13861 = vst [vmem:[#allocation32_spill] sm:$0xff] %v12756_v33  ;;  %v13862_v37 = vld [vmem:[#allocation10_spill] sm:$0xff]  ;;  %13867 = vst [vmem:[#allocation33_spill] sm:$0xff] %v12774_v53 }
 0x363   :  { %v12762_v57 = vsub.f32 %v13862_v37, %v12516_v44  ;;  %v13868_v37 = vld [vmem:[#allocation13_spill] sm:$0xff] }
 0x364   :  { %v6549_v20 = vadd.f32 %v6548_v55, %v6486_v40  ;;  %v13864_v55 = vld [vmem:[#allocation11_spill] sm:$0xff]  ;;  %v12780_v24 = vsub.f32 %v13868_v37, %v12516_v44  ;;  %v13874_v37 = vld [vmem:[#allocation16_spill] sm:$0xff] }
 0x365   :  { %13863 = vst [vmem:[#allocation35_spill] sm:$0xff] %v12762_v57  ;;  %v12768_v41 = vsub.f32 %v13864_v55, %v12516_v44  ;;  %v13870_v55 = vld [vmem:[#allocation14_spill] sm:$0xff] }
 0x366   :  { %v6550_v29 = vadd.f32 %v6549_v20, %v6487_v5  ;;  %v6491_v5 = vmul.f32 %v12756_v33, %v12756_v33  ;;  %13869 = vst [vmem:[#allocation34_spill] sm:$0xff] %v12780_v24  ;;  %v12786_v33 = vsub.f32 %v13870_v55, %v12516_v44  ;;  %v13876_v55 = vld [vmem:[#allocation17_spill] sm:$0xff] }
 0x367   :  { %13865 = vst [vmem:[#allocation36_spill] sm:$0xff] %v12768_v41 }
 0x368   :  { %v6551_v49 = vadd.f32 %v6550_v29, %v6488_v15  ;;  %v6492_v15 = vmul.f32 %v12762_v57, %v12762_v57  ;;  %13871 = vst [vmem:[#allocation2_spill] sm:$0xff] %v12786_v33  ;;  %v12792_v57 = vsub.f32 %v13872_v7, %v12516_v44  ;;  %v13878_v7 = vld [vmem:[#allocation18_spill] sm:$0xff] }
 0x36a   :  { %v6552_v40 = vadd.f32 %v6551_v49, %v6489_v43  ;;  %v6493_v43 = vmul.f32 %v12768_v41, %v12768_v41  ;;  %13873 = vst [vmem:[#allocation3_spill] sm:$0xff] %v12792_v57  ;;  %v12798_v41 = vsub.f32 %v13874_v37, %v12516_v44  ;;  %v13880_v37 = vld [vmem:[#allocation19_spill] sm:$0xff] }
 0x36c   :  { %v6553_v20 = vadd.f32 %v6552_v40, %v6490_v13  ;;  %v6494_v13 = vmul.f32 %v12774_v53, %v12774_v53  ;;  %13875 = vst [vmem:[#allocation4_spill] sm:$0xff] %v12798_v41  ;;  %v12804_v53 = vsub.f32 %v13876_v55, %v12516_v44  ;;  %v13882_v55 = vld [vmem:[#allocation20_spill] sm:$0xff] }
 0x36e   :  { %v6554_v29 = vadd.f32 %v6553_v20, %v6491_v5  ;;  %v6495_v5 = vmul.f32 %v12780_v24, %v12780_v24  ;;  %13877 = vst [vmem:[#allocation5_spill] sm:$0xff] %v12804_v53  ;;  %v12810_v24 = vsub.f32 %v13878_v7, %v12516_v44  ;;  %v13883_v7 = vld [vmem:[#allocation21_spill] sm:$0xff] }
 0x370   :  { %v6555_v49 = vadd.f32 %v6554_v29, %v6492_v15  ;;  %v6496_v15 = vmul.f32 %v12786_v33, %v12786_v33  ;;  %13879 = vst [vmem:[#allocation6_spill] sm:$0xff] %v12810_v24  ;;  %v12816_v33 = vsub.f32 %v13880_v37, %v12516_v44  ;;  %v13885_v37 = vld [vmem:[#allocation22_spill] sm:$0xff] }
 0x372   :  { %v6556_v40 = vadd.f32 %v6555_v49, %v6493_v43  ;;  %v6497_v43 = vmul.f32 %v12792_v57, %v12792_v57  ;;  %13881 = vst [vmem:[#allocation7_spill] sm:$0xff] %v12816_v33  ;;  %v12822_v57 = vsub.f32 %v13882_v55, %v12516_v44  ;;  %v13886_v55 = vld [vmem:[#allocation23_spill] sm:$0xff] }
 0x374   :  { %v6557_v20 = vadd.f32 %v6556_v40, %v6494_v13  ;;  %v6498_v13 = vmul.f32 %v12798_v41, %v12798_v41  ;;  %v12828_v41 = vsub.f32 %v13883_v7, %v12516_v44  ;;  %v13887_v7 = vld [vmem:[#allocation24_spill] sm:$0xff] }
 0x376   :  { %v6558_v29 = vadd.f32 %v6557_v20, %v6495_v5  ;;  %v6499_v5 = vmul.f32 %v12804_v53, %v12804_v53  ;;  %13884 = vst [vmem:[#allocation8_spill] sm:$0xff] %v12828_v41  ;;  %v12834_v53 = vsub.f32 %v13885_v37, %v12516_v44 }
 0x378   :  { %v6559_v49 = vadd.f32 %v6558_v29, %v6496_v15  ;;  %v6500_v15 = vmul.f32 %v12810_v24, %v12810_v24  ;;  %v12840_v24 = vsub.f32 %v13886_v55, %v12516_v44 }
 0x37a   :  { %v6560_v40 = vadd.f32 %v6559_v49, %v6497_v43  ;;  %v6501_v43 = vmul.f32 %v12816_v33, %v12816_v33  ;;  %v12846_v33 = vsub.f32 %v13887_v7, %v12516_v44  ;;  %v6505_v37 = vmul.f32 %v12840_v24, %v12840_v24 }
 0x37b   :  { %v6508_v44 = vmul.f32 %v12524_v48, %v12524_v48  ;;  %v6509_v7 = vmul.f32 %v12528_v61, %v12528_v61 }
 0x37c   :  { %v6561_v20 = vadd.f32 %v6560_v40, %v6498_v13  ;;  %v6502_v13 = vmul.f32 %v12822_v57, %v12822_v57 }
 0x37e   :  { %v6562_v29 = vadd.f32 %v6561_v20, %v6499_v5  ;;  %v6503_v5 = vmul.f32 %v12828_v41, %v12828_v41  ;;  %v6507_v41 = vmul.f32 %v12520_v39, %v12520_v39 }
 0x380   :  { %v6563_v49 = vadd.f32 %v6562_v29, %v6500_v15  ;;  %v6504_v15 = vmul.f32 %v12834_v53, %v12834_v53 }
 0x382   :  { %v6564_v40 = vadd.f32 %v6563_v49, %v6501_v43  ;;  %v6506_v49 = vmul.f32 %v12846_v33, %v12846_v33 }
 0x384   :  { %v6565_v20 = vadd.f32 %v6564_v40, %v6502_v13 }
 0x386   :  { %v6566_v29 = vadd.f32 %v6565_v20, %v6503_v5  ;;  %v6510_v20 = vmul.f32 %v12532_v23, %v12532_v23 }
 0x388   :  { %v6567_v43 = vadd.f32 %v6566_v29, %v6504_v15  ;;  %v6511_v29 = vmul.f32 %v12536_v46, %v12536_v46 }
 0x38a   :  { %v6568_v55 = vadd.f32 %v6567_v43, %v6505_v37  ;;  %v6512_v43 = vmul.f32 %v12540_v51, %v12540_v51 }
 0x38c   :  { %v6569_v13 = vadd.f32 %v6568_v55, %v6506_v49  ;;  %v6513_v55 = vmul.f32 %v12544_v12, %v12544_v12 }
 0x38e   :  { %v6570_v40 = vadd.f32 %v6569_v13, %v6507_v41  ;;  %v6514_v13 = vmul.f32 %v12548_v38, %v12548_v38 }
 0x390   :  { %v6571_v5 = vadd.f32 %v6570_v40, %v6508_v44  ;;  %v6515_v40 = vmul.f32 %v12552_v18, %v12552_v18 }
 0x392   :  { %v6572_v15 = vadd.f32 %v6571_v5, %v6509_v7  ;;  %v6516_v5 = vmul.f32 %v12555_v34, %v12555_v34 }
 0x394   :  { %v6573_v37 = vadd.f32 %v6572_v15, %v6510_v20  ;;  %v6517_v15 = vmul.f32 %v12558_v22, %v12558_v22 }
 0x396   :  { %v6574_v49 = vadd.f32 %v6573_v37, %v6511_v29  ;;  %v6518_v37 = vmul.f32 %v12561_v3, %v12561_v3 }
 0x398   :  { %v6575_v41 = vadd.f32 %v6574_v49, %v6512_v43  ;;  %v6519_v49 = vmul.f32 %v12564_v16, %v12564_v16 }
 0x39a   :  { %v6576_v44 = vadd.f32 %v6575_v41, %v6513_v55  ;;  %v6520_v41 = vmul.f32 %v12567_v54, %v12567_v54 }
 0x39c   :  { %v6577_v7 = vadd.f32 %v6576_v44, %v6514_v13  ;;  %v6521_v44 = vmul.f32 %v12570_v30, %v12570_v30 }
 0x39e   :  { %v6578_v20 = vadd.f32 %v6577_v7, %v6515_v40  ;;  %v6522_v7 = vmul.f32 %v12573_v9, %v12573_v9 }
 0x3a0   :  { %v6579_v29 = vadd.f32 %v6578_v20, %v6516_v5  ;;  %v6523_v20 = vmul.f32 %v12576_v27, %v12576_v27  ;;  %v6601_v27 = vlaneseq }
 0x3a2   :  { %v6580_v43 = vadd.f32 %v6579_v29, %v6517_v15  ;;  %v6524_v29 = vmul.f32 %v12579_v45, %v12579_v45 }
 0x3a4   :  { %v6581_v55 = vadd.f32 %v6580_v43, %v6518_v37  ;;  %v6525_v43 = vmul.f32 %v12582_v62, %v12582_v62 }
 0x3a6   :  { %v6582_v13 = vadd.f32 %v6581_v55, %v6519_v49 }
 0x3a8   :  { %v6583_v40 = vadd.f32 %v6582_v13, %v6520_v41 }
 0x3aa   :  { %v6584_v5 = vadd.f32 %v6583_v40, %v6521_v44 }
 0x3ac   :  { %v6585_v15 = vadd.f32 %v6584_v5, %v6522_v7  ;;  %v6602_v7 = vshrl.u32 %v6601_v27, 7  ;;  %v6596_v5 = vld [vmem:[%s13673_s3] sm:$0x1] }
 0x3ae   :  { %v6586_v37 = vadd.f32 %v6585_v15, %v6523_v20  ;;  %v6603_v20 = vsub.s32 0, %v6602_v7  ;;  %v13895_v7 = vld [vmem:[#allocation3_spill] sm:$0xff] }
 0x3b0   :  { %v6587_v49 = vadd.f32 %v6586_v37, %v6524_v29  ;;  %v13889_v37 = vld [vmem:[#allocation32_spill] sm:$0xff] }
 0x3b2   :  { %v6588_v55 = vadd.f32 %v6587_v49, %v6525_v43  ;;  %v13890_v43 = vld [vmem:[#allocation35_spill] sm:$0xff]  ;;  %v13891_v49 = vld [vmem:[#allocation36_spill] sm:$0xff] }
 0x3b4   :  { %v6589_v54 = vrot.slane %v6588_v55, 4 }
 0x3b6   :  { %v6590_v30 = vadd.f32 %v6589_v54, %v6588_v55  ;;  %v13892_v55 = vld [vmem:[#allocation33_spill] sm:$0xff] }
 0x3b8   :  { %v6591_v41 = vrot.slane %v6590_v30, 2 }
 0x3ba   :  { %v6592_v13 = vadd.f32 %v6591_v41, %v6590_v30  ;;  %v13893_v41 = vld [vmem:[#allocation34_spill] sm:$0xff] }
 0x3bc   :  { %v6593_v16 = vrot.slane %v6592_v13, 1 }
 0x3be   :  { %v6594_v9 = vadd.f32 %v6593_v16, %v6592_v13 }
 0x3c0   :  { %v6595_v44 = vmul.f32 0.001953125, %v6594_v9 }
 0x3c2   :  { %v6597_v40 = vadd.f32 1e-05, %v6595_v44  ;;  %v13894_v44 = vld [vmem:[#allocation2_spill] sm:$0xff] }
 0x3c4   :  { %9824 = vrsqrt.f32 %v6597_v40 }
 0x3ce   :  { %v9825_v15 = vpop.eup %9824 }
 0x3cf   :  { %v6599_v62 = vmul.f32 %v9825_v15, %v6596_v5 }
 0x3d1   :  { %v12895_v29 = vrot.slane %v6599_v62, %v6603_v20  ;;  %v13896_v20 = vld [vmem:[#allocation4_spill] sm:$0xff] }
 0x3d3   :  { %v12899_v54 = vmul.f32 %v12895_v29, %v12586_v14  ;;  %v12903_v16 = vmul.f32 %v12895_v29, %v12590_v6  ;;  %v12907_v30 = vmul.f32 %v12895_v29, %v12594_v59  ;;  %v12911_v9 = vmul.f32 %v12895_v29, %v12602_v28 }
 0x3d4   :  { %v12915_v27 = vmul.f32 %v12895_v29, %v12606_v58  ;;  %v12919_v62 = vmul.f32 %v12895_v29, %v12612_v19  ;;  %v12923_v14 = vmul.f32 %v12895_v29, %v12618_v36  ;;  %v12927_v6 = vmul.f32 %v12895_v29, %v12624_v0 }
 0x3d5   :  { %v12931_v59 = vmul.f32 %v12895_v29, %v12630_v32  ;;  %v12935_v28 = vmul.f32 %v12895_v29, %v12636_v56  ;;  %v12939_v58 = vmul.f32 %v12895_v29, %v12642_v31  ;;  %v12943_v19 = vmul.f32 %v12895_v29, %v12648_v47 }
 0x3d6   :  { %v12947_v36 = vmul.f32 %v12895_v29, %v12654_v42  ;;  %v12951_v0 = vmul.f32 %v12895_v29, %v12660_v63  ;;  %v12955_v32 = vmul.f32 %v12895_v29, %v12666_v35  ;;  %v12959_v56 = vmul.f32 %v12895_v29, %v12672_v11 }
 0x3d7   :  { %v12963_v31 = vmul.f32 %v12895_v29, %v12678_v1  ;;  %v12967_v47 = vmul.f32 %v12895_v29, %v12684_v26  ;;  %v12971_v42 = vmul.f32 %v12895_v29, %v12690_v60  ;;  %v12975_v63 = vmul.f32 %v12895_v29, %v12696_v21 }
 0x3d8   :  { %v12979_v35 = vmul.f32 %v12895_v29, %v12702_v10  ;;  %v12983_v11 = vmul.f32 %v12895_v29, %v12708_v52  ;;  %v12987_v1 = vmul.f32 %v12895_v29, %v12714_v8  ;;  %v12991_v26 = vmul.f32 %v12895_v29, %v12720_v50  ;;  %v13888_v8 = vld [vmem:[#allocation31_spill] sm:$0xff] }
 0x3d9   :  { %v12995_v60 = vmul.f32 %v12895_v29, %v12726_v17  ;;  %v12999_v21 = vmul.f32 %v12895_v29, %v12732_v25  ;;  %v13003_v10 = vmul.f32 %v12895_v29, %v12738_v2  ;;  %v13007_v52 = vmul.f32 %v12895_v29, %v12744_v4 }
 0x3da   :  { %v13011_v50 = vmul.f32 %v12895_v29, %v13888_v8  ;;  %v13015_v17 = vmul.f32 %v12895_v29, %v13889_v37  ;;  %v13019_v25 = vmul.f32 %v12895_v29, %v13890_v43  ;;  %v13023_v2 = vmul.f32 %v12895_v29, %v13891_v49  ;;  %v13897_v8 = vld [vmem:[#allocation5_spill] sm:$0xff]  ;;  %v13898_v43 = vld [vmem:[#allocation6_spill] sm:$0xff] }
 0x3db   :  { %v13027_v4 = vmul.f32 %v12895_v29, %v13892_v55  ;;  %v13031_v13 = vmul.f32 %v12895_v29, %v13893_v41  ;;  %v13035_v40 = vmul.f32 %v12895_v29, %v13894_v44  ;;  %v13039_v5 = vmul.f32 %v12895_v29, %v13895_v7  ;;  %v13899_v55 = vld [vmem:[#allocation7_spill] sm:$0xff]  ;;  %v13900_v7 = vld [vmem:[#allocation8_spill] sm:$0xff] }
 0x3dc   :  { %v13043_v15 = vmul.f32 %v12895_v29, %v13896_v20  ;;  %v13047_v37 = vmul.f32 %v12895_v29, %v13897_v8  ;;  %v13051_v49 = vmul.f32 %v12895_v29, %v13898_v43  ;;  %v13055_v41 = vmul.f32 %v12895_v29, %v13899_v55 }
 0x3dd   :  { %v13059_v44 = vmul.f32 %v12895_v29, %v12822_v57  ;;  %v13063_v20 = vmul.f32 %v12895_v29, %v13900_v7  ;;  %v13067_v8 = vmul.f32 %v12895_v29, %v12834_v53  ;;  %v13071_v43 = vmul.f32 %v12895_v29, %v12840_v24 }
 0x3de   :  { %v13075_v55 = vmul.f32 %v12895_v29, %v12846_v33  ;;  %v13079_v57 = vmul.f32 %v12895_v29, %v12520_v39  ;;  %v13083_v7 = vmul.f32 %v12895_v29, %v12524_v48  ;;  %v13087_v53 = vmul.f32 %v12895_v29, %v12528_v61 }
 0x3df   :  { %v13091_v24 = vmul.f32 %v12895_v29, %v12532_v23  ;;  %v13095_v33 = vmul.f32 %v12895_v29, %v12536_v46  ;;  %v13099_v39 = vmul.f32 %v12895_v29, %v12540_v51  ;;  %v13103_v48 = vmul.f32 %v12895_v29, %v12544_v12  ;;  %v13124_v12 = vld [vmem:[%s13674_s4] ss:$0 sm:$0xff] }
 0x3e0   :  { %v13107_v61 = vmul.f32 %v12895_v29, %v12548_v38  ;;  %v13111_v23 = vmul.f32 %v12895_v29, %v12552_v18  ;;  %v13115_v46 = vmul.f32 %v12895_v29, %v12555_v34  ;;  %v13119_v51 = vmul.f32 %v12895_v29, %v12558_v22 }
 0x3e1   :  { %13901 = vst [vmem:[#allocation9_spill] sm:$0xff] %v13099_v39  ;;  %13902 = vst [vmem:[#allocation10_spill] sm:$0xff] %v13103_v48  ;;  %v13128_v38 = vmul.f32 %v12895_v29, %v12561_v3  ;;  %v13912_v39 = vld [vmem:[#allocation29_spill] sm:$0xff] }
 0x3e2   :  { %13903 = vst [vmem:[#allocation11_spill] sm:$0xff] %v13107_v61  ;;  %13904 = vst [vmem:[#allocation12_spill] sm:$0xff] %v13111_v23  ;;  %v13907_v61 = vld [vmem:[#allocation25_spill] sm:$0xff]  ;;  %v13909_v23 = vld [vmem:[#allocation26_spill] sm:$0xff]  ;;  %v13148_v3 = vmul.f32 %v12895_v29, %v13912_v39  ;;  %v13168_v39 = vadd.f32 %v13124_v12, %v12907_v30  ;;  %v13188_v30 = vadd.f32 %v13124_v12, %v12927_v6 }
 0x3e3   :  { %13905 = vst [vmem:[#allocation13_spill] sm:$0xff] %v13115_v46  ;;  %13906 = vst [vmem:[#allocation14_spill] sm:$0xff] %v13119_v51  ;;  %v13132_v18 = vmul.f32 %v12895_v29, %v13907_v61  ;;  %v13136_v34 = vmul.f32 %v12895_v29, %v13909_v23  ;;  %v13910_v46 = vld [vmem:[#allocation27_spill] sm:$0xff]  ;;  %v13911_v51 = vld [vmem:[#allocation28_spill] sm:$0xff]  ;;  %v13152_v61 = vmul.f32 %v12895_v29, %v12579_v45 }
 0x3e4   :  { %v13140_v22 = vmul.f32 %v12895_v29, %v13910_v46  ;;  %v13144_v48 = vmul.f32 %v12895_v29, %v13911_v51  ;;  %v13160_v46 = vadd.f32 %v13124_v12, %v12899_v54  ;;  %v13164_v51 = vadd.f32 %v13124_v12, %v12903_v16 }
 0x3e5   :  { %13908 = vst [vmem:[#allocation15_spill] sm:$0xff] %v13132_v18  ;;  %v13913_v18 = vld [vmem:[#allocation30_spill] sm:$0xff]  ;;  %v13172_v45 = vadd.f32 %v13124_v12, %v12911_v9  ;;  %v13180_v54 = vadd.f32 %v13124_v12, %v12919_v62  ;;  %v13184_v16 = vadd.f32 %v13124_v12, %v12923_v14  ;;  %v13192_v9 = vadd.f32 %v13124_v12, %v12931_v59 }
 0x3e6   :  { %v13156_v23 = vmul.f32 %v12895_v29, %v13913_v18  ;;  %v13176_v29 = vadd.f32 %v13124_v12, %v12915_v27  ;;  %v13196_v27 = vadd.f32 %v13124_v12, %v12935_v28  ;;  %v13200_v62 = vadd.f32 %v13124_v12, %v12939_v58 }
 0x3e7   :  { %v13204_v14 = vadd.f32 %v13124_v12, %v12943_v19  ;;  %v13208_v6 = vadd.f32 %v13124_v12, %v12947_v36  ;;  %v13212_v59 = vadd.f32 %v13124_v12, %v12951_v0  ;;  %v13216_v28 = vadd.f32 %v13124_v12, %v12955_v32 }
 0x3e8   :  { %v13220_v58 = vadd.f32 %v13124_v12, %v12959_v56  ;;  %v13224_v19 = vadd.f32 %v13124_v12, %v12963_v31  ;;  %v13228_v36 = vadd.f32 %v13124_v12, %v12967_v47  ;;  %v13232_v0 = vadd.f32 %v13124_v12, %v12971_v42  ;;  %v13919_v18 = vld [vmem:[#allocation9_spill] sm:$0xff] }
 0x3e9   :  { %v13236_v32 = vadd.f32 %v13124_v12, %v12975_v63  ;;  %v13240_v56 = vadd.f32 %v13124_v12, %v12979_v35  ;;  %v13244_v31 = vadd.f32 %v13124_v12, %v12983_v11  ;;  %v13248_v47 = vadd.f32 %v13124_v12, %v12987_v1 }
 0x3ea   :  { %v13252_v42 = vadd.f32 %v13124_v12, %v12991_v26  ;;  %v13256_v63 = vadd.f32 %v13124_v12, %v12995_v60  ;;  %v13260_v35 = vadd.f32 %v13124_v12, %v12999_v21  ;;  %v13264_v11 = vadd.f32 %v13124_v12, %v13003_v10 }
 0x3eb   :  { %v13268_v1 = vadd.f32 %v13124_v12, %v13007_v52  ;;  %v13272_v26 = vadd.f32 %v13124_v12, %v13011_v50  ;;  %v13276_v60 = vadd.f32 %v13124_v12, %v13015_v17  ;;  %v13280_v21 = vadd.f32 %v13124_v12, %v13019_v25 }
 0x3ec   :  { %v13284_v10 = vadd.f32 %v13124_v12, %v13023_v2  ;;  %v13288_v52 = vadd.f32 %v13124_v12, %v13027_v4  ;;  %v13292_v50 = vadd.f32 %v13124_v12, %v13031_v13  ;;  %v13296_v17 = vadd.f32 %v13124_v12, %v13035_v40 }
 0x3ed   :  { %v13300_v25 = vadd.f32 %v13124_v12, %v13039_v5  ;;  %v13304_v2 = vadd.f32 %v13124_v12, %v13043_v15  ;;  %v13308_v4 = vadd.f32 %v13124_v12, %v13047_v37  ;;  %v13312_v13 = vadd.f32 %v13124_v12, %v13051_v49 }
 0x3ee   :  { %v13316_v40 = vadd.f32 %v13124_v12, %v13055_v41  ;;  %v13320_v5 = vadd.f32 %v13124_v12, %v13059_v44  ;;  %v13324_v15 = vadd.f32 %v13124_v12, %v13063_v20  ;;  %v13328_v37 = vadd.f32 %v13124_v12, %v13067_v8 }
 0x3ef   :  { %v13332_v49 = vadd.f32 %v13124_v12, %v13071_v43  ;;  %v13336_v41 = vadd.f32 %v13124_v12, %v13075_v55  ;;  %v13340_v44 = vadd.f32 %v13124_v12, %v13079_v57  ;;  %v13344_v20 = vadd.f32 %v13124_v12, %v13083_v7 }
 0x3f0   :  { %v13348_v8 = vadd.f32 %v13124_v12, %v13087_v53  ;;  %v13352_v43 = vadd.f32 %v13124_v12, %v13091_v24  ;;  %v13356_v55 = vadd.f32 %v13124_v12, %v13095_v33  ;;  %v13360_v57 = vadd.f32 %v13124_v12, %v13919_v18 }
 0x3f1   :  { %13914 = vst [vmem:[#allocation16_spill] sm:$0xff] %v13340_v44  ;;  %13915 = vst [vmem:[#allocation17_spill] sm:$0xff] %v13344_v20  ;;  %v13920_v44 = vld [vmem:[#allocation10_spill] sm:$0xff]  ;;  %v13922_v20 = vld [vmem:[#allocation11_spill] sm:$0xff] }
 0x3f2   :  { %13916 = vst [vmem:[#allocation18_spill] sm:$0xff] %v13348_v8  ;;  %13917 = vst [vmem:[#allocation19_spill] sm:$0xff] %v13352_v43  ;;  %v13364_v7 = vadd.f32 %v13124_v12, %v13920_v44  ;;  %v13368_v53 = vadd.f32 %v13124_v12, %v13922_v20  ;;  %v13923_v8 = vld [vmem:[#allocation12_spill] sm:$0xff]  ;;  %v13924_v43 = vld [vmem:[#allocation13_spill] sm:$0xff]  ;;  %v13384_v44 = vadd.f32 %v13124_v12, %v13128_v38 }
 0x3f3   :  { %13918 = vst [vmem:[#allocation20_spill] sm:$0xff] %v13356_v55  ;;  %v13372_v24 = vadd.f32 %v13124_v12, %v13923_v8  ;;  %v13376_v33 = vadd.f32 %v13124_v12, %v13924_v43  ;;  %v13925_v55 = vld [vmem:[#allocation14_spill] sm:$0xff]  ;;  %v13392_v8 = vadd.f32 %v13124_v12, %v13136_v34  ;;  %v13396_v43 = vadd.f32 %v13124_v12, %v13140_v22 }
 0x3f4   :  { %13921 = vst [vmem:[#allocation21_spill] sm:$0xff] %v13364_v7  ;;  %v13380_v18 = vadd.f32 %v13124_v12, %v13925_v55  ;;  %v13926_v7 = vld [vmem:[#allocation15_spill] sm:$0xff]  ;;  %v13400_v55 = vadd.f32 %v13124_v12, %v13144_v48  ;;  %v13404_v38 = vadd.f32 %v13124_v12, %v13148_v3  ;;  %v13412_v34 = vadd.f32 %v13124_v12, %v13156_v23 }
 0x3f5   :  { %v13388_v20 = vadd.f32 %v13124_v12, %v13926_v7  ;;  %13927 = vst [vmem:[#allocation22_spill] sm:$0xff] %v13392_v8  ;;  %13928 = vst [vmem:[#allocation23_spill] sm:$0xff] %v13396_v43  ;;  %v13408_v7 = vadd.f32 %v13124_v12, %v13152_v61  ;;  %v6741_v8 = vmax.f32 %v13160_v46, 0.0  ;;  %v6742_v22 = vmax.f32 %v13164_v51, 0.0 }
 0x3f6   :  { %13929 = vst [vmem:[#allocation24_spill] sm:$0xff] %v13400_v55  ;;  %13930 = vst [vmem:[#allocation31_spill] sm:$0xff] %v13404_v38  ;;  %v6743_v43 = vmax.f32 %v13168_v39, 0.0  ;;  %v6744_v48 = vmax.f32 %v13172_v45, 0.0  ;;  %v6745_v55 = vmax.f32 %v13176_v29, 0.0  ;;  %v6746_v3 = vmax.f32 %v13180_v54, 0.0 }
 0x3f7   :  { %13931 = vst [vmem:[#allocation32_spill] sm:$0xff] %v13408_v7  ;;  %v6747_v38 = vmax.f32 %v13184_v16, 0.0  ;;  %v6748_v61 = vmax.f32 %v13188_v30, 0.0  ;;  %v6749_v7 = vmax.f32 %v13192_v9, 0.0  ;;  %v6750_v12 = vmax.f32 %v13196_v27, 0.0  ;;  %6805 = vst [vmem:[%s13675_s5] sm:$0xff] %v6741_v8 }
 0x3f8   :  { %v6751_v23 = vmax.f32 %v13200_v62, 0.0  ;;  %v6752_v46 = vmax.f32 %v13204_v14, 0.0  ;;  %6806 = vst [vmem:[%s13675_s5 + $0x8] sm:$0xff] %v6742_v22  ;;  %6807 = vst [vmem:[%s13675_s5 + $0x10] sm:$0xff] %v6743_v43  ;;  %v6753_v51 = vmax.f32 %v13208_v6, 0.0  ;;  %v6754_v39 = vmax.f32 %v13212_v59, 0.0 }
 0x3f9   :  { %6808 = vst [vmem:[%s13675_s5 + $0x18] sm:$0xff] %v6744_v48  ;;  %v6755_v45 = vmax.f32 %v13216_v28, 0.0  ;;  %v6756_v29 = vmax.f32 %v13220_v58, 0.0  ;;  %6809 = vst [vmem:[%s13675_s5 + $0x20] sm:$0xff] %v6745_v55  ;;  %v6757_v54 = vmax.f32 %v13224_v19, 0.0  ;;  %v6758_v16 = vmax.f32 %v13228_v36, 0.0 }
 0x3fa   :  { %6810 = vst [vmem:[%s13675_s5 + $0x28] sm:$0xff] %v6746_v3  ;;  %6811 = vst [vmem:[%s13675_s5 + $0x30] sm:$0xff] %v6747_v38  ;;  %v6759_v30 = vmax.f32 %v13232_v0, 0.0  ;;  %v6760_v9 = vmax.f32 %v13236_v32, 0.0  ;;  %v6761_v27 = vmax.f32 %v13240_v56, 0.0  ;;  %v6762_v62 = vmax.f32 %v13244_v31, 0.0 }
 0x3fb   :  { %6812 = vst [vmem:[%s13675_s5 + $0x38] sm:$0xff] %v6748_v61  ;;  %6813 = vst [vmem:[%s13675_s5 + $0x40] sm:$0xff] %v6749_v7  ;;  %v6763_v14 = vmax.f32 %v13248_v47, 0.0  ;;  %v6764_v6 = vmax.f32 %v13252_v42, 0.0  ;;  %v6765_v59 = vmax.f32 %v13256_v63, 0.0  ;;  %v6766_v28 = vmax.f32 %v13260_v35, 0.0 }
 0x3fc   :  { %6814 = vst [vmem:[%s13675_s5 + $0x48] sm:$0xff] %v6750_v12  ;;  %6815 = vst [vmem:[%s13675_s5 + $0x50] sm:$0xff] %v6751_v23  ;;  %v6767_v58 = vmax.f32 %v13264_v11, 0.0  ;;  %v6768_v19 = vmax.f32 %v13268_v1, 0.0  ;;  %v6769_v36 = vmax.f32 %v13272_v26, 0.0  ;;  %v6770_v0 = vmax.f32 %v13276_v60, 0.0 }
 0x3fd   :  { %6816 = vst [vmem:[%s13675_s5 + $0x58] sm:$0xff] %v6752_v46  ;;  %6817 = vst [vmem:[%s13675_s5 + $0x60] sm:$0xff] %v6753_v51  ;;  %v6771_v32 = vmax.f32 %v13280_v21, 0.0  ;;  %v6772_v56 = vmax.f32 %v13284_v10, 0.0  ;;  %v6773_v31 = vmax.f32 %v13288_v52, 0.0  ;;  %v6774_v47 = vmax.f32 %v13292_v50, 0.0 }
 0x3fe   :  { %6818 = vst [vmem:[%s13675_s5 + $0x68] sm:$0xff] %v6754_v39  ;;  %6819 = vst [vmem:[%s13675_s5 + $0x70] sm:$0xff] %v6755_v45  ;;  %v6775_v42 = vmax.f32 %v13296_v17, 0.0  ;;  %v6776_v63 = vmax.f32 %v13300_v25, 0.0  ;;  %v6777_v35 = vmax.f32 %v13304_v2, 0.0  ;;  %v6778_v11 = vmax.f32 %v13308_v4, 0.0 }
 0x3ff   :  { %6820 = vst [vmem:[%s13675_s5 + $0x78] sm:$0xff] %v6756_v29  ;;  %6821 = vst [vmem:[%s13675_s5 + $0x80] sm:$0xff] %v6757_v54  ;;  %v6779_v1 = vmax.f32 %v13312_v13, 0.0  ;;  %v6780_v26 = vmax.f32 %v13316_v40, 0.0  ;;  %v6781_v60 = vmax.f32 %v13320_v5, 0.0  ;;  %v6782_v21 = vmax.f32 %v13324_v15, 0.0 }
 0x400   :  { %6822 = vst [vmem:[%s13675_s5 + $0x88] sm:$0xff] %v6758_v16  ;;  %6823 = vst [vmem:[%s13675_s5 + $0x90] sm:$0xff] %v6759_v30  ;;  %v6783_v10 = vmax.f32 %v13328_v37, 0.0  ;;  %v6784_v52 = vmax.f32 %v13332_v49, 0.0  ;;  %v6785_v50 = vmax.f32 %v13336_v41, 0.0  ;;  %v13932_v17 = vld [vmem:[#allocation16_spill] sm:$0xff] }
 0x401   :  { %6824 = vst [vmem:[%s13675_s5 + $0x98] sm:$0xff] %v6760_v9  ;;  %6825 = vst [vmem:[%s13675_s5 + $0xa0] sm:$0xff] %v6761_v27  ;;  %v6786_v25 = vmax.f32 %v13932_v17, 0.0  ;;  %v13933_v2 = vld [vmem:[#allocation17_spill] sm:$0xff]  ;;  %v13934_v13 = vld [vmem:[#allocation18_spill] sm:$0xff]  ;;  %v6791_v41 = vmax.f32 %v13360_v57, 0.0 }
 0x402   :  { %6826 = vst [vmem:[%s13675_s5 + $0xa8] sm:$0xff] %v6762_v62  ;;  %6827 = vst [vmem:[%s13675_s5 + $0xb0] sm:$0xff] %v6763_v14  ;;  %v6787_v4 = vmax.f32 %v13933_v2, 0.0  ;;  %v6788_v40 = vmax.f32 %v13934_v13, 0.0  ;;  %v13935_v5 = vld [vmem:[#allocation19_spill] sm:$0xff]  ;;  %v13936_v37 = vld [vmem:[#allocation20_spill] sm:$0xff] }
 0x403   :  { %6828 = vst [vmem:[%s13675_s5 + $0xb8] sm:$0xff] %v6764_v6  ;;  %6829 = vst [vmem:[%s13675_s5 + $0xc0] sm:$0xff] %v6765_v59  ;;  %v6789_v15 = vmax.f32 %v13935_v5, 0.0  ;;  %v6790_v49 = vmax.f32 %v13936_v37, 0.0  ;;  %v13937_v8 = vld [vmem:[#allocation21_spill] sm:$0xff]  ;;  %v6793_v57 = vmax.f32 %v13368_v53, 0.0 }
 0x404   :  { %6830 = vst [vmem:[%s13675_s5 + $0xc8] sm:$0xff] %v6766_v28  ;;  %6831 = vst [vmem:[%s13675_s5 + $0xd0] sm:$0xff] %v6767_v58  ;;  %v6792_v43 = vmax.f32 %v13937_v8, 0.0  ;;  %v6794_v55 = vmax.f32 %v13372_v24, 0.0  ;;  %v6795_v38 = vmax.f32 %v13376_v33, 0.0  ;;  %v6796_v7 = vmax.f32 %v13380_v18, 0.0 }
 0x405   :  { %6832 = vst [vmem:[%s13675_s5 + $0xd8] sm:$0xff] %v6768_v19  ;;  %6833 = vst [vmem:[%s13675_s5 + $0xe0] sm:$0xff] %v6769_v36  ;;  %v6797_v53 = vmax.f32 %v13384_v44, 0.0  ;;  %v6798_v24 = vmax.f32 %v13388_v20, 0.0  ;;  %v13938_v33 = vld [vmem:[#allocation22_spill] sm:$0xff]  ;;  %v13939_v22 = vld [vmem:[#allocation23_spill] sm:$0xff] }
 0x406   :  { %6834 = vst [vmem:[%s13675_s5 + $0xe8] sm:$0xff] %v6770_v0  ;;  %6835 = vst [vmem:[%s13675_s5 + $0xf0] sm:$0xff] %v6771_v32  ;;  %v6799_v18 = vmax.f32 %v13938_v33, 0.0  ;;  %v6800_v48 = vmax.f32 %v13939_v22, 0.0  ;;  %v13940_v44 = vld [vmem:[#allocation24_spill] sm:$0xff]  ;;  %v13941_v3 = vld [vmem:[#allocation31_spill] sm:$0xff] }
 0x407   :  { %6836 = vst [vmem:[%s13675_s5 + $0xf8] sm:$0xff] %v6772_v56  ;;  %6837 = vst [vmem:[%s13675_s5 + $0x100] sm:$0xff] %v6773_v31  ;;  %v6801_v20 = vmax.f32 %v13940_v44, 0.0  ;;  %v6802_v61 = vmax.f32 %v13941_v3, 0.0  ;;  %v13942_v12 = vld [vmem:[#allocation32_spill] sm:$0xff]  ;;  %v6804_v46 = vmax.f32 %v13412_v34, 0.0 }
 0x408   :  { %6838 = vst [vmem:[%s13675_s5 + $0x108] sm:$0xff] %v6774_v47  ;;  %6839 = vst [vmem:[%s13675_s5 + $0x110] sm:$0xff] %v6775_v42  ;;  %v6803_v23 = vmax.f32 %v13942_v12, 0.0 }
 0x409   :  { %6840 = vst [vmem:[%s13675_s5 + $0x118] sm:$0xff] %v6776_v63  ;;  %6841 = vst [vmem:[%s13675_s5 + $0x120] sm:$0xff] %v6777_v35 }
 0x40a   :  { %6842 = vst [vmem:[%s13675_s5 + $0x128] sm:$0xff] %v6778_v11  ;;  %6843 = vst [vmem:[%s13675_s5 + $0x130] sm:$0xff] %v6779_v1 }
 0x40b   :  { %6844 = vst [vmem:[%s13675_s5 + $0x138] sm:$0xff] %v6780_v26  ;;  %6845 = vst [vmem:[%s13675_s5 + $0x140] sm:$0xff] %v6781_v60 }
 0x40c   :  { %6846 = vst [vmem:[%s13675_s5 + $0x148] sm:$0xff] %v6782_v21  ;;  %6847 = vst [vmem:[%s13675_s5 + $0x150] sm:$0xff] %v6783_v10 }
 0x40d   :  { %6848 = vst [vmem:[%s13675_s5 + $0x158] sm:$0xff] %v6784_v52  ;;  %6849 = vst [vmem:[%s13675_s5 + $0x160] sm:$0xff] %v6785_v50 }
 0x40e   :  { %6850 = vst [vmem:[%s13675_s5 + $0x168] sm:$0xff] %v6786_v25  ;;  %6851 = vst [vmem:[%s13675_s5 + $0x170] sm:$0xff] %v6787_v4 }
 0x40f   :  { %6852 = vst [vmem:[%s13675_s5 + $0x178] sm:$0xff] %v6788_v40  ;;  %6853 = vst [vmem:[%s13675_s5 + $0x180] sm:$0xff] %v6789_v15 }
 0x410   :  { %6854 = vst [vmem:[%s13675_s5 + $0x188] sm:$0xff] %v6790_v49  ;;  %6855 = vst [vmem:[%s13675_s5 + $0x190] sm:$0xff] %v6791_v41 }
 0x411   :  { %6856 = vst [vmem:[%s13675_s5 + $0x198] sm:$0xff] %v6792_v43  ;;  %6857 = vst [vmem:[%s13675_s5 + $0x1a0] sm:$0xff] %v6793_v57 }
 0x412   :  { %6858 = vst [vmem:[%s13675_s5 + $0x1a8] sm:$0xff] %v6794_v55  ;;  %6859 = vst [vmem:[%s13675_s5 + $0x1b0] sm:$0xff] %v6795_v38 }
 0x413   :  { %6860 = vst [vmem:[%s13675_s5 + $0x1b8] sm:$0xff] %v6796_v7  ;;  %6861 = vst [vmem:[%s13675_s5 + $0x1c0] sm:$0xff] %v6797_v53 }
 0x414   :  { %6862 = vst [vmem:[%s13675_s5 + $0x1c8] sm:$0xff] %v6798_v24  ;;  %6863 = vst [vmem:[%s13675_s5 + $0x1d0] sm:$0xff] %v6799_v18 }
 0x415   :  { %6864 = vst [vmem:[%s13675_s5 + $0x1d8] sm:$0xff] %v6800_v48  ;;  %6865 = vst [vmem:[%s13675_s5 + $0x1e0] sm:$0xff] %v6801_v20 }
 0x416   :  { %6866 = vst [vmem:[%s13675_s5 + $0x1e8] sm:$0xff] %v6802_v61  ;;  %6867 = vst [vmem:[%s13675_s5 + $0x1f0] sm:$0xff] %v6803_v23 }
 0x417   :  { %6868 = vst [vmem:[%s13675_s5 + $0x1f8] sm:$0xff] %v6804_v46 }

</bundles_post_ra>
